<compile_context>
chip_gen: v5e
topology: v5e:2x2
jax: 0.10.0
libtpu: 0.0.40
codegen_flags: <defaults>
</compile_context>

<pallas_src>
import jax
import jax.numpy as jnp
from jax import lax
from jax.experimental import pallas as pl
from jax.experimental.pallas import tpu as pltpu


# ------------------------------- fused kernel ---------------------------------
def bilstm_pool_kernel(xf_ref, xb_ref, wxf_ref, wxb_ref, bf_ref, bb_ref,
                       whf_ref, whb_ref, out_ref,
                       h_f, c_f, h_b, c_b, acc_f, acc_b):
    """One grid step = one (batch-block, time-block).  Computes the input
    projection for the whole time block with one wide MXU push per direction,
    then runs TB unrolled recurrence steps for both directions."""
    t = pl.program_id(1)
    n_t = pl.num_programs(1)
    B, TB, E = xf_ref.shape
    H = h_f.shape[-1]

    @pl.when(t == 0)
    def _init():
        for r in (h_f, c_f, h_b, c_b, acc_f, acc_b):
            r[...] = jnp.zeros_like(r)

    # Hoisted per-block input projection: (B*TB, E) @ (E, 4H) + bias, per direction.
    # (TB is a multiple of 8 or equals T, so the leading-dim merge is layout-clean.)
    gxf = (jnp.dot(xf_ref[...].reshape(B * TB, E), wxf_ref[...],
                   preferred_element_type=jnp.float32)
           + bf_ref[...]).reshape(B, TB, 4 * H)
    gxb = (jnp.dot(xb_ref[...].reshape(B * TB, E), wxb_ref[...],
                   preferred_element_type=jnp.float32)
           + bb_ref[...]).reshape(B, TB, 4 * H)

    def cell(gx, wh_ref, h_ref, c_ref, a_ref):
        # One real (B, H) @ (H, 4H) recurrent matmul per direction per step.
        rec = jnp.dot(h_ref[...], wh_ref[...], preferred_element_type=jnp.float32)
        # Gate layout (i, f, o, g): one sigmoid slab (3H) + one tanh slab (H);
        # the gx + rec add is fused into slab consumption (no full gate temp).
        s = jax.nn.sigmoid(gx[:, :3 * H] + rec[:, :3 * H])
        g = jnp.tanh(gx[:, 3 * H:] + rec[:, 3 * H:])
        c_new = s[:, H:2 * H] * c_ref[...] + s[:, :H] * g
        h_new = s[:, 2 * H:] * jnp.tanh(c_new)
        c_ref[...] = c_new
        h_ref[...] = h_new
        a_ref[...] = a_ref[...] + h_new        # time-mean is order-invariant

    # Statically unrolled inner time loop (static slice indices, no dynamic
    # slicing of the sublane dim); TB is small so live ranges stay bounded.
    for ts in range(TB):
        cell(gxf[:, ts, :], whf_ref, h_f, c_f, acc_f)           # x[t0 + ts]
        cell(gxb[:, TB - 1 - ts, :], whb_ref, h_b, c_b, acc_b)  # x[T-1 - (t0+ts)]

    @pl.when(t == n_t - 1)
    def _finalize():
        inv_t = 1.0 / (n_t * TB)
        out_ref[...] = (jnp.concatenate([acc_f[...], acc_b[...]], axis=-1)
                        * inv_t).astype(out_ref.dtype)


# ------------------------------ parameter packing ------------------------------
def _reorder_gates(w4h):
    """PyTorch LSTM gate order (i, f, g, o) -> (i, f, o, g) along axis 0."""
    H = w4h.shape[0] // 4
    return jnp.concatenate([w4h[:H], w4h[H:2 * H], w4h[3 * H:], w4h[2 * H:3 * H]],
                           axis=0)


def pack_params(p):
    wxf = _reorder_gates(p["w_ih_f"]).T                       # (E, 4H)
    wxb = _reorder_gates(p["w_ih_b"]).T
    whf = _reorder_gates(p["w_hh_f"]).T                       # (H, 4H)
    whb = _reorder_gates(p["w_hh_b"]).T
    bf = _reorder_gates(p["b_ih_f"] + p["b_hh_f"])[None, :]   # (1, 4H)
    bb = _reorder_gates(p["b_ih_b"] + p["b_hh_b"])[None, :]
    return wxf, wxb, whf, whb, bf, bb


def _pick_tb(T, cap=32):
    """Largest time-block <= cap that divides T and keeps sublane alignment."""
    for tb in range(min(cap, T), 0, -1):
        if T % tb == 0 and tb % 8 == 0:
            return tb
    return T   # fall back to a single whole-sequence block


# ---------------------------------- wrapper ------------------------------------
def lstm_pooling(x, params, *, block_t=None, block_b=None):
    """x: (B, T, E) f32 -> mean over time of bidirectional LSTM output, (B, 2H)."""
    B, T, E = x.shape
    H = params["w_hh_f"].shape[0] // 4
    wxf, wxb, whf, whb, bf, bb = pack_params(params)

    # TODO(synk): dropout(p=0.0) is the identity; length_batch / features_batch are
    # unused by the reference forward, and final_hidden_state is never returned.

    TB = block_t if block_t is not None else _pick_tb(T)
    assert T % TB == 0, "time block must divide T"
    Bb = block_b if block_b is not None else B                # set B//2 on v7x (2 TCs)
    assert B % Bb == 0 and (Bb % 8 == 0 or Bb == B), "bad batch block"
    n_t = T // TB
    n_b = B // Bb

    return pl.pallas_call(
        bilstm_pool_kernel,
        out_shape=jax.ShapeDtypeStruct((B, 2 * H), jnp.float32),
        grid=(n_b, n_t),
        in_specs=[
            pl.BlockSpec((Bb, TB, E), lambda b, t: (b, t, 0)),               # x fwd
            pl.BlockSpec((Bb, TB, E), lambda b, t: (b, n_t - 1 - t, 0)),     # x bwd
            pl.BlockSpec((E, 4 * H), lambda b, t: (0, 0)),                   # wxf
            pl.BlockSpec((E, 4 * H), lambda b, t: (0, 0)),                   # wxb
            pl.BlockSpec((1, 4 * H), lambda b, t: (0, 0)),                   # bf
            pl.BlockSpec((1, 4 * H), lambda b, t: (0, 0)),                   # bb
            pl.BlockSpec((H, 4 * H), lambda b, t: (0, 0)),                   # whf
            pl.BlockSpec((H, 4 * H), lambda b, t: (0, 0)),                   # whb
        ],
        out_specs=pl.BlockSpec((Bb, 2 * H), lambda b, t: (b, 0)),
        scratch_shapes=[pltpu.VMEM((Bb, H), jnp.float32)] * 6,  # h_f,c_f,h_b,c_b,acc_f,acc_b
        compiler_params=pltpu.CompilerParams(
            dimension_semantics=("parallel", "arbitrary")),
    )(x, x, wxf, wxb, bf, bb, whf, whb)


# -------------------------- init + pure-JAX reference --------------------------
def init_params(key, emb_size, hidden_size):
    """nn.LSTM-style params: weight_ih (4H, E), weight_hh (4H, H), biases (4H,),
    PyTorch gate order (i, f, g, o), uniform(-k, k) with k = 1/sqrt(H)."""
    k = 1.0 / float(hidden_size) ** 0.5
    ks = jax.random.split(key, 8)
    u = lambda kk, shape: jax.random.uniform(kk, shape, jnp.float32, -k, k)
    H, E = hidden_size, emb_size
    return {
        "w_ih_f": u(ks[0], (4 * H, E)), "w_hh_f": u(ks[1], (4 * H, H)),
        "b_ih_f": u(ks[2], (4 * H,)),   "b_hh_f": u(ks[3], (4 * H,)),
        "w_ih_b": u(ks[4], (4 * H, E)), "w_hh_b": u(ks[5], (4 * H, H)),
        "b_ih_b": u(ks[6], (4 * H,)),   "b_hh_b": u(ks[7], (4 * H,)),
    }


def lstm_pooling_ref(x, params):
    """Pure-JAX reference (lax.scan BiLSTM + mean over time)."""
    B, T, E = x.shape
    H = params["w_hh_f"].shape[0] // 4

    def cell(carry, x_t, w_ih, w_hh, b):
        h, c = carry
        gates = x_t @ w_ih.T + h @ w_hh.T + b
        i = jax.nn.sigmoid(gates[:, :H])
        f = jax.nn.sigmoid(gates[:, H:2 * H])
        g = jnp.tanh(gates[:, 2 * H:3 * H])
        o = jax.nn.sigmoid(gates[:, 3 * H:])
        c = f * c + i * g
        h = o * jnp.tanh(c)
        return (h, c), h

    x_tm = jnp.transpose(x, (1, 0, 2))
    init = (jnp.zeros((B, H), jnp.float32), jnp.zeros((B, H), jnp.float32))
    _, hs_f = lax.scan(
        lambda c, xt: cell(c, xt, params["w_ih_f"], params["w_hh_f"],
                           params["b_ih_f"] + params["b_hh_f"]), init, x_tm)
    _, hs_b = lax.scan(
        lambda c, xt: cell(c, xt, params["w_ih_b"], params["w_hh_b"],
                           params["b_ih_b"] + params["b_hh_b"]), init, x_tm[::-1])
    hs_b = hs_b[::-1]
    return jnp.mean(jnp.concatenate([hs_f, hs_b], axis=-1), axis=0)


if __name__ == "__main__":
    B, T, E, H = 2, 16, 16, 32
    key = jax.random.PRNGKey(0)
    k_x, k_p = jax.random.split(key)
    x = jax.random.normal(k_x, (B, T, E), dtype=jnp.float32)   # (batch, seq, emb)
    params = init_params(k_p, E, H)

    # block_t=8 -> 2 time blocks: exercises the reversed backward block index map
    # and the accumulator carry across grid steps.
    out = jax.block_until_ready(lstm_pooling(x, params, block_t=8))
    ref = jax.block_until_ready(lstm_pooling_ref(x, params))

    assert out.shape == (B, 2 * H), out.shape
    err = float(jnp.max(jnp.abs(out - ref)))
    assert jnp.allclose(out, ref, atol=1e-5, rtol=1e-5), err
    print("KERNEL_OK")
</pallas_src>

<mosaic_0001>
module attributes {stable_mosaic.version = 11 : i64} {
  func.func @bilstm_pool_kernel(%arg0: i32, %arg1: i32, %arg2: memref<2x8x16xf32, #tpu.memory_space<vmem>>, %arg3: memref<2x8x16xf32, #tpu.memory_space<vmem>>, %arg4: memref<16x128xf32, #tpu.memory_space<vmem>>, %arg5: memref<16x128xf32, #tpu.memory_space<vmem>>, %arg6: memref<1x128xf32, #tpu.memory_space<vmem>>, %arg7: memref<1x128xf32, #tpu.memory_space<vmem>>, %arg8: memref<32x128xf32, #tpu.memory_space<vmem>>, %arg9: memref<32x128xf32, #tpu.memory_space<vmem>>, %arg10: memref<2x64xf32, #tpu.memory_space<vmem>>, %arg11: memref<2x32xf32, #tpu.memory_space<vmem>>, %arg12: memref<2x32xf32, #tpu.memory_space<vmem>>, %arg13: memref<2x32xf32, #tpu.memory_space<vmem>>, %arg14: memref<2x32xf32, #tpu.memory_space<vmem>>, %arg15: memref<2x32xf32, #tpu.memory_space<vmem>>, %arg16: memref<2x32xf32, #tpu.memory_space<vmem>>) attributes {dimension_semantics = [#tpu.dimension_semantics<parallel>, #tpu.dimension_semantics<arbitrary>], iteration_bounds = array<i64: 1, 2>, scalar_prefetch = 0 : i64, scratch_operands = 6 : i64, tpu.core_type = #tpu.core_type<tc>, window_params = [{transform_indices = @transform_0, window_bounds = array<i64: 2, 8, 16>}, {transform_indices = @transform_1, window_bounds = array<i64: 2, 8, 16>}, {pipeline_mode = #tpu.pipeline_mode<synchronous>, transform_indices = @transform_2, window_bounds = array<i64: 16, 128>}, {pipeline_mode = #tpu.pipeline_mode<synchronous>, transform_indices = @transform_3, window_bounds = array<i64: 16, 128>}, {pipeline_mode = #tpu.pipeline_mode<synchronous>, transform_indices = @transform_4, window_bounds = array<i64: 1, 128>}, {pipeline_mode = #tpu.pipeline_mode<synchronous>, transform_indices = @transform_5, window_bounds = array<i64: 1, 128>}, {pipeline_mode = #tpu.pipeline_mode<synchronous>, transform_indices = @transform_6, window_bounds = array<i64: 32, 128>}, {pipeline_mode = #tpu.pipeline_mode<synchronous>, transform_indices = @transform_7, window_bounds = array<i64: 32, 128>}, {transform_indices = @transform_8, window_bounds = array<i64: 2, 64>}]} {
    %c0_i32 = arith.constant 0 : i32
    %0 = arith.cmpi eq, %arg1, %c0_i32 : i32
    %1 = arith.extui %0 : i1 to i32
    %c0_i32_0 = arith.constant 0 : i32
    %2 = arith.cmpi ne, %1, %c0_i32_0 : i32
    scf.if %2 {
      %cst_272 = arith.constant 0.000000e+00 : f32
      %518 = vector.broadcast %cst_272 : f32 to vector<2x32xf32>
      %c0_273 = arith.constant 0 : index
      %c0_274 = arith.constant 0 : index
      %519 = vector.load %arg11[%c0_273, %c0_274] : memref<2x32xf32, #tpu.memory_space<vmem>>, vector<2x32xf32>
      tpu.vector_store %arg11[%c0_273, %c0_274], %518 {strides = array<i32>} : memref<2x32xf32, #tpu.memory_space<vmem>>, vector<2x32xf32>,
      %cst_275 = arith.constant 0.000000e+00 : f32
      %520 = vector.broadcast %cst_275 : f32 to vector<2x32xf32>
      %c0_276 = arith.constant 0 : index
      %c0_277 = arith.constant 0 : index
      %521 = vector.load %arg12[%c0_276, %c0_277] : memref<2x32xf32, #tpu.memory_space<vmem>>, vector<2x32xf32>
      tpu.vector_store %arg12[%c0_276, %c0_277], %520 {strides = array<i32>} : memref<2x32xf32, #tpu.memory_space<vmem>>, vector<2x32xf32>,
      %cst_278 = arith.constant 0.000000e+00 : f32
      %522 = vector.broadcast %cst_278 : f32 to vector<2x32xf32>
      %c0_279 = arith.constant 0 : index
      %c0_280 = arith.constant 0 : index
      %523 = vector.load %arg13[%c0_279, %c0_280] : memref<2x32xf32, #tpu.memory_space<vmem>>, vector<2x32xf32>
      tpu.vector_store %arg13[%c0_279, %c0_280], %522 {strides = array<i32>} : memref<2x32xf32, #tpu.memory_space<vmem>>, vector<2x32xf32>,
      %cst_281 = arith.constant 0.000000e+00 : f32
      %524 = vector.broadcast %cst_281 : f32 to vector<2x32xf32>
      %c0_282 = arith.constant 0 : index
      %c0_283 = arith.constant 0 : index
      %525 = vector.load %arg14[%c0_282, %c0_283] : memref<2x32xf32, #tpu.memory_space<vmem>>, vector<2x32xf32>
      tpu.vector_store %arg14[%c0_282, %c0_283], %524 {strides = array<i32>} : memref<2x32xf32, #tpu.memory_space<vmem>>, vector<2x32xf32>,
      %cst_284 = arith.constant 0.000000e+00 : f32
      %526 = vector.broadcast %cst_284 : f32 to vector<2x32xf32>
      %c0_285 = arith.constant 0 : index
      %c0_286 = arith.constant 0 : index
      %527 = vector.load %arg15[%c0_285, %c0_286] : memref<2x32xf32, #tpu.memory_space<vmem>>, vector<2x32xf32>
      tpu.vector_store %arg15[%c0_285, %c0_286], %526 {strides = array<i32>} : memref<2x32xf32, #tpu.memory_space<vmem>>, vector<2x32xf32>,
      %cst_287 = arith.constant 0.000000e+00 : f32
      %528 = vector.broadcast %cst_287 : f32 to vector<2x32xf32>
      %c0_288 = arith.constant 0 : index
      %c0_289 = arith.constant 0 : index
      %529 = vector.load %arg16[%c0_288, %c0_289] : memref<2x32xf32, #tpu.memory_space<vmem>>, vector<2x32xf32>
      tpu.vector_store %arg16[%c0_288, %c0_289], %528 {strides = array<i32>} : memref<2x32xf32, #tpu.memory_space<vmem>>, vector<2x32xf32>,
    } else {
    }
    %c0 = arith.constant 0 : index
    %c0_1 = arith.constant 0 : index
    %c0_2 = arith.constant 0 : index
    %3 = vector.load %arg2[%c0, %c0_1, %c0_2] : memref<2x8x16xf32, #tpu.memory_space<vmem>>, vector<2x8x16xf32>
    %4 = vector.shape_cast %3 : vector<2x8x16xf32> to vector<16x16xf32>
    %c0_3 = arith.constant 0 : index
    %c0_4 = arith.constant 0 : index
    %5 = vector.load %arg4[%c0_3, %c0_4] : memref<16x128xf32, #tpu.memory_space<vmem>>, vector<16x128xf32>
    %cst = arith.constant dense<0.000000e+00> : vector<16x128xf32>
    %6 = tpu.matmul %4, %5, %cst {dimension_numbers = #tpu.dot_dimension_numbers<[1], [0], [0], [1], [0, 0, 1, 1], [], []>} : vector<16x16xf32>, vector<16x128xf32>, vector<16x128xf32> -> vector<16x128xf32>
    %c0_5 = arith.constant 0 : index
    %c0_6 = arith.constant 0 : index
    %7 = vector.load %arg6[%c0_5, %c0_6] : memref<1x128xf32, #tpu.memory_space<vmem>>, vector<1x128xf32>
    %8 = vector.broadcast %7 : vector<1x128xf32> to vector<16x128xf32>
    %9 = arith.addf %6, %8 : vector<16x128xf32>
    %10 = vector.shape_cast %9 : vector<16x128xf32> to vector<2x8x128xf32>
    %c0_7 = arith.constant 0 : index
    %c0_8 = arith.constant 0 : index
    %c0_9 = arith.constant 0 : index
    %11 = vector.load %arg3[%c0_7, %c0_8, %c0_9] : memref<2x8x16xf32, #tpu.memory_space<vmem>>, vector<2x8x16xf32>
    %12 = vector.shape_cast %11 : vector<2x8x16xf32> to vector<16x16xf32>
    %c0_10 = arith.constant 0 : index
    %c0_11 = arith.constant 0 : index
    %13 = vector.load %arg5[%c0_10, %c0_11] : memref<16x128xf32, #tpu.memory_space<vmem>>, vector<16x128xf32>
    %cst_12 = arith.constant dense<0.000000e+00> : vector<16x128xf32>
    %14 = tpu.matmul %12, %13, %cst_12 {dimension_numbers = #tpu.dot_dimension_numbers<[1], [0], [0], [1], [0, 0, 1, 1], [], []>} : vector<16x16xf32>, vector<16x128xf32>, vector<16x128xf32> -> vector<16x128xf32>
    %c0_13 = arith.constant 0 : index
    %c0_14 = arith.constant 0 : index
    %15 = vector.load %arg7[%c0_13, %c0_14] : memref<1x128xf32, #tpu.memory_space<vmem>>, vector<1x128xf32>
    %16 = vector.broadcast %15 : vector<1x128xf32> to vector<16x128xf32>
    %17 = arith.addf %14, %16 : vector<16x128xf32>
    %18 = vector.shape_cast %17 : vector<16x128xf32> to vector<2x8x128xf32>
    %19 = vector.extract_strided_slice %10 {offsets = [0, 0, 0], sizes = [2, 1, 128], strides = [1, 1, 1]} : vector<2x8x128xf32> to vector<2x1x128xf32>
    %20 = vector.shape_cast %19 : vector<2x1x128xf32> to vector<2x128xf32>
    %c0_15 = arith.constant 0 : index
    %c0_16 = arith.constant 0 : index
    %21 = vector.load %arg11[%c0_15, %c0_16] : memref<2x32xf32, #tpu.memory_space<vmem>>, vector<2x32xf32>
    %c0_17 = arith.constant 0 : index
    %c0_18 = arith.constant 0 : index
    %22 = vector.load %arg8[%c0_17, %c0_18] : memref<32x128xf32, #tpu.memory_space<vmem>>, vector<32x128xf32>
    %cst_19 = arith.constant dense<0.000000e+00> : vector<2x128xf32>
    %23 = tpu.matmul %21, %22, %cst_19 {dimension_numbers = #tpu.dot_dimension_numbers<[1], [0], [0], [1], [0, 0, 1, 1], [], []>} : vector<2x32xf32>, vector<32x128xf32>, vector<2x128xf32> -> vector<2x128xf32>
    %24 = vector.extract_strided_slice %20 {offsets = [0, 0], sizes = [2, 96], strides = [1, 1]} : vector<2x128xf32> to vector<2x96xf32>
    %25 = vector.extract_strided_slice %23 {offsets = [0, 0], sizes = [2, 96], strides = [1, 1]} : vector<2x128xf32> to vector<2x96xf32>
    %26 = arith.addf %24, %25 : vector<2x96xf32>
    %27 = arith.negf %26 : vector<2x96xf32>
    %28 = math.exp %27 : vector<2x96xf32>
    %cst_20 = arith.constant 1.000000e+00 : f32
    %29 = vector.broadcast %cst_20 : f32 to vector<2x96xf32>
    %30 = arith.addf %29, %28 : vector<2x96xf32>
    %31 = arith.divf %29, %30 : vector<2x96xf32>
    %32 = vector.extract_strided_slice %20 {offsets = [0, 96], sizes = [2, 32], strides = [1, 1]} : vector<2x128xf32> to vector<2x32xf32>
    %33 = vector.extract_strided_slice %23 {offsets = [0, 96], sizes = [2, 32], strides = [1, 1]} : vector<2x128xf32> to vector<2x32xf32>
    %34 = arith.addf %32, %33 : vector<2x32xf32>
    %35 = math.tanh %34 : vector<2x32xf32>
    %36 = vector.extract_strided_slice %31 {offsets = [0, 32], sizes = [2, 32], strides = [1, 1]} : vector<2x96xf32> to vector<2x32xf32>
    %c0_21 = arith.constant 0 : index
    %c0_22 = arith.constant 0 : index
    %37 = vector.load %arg12[%c0_21, %c0_22] : memref<2x32xf32, #tpu.memory_space<vmem>>, vector<2x32xf32>
    %38 = arith.mulf %36, %37 : vector<2x32xf32>
    %39 = vector.extract_strided_slice %31 {offsets = [0, 0], sizes = [2, 32], strides = [1, 1]} : vector<2x96xf32> to vector<2x32xf32>
    %40 = arith.mulf %39, %35 : vector<2x32xf32>
    %41 = arith.addf %38, %40 : vector<2x32xf32>
    %42 = vector.extract_strided_slice %31 {offsets = [0, 64], sizes = [2, 32], strides = [1, 1]} : vector<2x96xf32> to vector<2x32xf32>
    %43 = math.tanh %41 : vector<2x32xf32>
    %44 = arith.mulf %42, %43 : vector<2x32xf32>
    %c0_23 = arith.constant 0 : index
    %c0_24 = arith.constant 0 : index
    %45 = vector.load %arg12[%c0_23, %c0_24] : memref<2x32xf32, #tpu.memory_space<vmem>>, vector<2x32xf32>
    tpu.vector_store %arg12[%c0_23, %c0_24], %41 {strides = array<i32>} : memref<2x32xf32, #tpu.memory_space<vmem>>, vector<2x32xf32>,
    %c0_25 = arith.constant 0 : index
    %c0_26 = arith.constant 0 : index
    %46 = vector.load %arg11[%c0_25, %c0_26] : memref<2x32xf32, #tpu.memory_space<vmem>>, vector<2x32xf32>
    tpu.vector_store %arg11[%c0_25, %c0_26], %44 {strides = array<i32>} : memref<2x32xf32, #tpu.memory_space<vmem>>, vector<2x32xf32>,
    %c0_27 = arith.constant 0 : index
    %c0_28 = arith.constant 0 : index
    %47 = vector.load %arg15[%c0_27, %c0_28] : memref<2x32xf32, #tpu.memory_space<vmem>>, vector<2x32xf32>
    %48 = arith.addf %47, %44 : vector<2x32xf32>
    %c0_29 = arith.constant 0 : index
    %c0_30 = arith.constant 0 : index
    %49 = vector.load %arg15[%c0_29, %c0_30] : memref<2x32xf32, #tpu.memory_space<vmem>>, vector<2x32xf32>
    tpu.vector_store %arg15[%c0_29, %c0_30], %48 {strides = array<i32>} : memref<2x32xf32, #tpu.memory_space<vmem>>, vector<2x32xf32>,
    %50 = vector.extract_strided_slice %18 {offsets = [0, 7, 0], sizes = [2, 1, 128], strides = [1, 1, 1]} : vector<2x8x128xf32> to vector<2x1x128xf32>
    %51 = vector.shape_cast %50 : vector<2x1x128xf32> to vector<2x128xf32>
    %c0_31 = arith.constant 0 : index
    %c0_32 = arith.constant 0 : index
    %52 = vector.load %arg13[%c0_31, %c0_32] : memref<2x32xf32, #tpu.memory_space<vmem>>, vector<2x32xf32>
    %c0_33 = arith.constant 0 : index
    %c0_34 = arith.constant 0 : index
    %53 = vector.load %arg9[%c0_33, %c0_34] : memref<32x128xf32, #tpu.memory_space<vmem>>, vector<32x128xf32>
    %cst_35 = arith.constant dense<0.000000e+00> : vector<2x128xf32>
    %54 = tpu.matmul %52, %53, %cst_35 {dimension_numbers = #tpu.dot_dimension_numbers<[1], [0], [0], [1], [0, 0, 1, 1], [], []>} : vector<2x32xf32>, vector<32x128xf32>, vector<2x128xf32> -> vector<2x128xf32>
    %55 = vector.extract_strided_slice %51 {offsets = [0, 0], sizes = [2, 96], strides = [1, 1]} : vector<2x128xf32> to vector<2x96xf32>
    %56 = vector.extract_strided_slice %54 {offsets = [0, 0], sizes = [2, 96], strides = [1, 1]} : vector<2x128xf32> to vector<2x96xf32>
    %57 = arith.addf %55, %56 : vector<2x96xf32>
    %58 = arith.negf %57 : vector<2x96xf32>
    %59 = math.exp %58 : vector<2x96xf32>
    %cst_36 = arith.constant 1.000000e+00 : f32
    %60 = vector.broadcast %cst_36 : f32 to vector<2x96xf32>
    %61 = arith.addf %60, %59 : vector<2x96xf32>
    %62 = arith.divf %60, %61 : vector<2x96xf32>
    %63 = vector.extract_strided_slice %51 {offsets = [0, 96], sizes = [2, 32], strides = [1, 1]} : vector<2x128xf32> to vector<2x32xf32>
    %64 = vector.extract_strided_slice %54 {offsets = [0, 96], sizes = [2, 32], strides = [1, 1]} : vector<2x128xf32> to vector<2x32xf32>
    %65 = arith.addf %63, %64 : vector<2x32xf32>
    %66 = math.tanh %65 : vector<2x32xf32>
    %67 = vector.extract_strided_slice %62 {offsets = [0, 32], sizes = [2, 32], strides = [1, 1]} : vector<2x96xf32> to vector<2x32xf32>
    %c0_37 = arith.constant 0 : index
    %c0_38 = arith.constant 0 : index
    %68 = vector.load %arg14[%c0_37, %c0_38] : memref<2x32xf32, #tpu.memory_space<vmem>>, vector<2x32xf32>
    %69 = arith.mulf %67, %68 : vector<2x32xf32>
    %70 = vector.extract_strided_slice %62 {offsets = [0, 0], sizes = [2, 32], strides = [1, 1]} : vector<2x96xf32> to vector<2x32xf32>
    %71 = arith.mulf %70, %66 : vector<2x32xf32>
    %72 = arith.addf %69, %71 : vector<2x32xf32>
    %73 = vector.extract_strided_slice %62 {offsets = [0, 64], sizes = [2, 32], strides = [1, 1]} : vector<2x96xf32> to vector<2x32xf32>
    %74 = math.tanh %72 : vector<2x32xf32>
    %75 = arith.mulf %73, %74 : vector<2x32xf32>
    %c0_39 = arith.constant 0 : index
    %c0_40 = arith.constant 0 : index
    %76 = vector.load %arg14[%c0_39, %c0_40] : memref<2x32xf32, #tpu.memory_space<vmem>>, vector<2x32xf32>
    tpu.vector_store %arg14[%c0_39, %c0_40], %72 {strides = array<i32>} : memref<2x32xf32, #tpu.memory_space<vmem>>, vector<2x32xf32>,
    %c0_41 = arith.constant 0 : index
    %c0_42 = arith.constant 0 : index
    %77 = vector.load %arg13[%c0_41, %c0_42] : memref<2x32xf32, #tpu.memory_space<vmem>>, vector<2x32xf32>
    tpu.vector_store %arg13[%c0_41, %c0_42], %75 {strides = array<i32>} : memref<2x32xf32, #tpu.memory_space<vmem>>, vector<2x32xf32>,
    %c0_43 = arith.constant 0 : index
    %c0_44 = arith.constant 0 : index
    %78 = vector.load %arg16[%c0_43, %c0_44] : memref<2x32xf32, #tpu.memory_space<vmem>>, vector<2x32xf32>
    %79 = arith.addf %78, %75 : vector<2x32xf32>
    %c0_45 = arith.constant 0 : index
    %c0_46 = arith.constant 0 : index
    %80 = vector.load %arg16[%c0_45, %c0_46] : memref<2x32xf32, #tpu.memory_space<vmem>>, vector<2x32xf32>
    tpu.vector_store %arg16[%c0_45, %c0_46], %79 {strides = array<i32>} : memref<2x32xf32, #tpu.memory_space<vmem>>, vector<2x32xf32>,
    %81 = vector.extract_strided_slice %10 {offsets = [0, 1, 0], sizes = [2, 1, 128], strides = [1, 1, 1]} : vector<2x8x128xf32> to vector<2x1x128xf32>
    %82 = vector.shape_cast %81 : vector<2x1x128xf32> to vector<2x128xf32>
    %c0_47 = arith.constant 0 : index
    %c0_48 = arith.constant 0 : index
    %83 = vector.load %arg11[%c0_47, %c0_48] : memref<2x32xf32, #tpu.memory_space<vmem>>, vector<2x32xf32>
    %c0_49 = arith.constant 0 : index
    %c0_50 = arith.constant 0 : index
    %84 = vector.load %arg8[%c0_49, %c0_50] : memref<32x128xf32, #tpu.memory_space<vmem>>, vector<32x128xf32>
    %cst_51 = arith.constant dense<0.000000e+00> : vector<2x128xf32>
    %85 = tpu.matmul %83, %84, %cst_51 {dimension_numbers = #tpu.dot_dimension_numbers<[1], [0], [0], [1], [0, 0, 1, 1], [], []>} : vector<2x32xf32>, vector<32x128xf32>, vector<2x128xf32> -> vector<2x128xf32>
    %86 = vector.extract_strided_slice %82 {offsets = [0, 0], sizes = [2, 96], strides = [1, 1]} : vector<2x128xf32> to vector<2x96xf32>
    %87 = vector.extract_strided_slice %85 {offsets = [0, 0], sizes = [2, 96], strides = [1, 1]} : vector<2x128xf32> to vector<2x96xf32>
    %88 = arith.addf %86, %87 : vector<2x96xf32>
    %89 = arith.negf %88 : vector<2x96xf32>
    %90 = math.exp %89 : vector<2x96xf32>
    %cst_52 = arith.constant 1.000000e+00 : f32
    %91 = vector.broadcast %cst_52 : f32 to vector<2x96xf32>
    %92 = arith.addf %91, %90 : vector<2x96xf32>
    %93 = arith.divf %91, %92 : vector<2x96xf32>
    %94 = vector.extract_strided_slice %82 {offsets = [0, 96], sizes = [2, 32], strides = [1, 1]} : vector<2x128xf32> to vector<2x32xf32>
    %95 = vector.extract_strided_slice %85 {offsets = [0, 96], sizes = [2, 32], strides = [1, 1]} : vector<2x128xf32> to vector<2x32xf32>
    %96 = arith.addf %94, %95 : vector<2x32xf32>
    %97 = math.tanh %96 : vector<2x32xf32>
    %98 = vector.extract_strided_slice %93 {offsets = [0, 32], sizes = [2, 32], strides = [1, 1]} : vector<2x96xf32> to vector<2x32xf32>
    %c0_53 = arith.constant 0 : index
    %c0_54 = arith.constant 0 : index
    %99 = vector.load %arg12[%c0_53, %c0_54] : memref<2x32xf32, #tpu.memory_space<vmem>>, vector<2x32xf32>
    %100 = arith.mulf %98, %99 : vector<2x32xf32>
    %101 = vector.extract_strided_slice %93 {offsets = [0, 0], sizes = [2, 32], strides = [1, 1]} : vector<2x96xf32> to vector<2x32xf32>
    %102 = arith.mulf %101, %97 : vector<2x32xf32>
    %103 = arith.addf %100, %102 : vector<2x32xf32>
    %104 = vector.extract_strided_slice %93 {offsets = [0, 64], sizes = [2, 32], strides = [1, 1]} : vector<2x96xf32> to vector<2x32xf32>
    %105 = math.tanh %103 : vector<2x32xf32>
    %106 = arith.mulf %104, %105 : vector<2x32xf32>
    %c0_55 = arith.constant 0 : index
    %c0_56 = arith.constant 0 : index
    %107 = vector.load %arg12[%c0_55, %c0_56] : memref<2x32xf32, #tpu.memory_space<vmem>>, vector<2x32xf32>
    tpu.vector_store %arg12[%c0_55, %c0_56], %103 {strides = array<i32>} : memref<2x32xf32, #tpu.memory_space<vmem>>, vector<2x32xf32>,
    %c0_57 = arith.constant 0 : index
    %c0_58 = arith.constant 0 : index
    %108 = vector.load %arg11[%c0_57, %c0_58] : memref<2x32xf32, #tpu.memory_space<vmem>>, vector<2x32xf32>
    tpu.vector_store %arg11[%c0_57, %c0_58], %106 {strides = array<i32>} : memref<2x32xf32, #tpu.memory_space<vmem>>, vector<2x32xf32>,
    %c0_59 = arith.constant 0 : index
    %c0_60 = arith.constant 0 : index
    %109 = vector.load %arg15[%c0_59, %c0_60] : memref<2x32xf32, #tpu.memory_space<vmem>>, vector<2x32xf32>
    %110 = arith.addf %109, %106 : vector<2x32xf32>
    %c0_61 = arith.constant 0 : index
    %c0_62 = arith.constant 0 : index
    %111 = vector.load %arg15[%c0_61, %c0_62] : memref<2x32xf32, #tpu.memory_space<vmem>>, vector<2x32xf32>
    tpu.vector_store %arg15[%c0_61, %c0_62], %110 {strides = array<i32>} : memref<2x32xf32, #tpu.memory_space<vmem>>, vector<2x32xf32>,
    %112 = vector.extract_strided_slice %18 {offsets = [0, 6, 0], sizes = [2, 1, 128], strides = [1, 1, 1]} : vector<2x8x128xf32> to vector<2x1x128xf32>
    %113 = vector.shape_cast %112 : vector<2x1x128xf32> to vector<2x128xf32>
    %c0_63 = arith.constant 0 : index
    %c0_64 = arith.constant 0 : index
    %114 = vector.load %arg13[%c0_63, %c0_64] : memref<2x32xf32, #tpu.memory_space<vmem>>, vector<2x32xf32>
    %c0_65 = arith.constant 0 : index
    %c0_66 = arith.constant 0 : index
    %115 = vector.load %arg9[%c0_65, %c0_66] : memref<32x128xf32, #tpu.memory_space<vmem>>, vector<32x128xf32>
    %cst_67 = arith.constant dense<0.000000e+00> : vector<2x128xf32>
    %116 = tpu.matmul %114, %115, %cst_67 {dimension_numbers = #tpu.dot_dimension_numbers<[1], [0], [0], [1], [0, 0, 1, 1], [], []>} : vector<2x32xf32>, vector<32x128xf32>, vector<2x128xf32> -> vector<2x128xf32>
    %117 = vector.extract_strided_slice %113 {offsets = [0, 0], sizes = [2, 96], strides = [1, 1]} : vector<2x128xf32> to vector<2x96xf32>
    %118 = vector.extract_strided_slice %116 {offsets = [0, 0], sizes = [2, 96], strides = [1, 1]} : vector<2x128xf32> to vector<2x96xf32>
    %119 = arith.addf %117, %118 : vector<2x96xf32>
    %120 = arith.negf %119 : vector<2x96xf32>
    %121 = math.exp %120 : vector<2x96xf32>
    %cst_68 = arith.constant 1.000000e+00 : f32
    %122 = vector.broadcast %cst_68 : f32 to vector<2x96xf32>
    %123 = arith.addf %122, %121 : vector<2x96xf32>
    %124 = arith.divf %122, %123 : vector<2x96xf32>
    %125 = vector.extract_strided_slice %113 {offsets = [0, 96], sizes = [2, 32], strides = [1, 1]} : vector<2x128xf32> to vector<2x32xf32>
    %126 = vector.extract_strided_slice %116 {offsets = [0, 96], sizes = [2, 32], strides = [1, 1]} : vector<2x128xf32> to vector<2x32xf32>
    %127 = arith.addf %125, %126 : vector<2x32xf32>
    %128 = math.tanh %127 : vector<2x32xf32>
    %129 = vector.extract_strided_slice %124 {offsets = [0, 32], sizes = [2, 32], strides = [1, 1]} : vector<2x96xf32> to vector<2x32xf32>
    %c0_69 = arith.constant 0 : index
    %c0_70 = arith.constant 0 : index
    %130 = vector.load %arg14[%c0_69, %c0_70] : memref<2x32xf32, #tpu.memory_space<vmem>>, vector<2x32xf32>
    %131 = arith.mulf %129, %130 : vector<2x32xf32>
    %132 = vector.extract_strided_slice %124 {offsets = [0, 0], sizes = [2, 32], strides = [1, 1]} : vector<2x96xf32> to vector<2x32xf32>
    %133 = arith.mulf %132, %128 : vector<2x32xf32>
    %134 = arith.addf %131, %133 : vector<2x32xf32>
    %135 = vector.extract_strided_slice %124 {offsets = [0, 64], sizes = [2, 32], strides = [1, 1]} : vector<2x96xf32> to vector<2x32xf32>
    %136 = math.tanh %134 : vector<2x32xf32>
    %137 = arith.mulf %135, %136 : vector<2x32xf32>
    %c0_71 = arith.constant 0 : index
    %c0_72 = arith.constant 0 : index
    %138 = vector.load %arg14[%c0_71, %c0_72] : memref<2x32xf32, #tpu.memory_space<vmem>>, vector<2x32xf32>
    tpu.vector_store %arg14[%c0_71, %c0_72], %134 {strides = array<i32>} : memref<2x32xf32, #tpu.memory_space<vmem>>, vector<2x32xf32>,
    %c0_73 = arith.constant 0 : index
    %c0_74 = arith.constant 0 : index
    %139 = vector.load %arg13[%c0_73, %c0_74] : memref<2x32xf32, #tpu.memory_space<vmem>>, vector<2x32xf32>
    tpu.vector_store %arg13[%c0_73, %c0_74], %137 {strides = array<i32>} : memref<2x32xf32, #tpu.memory_space<vmem>>, vector<2x32xf32>,
    %c0_75 = arith.constant 0 : index
    %c0_76 = arith.constant 0 : index
    %140 = vector.load %arg16[%c0_75, %c0_76] : memref<2x32xf32, #tpu.memory_space<vmem>>, vector<2x32xf32>
    %141 = arith.addf %140, %137 : vector<2x32xf32>
    %c0_77 = arith.constant 0 : index
    %c0_78 = arith.constant 0 : index
    %142 = vector.load %arg16[%c0_77, %c0_78] : memref<2x32xf32, #tpu.memory_space<vmem>>, vector<2x32xf32>
    tpu.vector_store %arg16[%c0_77, %c0_78], %141 {strides = array<i32>} : memref<2x32xf32, #tpu.memory_space<vmem>>, vector<2x32xf32>,
    %143 = vector.extract_strided_slice %10 {offsets = [0, 2, 0], sizes = [2, 1, 128], strides = [1, 1, 1]} : vector<2x8x128xf32> to vector<2x1x128xf32>
    %144 = vector.shape_cast %143 : vector<2x1x128xf32> to vector<2x128xf32>
    %c0_79 = arith.constant 0 : index
    %c0_80 = arith.constant 0 : index
    %145 = vector.load %arg11[%c0_79, %c0_80] : memref<2x32xf32, #tpu.memory_space<vmem>>, vector<2x32xf32>
    %c0_81 = arith.constant 0 : index
    %c0_82 = arith.constant 0 : index
    %146 = vector.load %arg8[%c0_81, %c0_82] : memref<32x128xf32, #tpu.memory_space<vmem>>, vector<32x128xf32>
    %cst_83 = arith.constant dense<0.000000e+00> : vector<2x128xf32>
    %147 = tpu.matmul %145, %146, %cst_83 {dimension_numbers = #tpu.dot_dimension_numbers<[1], [0], [0], [1], [0, 0, 1, 1], [], []>} : vector<2x32xf32>, vector<32x128xf32>, vector<2x128xf32> -> vector<2x128xf32>
    %148 = vector.extract_strided_slice %144 {offsets = [0, 0], sizes = [2, 96], strides = [1, 1]} : vector<2x128xf32> to vector<2x96xf32>
    %149 = vector.extract_strided_slice %147 {offsets = [0, 0], sizes = [2, 96], strides = [1, 1]} : vector<2x128xf32> to vector<2x96xf32>
    %150 = arith.addf %148, %149 : vector<2x96xf32>
    %151 = arith.negf %150 : vector<2x96xf32>
    %152 = math.exp %151 : vector<2x96xf32>
    %cst_84 = arith.constant 1.000000e+00 : f32
    %153 = vector.broadcast %cst_84 : f32 to vector<2x96xf32>
    %154 = arith.addf %153, %152 : vector<2x96xf32>
    %155 = arith.divf %153, %154 : vector<2x96xf32>
    %156 = vector.extract_strided_slice %144 {offsets = [0, 96], sizes = [2, 32], strides = [1, 1]} : vector<2x128xf32> to vector<2x32xf32>
    %157 = vector.extract_strided_slice %147 {offsets = [0, 96], sizes = [2, 32], strides = [1, 1]} : vector<2x128xf32> to vector<2x32xf32>
    %158 = arith.addf %156, %157 : vector<2x32xf32>
    %159 = math.tanh %158 : vector<2x32xf32>
    %160 = vector.extract_strided_slice %155 {offsets = [0, 32], sizes = [2, 32], strides = [1, 1]} : vector<2x96xf32> to vector<2x32xf32>
    %c0_85 = arith.constant 0 : index
    %c0_86 = arith.constant 0 : index
    %161 = vector.load %arg12[%c0_85, %c0_86] : memref<2x32xf32, #tpu.memory_space<vmem>>, vector<2x32xf32>
    %162 = arith.mulf %160, %161 : vector<2x32xf32>
    %163 = vector.extract_strided_slice %155 {offsets = [0, 0], sizes = [2, 32], strides = [1, 1]} : vector<2x96xf32> to vector<2x32xf32>
    %164 = arith.mulf %163, %159 : vector<2x32xf32>
    %165 = arith.addf %162, %164 : vector<2x32xf32>
    %166 = vector.extract_strided_slice %155 {offsets = [0, 64], sizes = [2, 32], strides = [1, 1]} : vector<2x96xf32> to vector<2x32xf32>
    %167 = math.tanh %165 : vector<2x32xf32>
    %168 = arith.mulf %166, %167 : vector<2x32xf32>
    %c0_87 = arith.constant 0 : index
    %c0_88 = arith.constant 0 : index
    %169 = vector.load %arg12[%c0_87, %c0_88] : memref<2x32xf32, #tpu.memory_space<vmem>>, vector<2x32xf32>
    tpu.vector_store %arg12[%c0_87, %c0_88], %165 {strides = array<i32>} : memref<2x32xf32, #tpu.memory_space<vmem>>, vector<2x32xf32>,
    %c0_89 = arith.constant 0 : index
    %c0_90 = arith.constant 0 : index
    %170 = vector.load %arg11[%c0_89, %c0_90] : memref<2x32xf32, #tpu.memory_space<vmem>>, vector<2x32xf32>
    tpu.vector_store %arg11[%c0_89, %c0_90], %168 {strides = array<i32>} : memref<2x32xf32, #tpu.memory_space<vmem>>, vector<2x32xf32>,
    %c0_91 = arith.constant 0 : index
    %c0_92 = arith.constant 0 : index
    %171 = vector.load %arg15[%c0_91, %c0_92] : memref<2x32xf32, #tpu.memory_space<vmem>>, vector<2x32xf32>
    %172 = arith.addf %171, %168 : vector<2x32xf32>
    %c0_93 = arith.constant 0 : index
    %c0_94 = arith.constant 0 : index
    %173 = vector.load %arg15[%c0_93, %c0_94] : memref<2x32xf32, #tpu.memory_space<vmem>>, vector<2x32xf32>
    tpu.vector_store %arg15[%c0_93, %c0_94], %172 {strides = array<i32>} : memref<2x32xf32, #tpu.memory_space<vmem>>, vector<2x32xf32>,
    %174 = vector.extract_strided_slice %18 {offsets = [0, 5, 0], sizes = [2, 1, 128], strides = [1, 1, 1]} : vector<2x8x128xf32> to vector<2x1x128xf32>
    %175 = vector.shape_cast %174 : vector<2x1x128xf32> to vector<2x128xf32>
    %c0_95 = arith.constant 0 : index
    %c0_96 = arith.constant 0 : index
    %176 = vector.load %arg13[%c0_95, %c0_96] : memref<2x32xf32, #tpu.memory_space<vmem>>, vector<2x32xf32>
    %c0_97 = arith.constant 0 : index
    %c0_98 = arith.constant 0 : index
    %177 = vector.load %arg9[%c0_97, %c0_98] : memref<32x128xf32, #tpu.memory_space<vmem>>, vector<32x128xf32>
    %cst_99 = arith.constant dense<0.000000e+00> : vector<2x128xf32>
    %178 = tpu.matmul %176, %177, %cst_99 {dimension_numbers = #tpu.dot_dimension_numbers<[1], [0], [0], [1], [0, 0, 1, 1], [], []>} : vector<2x32xf32>, vector<32x128xf32>, vector<2x128xf32> -> vector<2x128xf32>
    %179 = vector.extract_strided_slice %175 {offsets = [0, 0], sizes = [2, 96], strides = [1, 1]} : vector<2x128xf32> to vector<2x96xf32>
    %180 = vector.extract_strided_slice %178 {offsets = [0, 0], sizes = [2, 96], strides = [1, 1]} : vector<2x128xf32> to vector<2x96xf32>
    %181 = arith.addf %179, %180 : vector<2x96xf32>
    %182 = arith.negf %181 : vector<2x96xf32>
    %183 = math.exp %182 : vector<2x96xf32>
    %cst_100 = arith.constant 1.000000e+00 : f32
    %184 = vector.broadcast %cst_100 : f32 to vector<2x96xf32>
    %185 = arith.addf %184, %183 : vector<2x96xf32>
    %186 = arith.divf %184, %185 : vector<2x96xf32>
    %187 = vector.extract_strided_slice %175 {offsets = [0, 96], sizes = [2, 32], strides = [1, 1]} : vector<2x128xf32> to vector<2x32xf32>
    %188 = vector.extract_strided_slice %178 {offsets = [0, 96], sizes = [2, 32], strides = [1, 1]} : vector<2x128xf32> to vector<2x32xf32>
    %189 = arith.addf %187, %188 : vector<2x32xf32>
    %190 = math.tanh %189 : vector<2x32xf32>
    %191 = vector.extract_strided_slice %186 {offsets = [0, 32], sizes = [2, 32], strides = [1, 1]} : vector<2x96xf32> to vector<2x32xf32>
    %c0_101 = arith.constant 0 : index
    %c0_102 = arith.constant 0 : index
    %192 = vector.load %arg14[%c0_101, %c0_102] : memref<2x32xf32, #tpu.memory_space<vmem>>, vector<2x32xf32>
    %193 = arith.mulf %191, %192 : vector<2x32xf32>
    %194 = vector.extract_strided_slice %186 {offsets = [0, 0], sizes = [2, 32], strides = [1, 1]} : vector<2x96xf32> to vector<2x32xf32>
    %195 = arith.mulf %194, %190 : vector<2x32xf32>
    %196 = arith.addf %193, %195 : vector<2x32xf32>
    %197 = vector.extract_strided_slice %186 {offsets = [0, 64], sizes = [2, 32], strides = [1, 1]} : vector<2x96xf32> to vector<2x32xf32>
    %198 = math.tanh %196 : vector<2x32xf32>
    %199 = arith.mulf %197, %198 : vector<2x32xf32>
    %c0_103 = arith.constant 0 : index
    %c0_104 = arith.constant 0 : index
    %200 = vector.load %arg14[%c0_103, %c0_104] : memref<2x32xf32, #tpu.memory_space<vmem>>, vector<2x32xf32>
    tpu.vector_store %arg14[%c0_103, %c0_104], %196 {strides = array<i32>} : memref<2x32xf32, #tpu.memory_space<vmem>>, vector<2x32xf32>,
    %c0_105 = arith.constant 0 : index
    %c0_106 = arith.constant 0 : index
    %201 = vector.load %arg13[%c0_105, %c0_106] : memref<2x32xf32, #tpu.memory_space<vmem>>, vector<2x32xf32>
    tpu.vector_store %arg13[%c0_105, %c0_106], %199 {strides = array<i32>} : memref<2x32xf32, #tpu.memory_space<vmem>>, vector<2x32xf32>,
    %c0_107 = arith.constant 0 : index
    %c0_108 = arith.constant 0 : index
    %202 = vector.load %arg16[%c0_107, %c0_108] : memref<2x32xf32, #tpu.memory_space<vmem>>, vector<2x32xf32>
    %203 = arith.addf %202, %199 : vector<2x32xf32>
    %c0_109 = arith.constant 0 : index
    %c0_110 = arith.constant 0 : index
    %204 = vector.load %arg16[%c0_109, %c0_110] : memref<2x32xf32, #tpu.memory_space<vmem>>, vector<2x32xf32>
    tpu.vector_store %arg16[%c0_109, %c0_110], %203 {strides = array<i32>} : memref<2x32xf32, #tpu.memory_space<vmem>>, vector<2x32xf32>,
    %205 = vector.extract_strided_slice %10 {offsets = [0, 3, 0], sizes = [2, 1, 128], strides = [1, 1, 1]} : vector<2x8x128xf32> to vector<2x1x128xf32>
    %206 = vector.shape_cast %205 : vector<2x1x128xf32> to vector<2x128xf32>
    %c0_111 = arith.constant 0 : index
    %c0_112 = arith.constant 0 : index
    %207 = vector.load %arg11[%c0_111, %c0_112] : memref<2x32xf32, #tpu.memory_space<vmem>>, vector<2x32xf32>
    %c0_113 = arith.constant 0 : index
    %c0_114 = arith.constant 0 : index
    %208 = vector.load %arg8[%c0_113, %c0_114] : memref<32x128xf32, #tpu.memory_space<vmem>>, vector<32x128xf32>
    %cst_115 = arith.constant dense<0.000000e+00> : vector<2x128xf32>
    %209 = tpu.matmul %207, %208, %cst_115 {dimension_numbers = #tpu.dot_dimension_numbers<[1], [0], [0], [1], [0, 0, 1, 1], [], []>} : vector<2x32xf32>, vector<32x128xf32>, vector<2x128xf32> -> vector<2x128xf32>
    %210 = vector.extract_strided_slice %206 {offsets = [0, 0], sizes = [2, 96], strides = [1, 1]} : vector<2x128xf32> to vector<2x96xf32>
    %211 = vector.extract_strided_slice %209 {offsets = [0, 0], sizes = [2, 96], strides = [1, 1]} : vector<2x128xf32> to vector<2x96xf32>
    %212 = arith.addf %210, %211 : vector<2x96xf32>
    %213 = arith.negf %212 : vector<2x96xf32>
    %214 = math.exp %213 : vector<2x96xf32>
    %cst_116 = arith.constant 1.000000e+00 : f32
    %215 = vector.broadcast %cst_116 : f32 to vector<2x96xf32>
    %216 = arith.addf %215, %214 : vector<2x96xf32>
    %217 = arith.divf %215, %216 : vector<2x96xf32>
    %218 = vector.extract_strided_slice %206 {offsets = [0, 96], sizes = [2, 32], strides = [1, 1]} : vector<2x128xf32> to vector<2x32xf32>
    %219 = vector.extract_strided_slice %209 {offsets = [0, 96], sizes = [2, 32], strides = [1, 1]} : vector<2x128xf32> to vector<2x32xf32>
    %220 = arith.addf %218, %219 : vector<2x32xf32>
    %221 = math.tanh %220 : vector<2x32xf32>
    %222 = vector.extract_strided_slice %217 {offsets = [0, 32], sizes = [2, 32], strides = [1, 1]} : vector<2x96xf32> to vector<2x32xf32>
    %c0_117 = arith.constant 0 : index
    %c0_118 = arith.constant 0 : index
    %223 = vector.load %arg12[%c0_117, %c0_118] : memref<2x32xf32, #tpu.memory_space<vmem>>, vector<2x32xf32>
    %224 = arith.mulf %222, %223 : vector<2x32xf32>
    %225 = vector.extract_strided_slice %217 {offsets = [0, 0], sizes = [2, 32], strides = [1, 1]} : vector<2x96xf32> to vector<2x32xf32>
    %226 = arith.mulf %225, %221 : vector<2x32xf32>
    %227 = arith.addf %224, %226 : vector<2x32xf32>
    %228 = vector.extract_strided_slice %217 {offsets = [0, 64], sizes = [2, 32], strides = [1, 1]} : vector<2x96xf32> to vector<2x32xf32>
    %229 = math.tanh %227 : vector<2x32xf32>
    %230 = arith.mulf %228, %229 : vector<2x32xf32>
    %c0_119 = arith.constant 0 : index
    %c0_120 = arith.constant 0 : index
    %231 = vector.load %arg12[%c0_119, %c0_120] : memref<2x32xf32, #tpu.memory_space<vmem>>, vector<2x32xf32>
    tpu.vector_store %arg12[%c0_119, %c0_120], %227 {strides = array<i32>} : memref<2x32xf32, #tpu.memory_space<vmem>>, vector<2x32xf32>,
    %c0_121 = arith.constant 0 : index
    %c0_122 = arith.constant 0 : index
    %232 = vector.load %arg11[%c0_121, %c0_122] : memref<2x32xf32, #tpu.memory_space<vmem>>, vector<2x32xf32>
    tpu.vector_store %arg11[%c0_121, %c0_122], %230 {strides = array<i32>} : memref<2x32xf32, #tpu.memory_space<vmem>>, vector<2x32xf32>,
    %c0_123 = arith.constant 0 : index
    %c0_124 = arith.constant 0 : index
    %233 = vector.load %arg15[%c0_123, %c0_124] : memref<2x32xf32, #tpu.memory_space<vmem>>, vector<2x32xf32>
    %234 = arith.addf %233, %230 : vector<2x32xf32>
    %c0_125 = arith.constant 0 : index
    %c0_126 = arith.constant 0 : index
    %235 = vector.load %arg15[%c0_125, %c0_126] : memref<2x32xf32, #tpu.memory_space<vmem>>, vector<2x32xf32>
    tpu.vector_store %arg15[%c0_125, %c0_126], %234 {strides = array<i32>} : memref<2x32xf32, #tpu.memory_space<vmem>>, vector<2x32xf32>,
    %236 = vector.extract_strided_slice %18 {offsets = [0, 4, 0], sizes = [2, 1, 128], strides = [1, 1, 1]} : vector<2x8x128xf32> to vector<2x1x128xf32>
    %237 = vector.shape_cast %236 : vector<2x1x128xf32> to vector<2x128xf32>
    %c0_127 = arith.constant 0 : index
    %c0_128 = arith.constant 0 : index
    %238 = vector.load %arg13[%c0_127, %c0_128] : memref<2x32xf32, #tpu.memory_space<vmem>>, vector<2x32xf32>
    %c0_129 = arith.constant 0 : index
    %c0_130 = arith.constant 0 : index
    %239 = vector.load %arg9[%c0_129, %c0_130] : memref<32x128xf32, #tpu.memory_space<vmem>>, vector<32x128xf32>
    %cst_131 = arith.constant dense<0.000000e+00> : vector<2x128xf32>
    %240 = tpu.matmul %238, %239, %cst_131 {dimension_numbers = #tpu.dot_dimension_numbers<[1], [0], [0], [1], [0, 0, 1, 1], [], []>} : vector<2x32xf32>, vector<32x128xf32>, vector<2x128xf32> -> vector<2x128xf32>
    %241 = vector.extract_strided_slice %237 {offsets = [0, 0], sizes = [2, 96], strides = [1, 1]} : vector<2x128xf32> to vector<2x96xf32>
    %242 = vector.extract_strided_slice %240 {offsets = [0, 0], sizes = [2, 96], strides = [1, 1]} : vector<2x128xf32> to vector<2x96xf32>
    %243 = arith.addf %241, %242 : vector<2x96xf32>
    %244 = arith.negf %243 : vector<2x96xf32>
    %245 = math.exp %244 : vector<2x96xf32>
    %cst_132 = arith.constant 1.000000e+00 : f32
    %246 = vector.broadcast %cst_132 : f32 to vector<2x96xf32>
    %247 = arith.addf %246, %245 : vector<2x96xf32>
    %248 = arith.divf %246, %247 : vector<2x96xf32>
    %249 = vector.extract_strided_slice %237 {offsets = [0, 96], sizes = [2, 32], strides = [1, 1]} : vector<2x128xf32> to vector<2x32xf32>
    %250 = vector.extract_strided_slice %240 {offsets = [0, 96], sizes = [2, 32], strides = [1, 1]} : vector<2x128xf32> to vector<2x32xf32>
    %251 = arith.addf %249, %250 : vector<2x32xf32>
    %252 = math.tanh %251 : vector<2x32xf32>
    %253 = vector.extract_strided_slice %248 {offsets = [0, 32], sizes = [2, 32], strides = [1, 1]} : vector<2x96xf32> to vector<2x32xf32>
    %c0_133 = arith.constant 0 : index
    %c0_134 = arith.constant 0 : index
    %254 = vector.load %arg14[%c0_133, %c0_134] : memref<2x32xf32, #tpu.memory_space<vmem>>, vector<2x32xf32>
    %255 = arith.mulf %253, %254 : vector<2x32xf32>
    %256 = vector.extract_strided_slice %248 {offsets = [0, 0], sizes = [2, 32], strides = [1, 1]} : vector<2x96xf32> to vector<2x32xf32>
    %257 = arith.mulf %256, %252 : vector<2x32xf32>
    %258 = arith.addf %255, %257 : vector<2x32xf32>
    %259 = vector.extract_strided_slice %248 {offsets = [0, 64], sizes = [2, 32], strides = [1, 1]} : vector<2x96xf32> to vector<2x32xf32>
    %260 = math.tanh %258 : vector<2x32xf32>
    %261 = arith.mulf %259, %260 : vector<2x32xf32>
    %c0_135 = arith.constant 0 : index
    %c0_136 = arith.constant 0 : index
    %262 = vector.load %arg14[%c0_135, %c0_136] : memref<2x32xf32, #tpu.memory_space<vmem>>, vector<2x32xf32>
    tpu.vector_store %arg14[%c0_135, %c0_136], %258 {strides = array<i32>} : memref<2x32xf32, #tpu.memory_space<vmem>>, vector<2x32xf32>,
    %c0_137 = arith.constant 0 : index
    %c0_138 = arith.constant 0 : index
    %263 = vector.load %arg13[%c0_137, %c0_138] : memref<2x32xf32, #tpu.memory_space<vmem>>, vector<2x32xf32>
    tpu.vector_store %arg13[%c0_137, %c0_138], %261 {strides = array<i32>} : memref<2x32xf32, #tpu.memory_space<vmem>>, vector<2x32xf32>,
    %c0_139 = arith.constant 0 : index
    %c0_140 = arith.constant 0 : index
    %264 = vector.load %arg16[%c0_139, %c0_140] : memref<2x32xf32, #tpu.memory_space<vmem>>, vector<2x32xf32>
    %265 = arith.addf %264, %261 : vector<2x32xf32>
    %c0_141 = arith.constant 0 : index
    %c0_142 = arith.constant 0 : index
    %266 = vector.load %arg16[%c0_141, %c0_142] : memref<2x32xf32, #tpu.memory_space<vmem>>, vector<2x32xf32>
    tpu.vector_store %arg16[%c0_141, %c0_142], %265 {strides = array<i32>} : memref<2x32xf32, #tpu.memory_space<vmem>>, vector<2x32xf32>,
    %267 = vector.extract_strided_slice %10 {offsets = [0, 4, 0], sizes = [2, 1, 128], strides = [1, 1, 1]} : vector<2x8x128xf32> to vector<2x1x128xf32>
    %268 = vector.shape_cast %267 : vector<2x1x128xf32> to vector<2x128xf32>
    %c0_143 = arith.constant 0 : index
    %c0_144 = arith.constant 0 : index
    %269 = vector.load %arg11[%c0_143, %c0_144] : memref<2x32xf32, #tpu.memory_space<vmem>>, vector<2x32xf32>
    %c0_145 = arith.constant 0 : index
    %c0_146 = arith.constant 0 : index
    %270 = vector.load %arg8[%c0_145, %c0_146] : memref<32x128xf32, #tpu.memory_space<vmem>>, vector<32x128xf32>
    %cst_147 = arith.constant dense<0.000000e+00> : vector<2x128xf32>
    %271 = tpu.matmul %269, %270, %cst_147 {dimension_numbers = #tpu.dot_dimension_numbers<[1], [0], [0], [1], [0, 0, 1, 1], [], []>} : vector<2x32xf32>, vector<32x128xf32>, vector<2x128xf32> -> vector<2x128xf32>
    %272 = vector.extract_strided_slice %268 {offsets = [0, 0], sizes = [2, 96], strides = [1, 1]} : vector<2x128xf32> to vector<2x96xf32>
    %273 = vector.extract_strided_slice %271 {offsets = [0, 0], sizes = [2, 96], strides = [1, 1]} : vector<2x128xf32> to vector<2x96xf32>
    %274 = arith.addf %272, %273 : vector<2x96xf32>
    %275 = arith.negf %274 : vector<2x96xf32>
    %276 = math.exp %275 : vector<2x96xf32>
    %cst_148 = arith.constant 1.000000e+00 : f32
    %277 = vector.broadcast %cst_148 : f32 to vector<2x96xf32>
    %278 = arith.addf %277, %276 : vector<2x96xf32>
    %279 = arith.divf %277, %278 : vector<2x96xf32>
    %280 = vector.extract_strided_slice %268 {offsets = [0, 96], sizes = [2, 32], strides = [1, 1]} : vector<2x128xf32> to vector<2x32xf32>
    %281 = vector.extract_strided_slice %271 {offsets = [0, 96], sizes = [2, 32], strides = [1, 1]} : vector<2x128xf32> to vector<2x32xf32>
    %282 = arith.addf %280, %281 : vector<2x32xf32>
    %283 = math.tanh %282 : vector<2x32xf32>
    %284 = vector.extract_strided_slice %279 {offsets = [0, 32], sizes = [2, 32], strides = [1, 1]} : vector<2x96xf32> to vector<2x32xf32>
    %c0_149 = arith.constant 0 : index
    %c0_150 = arith.constant 0 : index
    %285 = vector.load %arg12[%c0_149, %c0_150] : memref<2x32xf32, #tpu.memory_space<vmem>>, vector<2x32xf32>
    %286 = arith.mulf %284, %285 : vector<2x32xf32>
    %287 = vector.extract_strided_slice %279 {offsets = [0, 0], sizes = [2, 32], strides = [1, 1]} : vector<2x96xf32> to vector<2x32xf32>
    %288 = arith.mulf %287, %283 : vector<2x32xf32>
    %289 = arith.addf %286, %288 : vector<2x32xf32>
    %290 = vector.extract_strided_slice %279 {offsets = [0, 64], sizes = [2, 32], strides = [1, 1]} : vector<2x96xf32> to vector<2x32xf32>
    %291 = math.tanh %289 : vector<2x32xf32>
    %292 = arith.mulf %290, %291 : vector<2x32xf32>
    %c0_151 = arith.constant 0 : index
    %c0_152 = arith.constant 0 : index
    %293 = vector.load %arg12[%c0_151, %c0_152] : memref<2x32xf32, #tpu.memory_space<vmem>>, vector<2x32xf32>
    tpu.vector_store %arg12[%c0_151, %c0_152], %289 {strides = array<i32>} : memref<2x32xf32, #tpu.memory_space<vmem>>, vector<2x32xf32>,
    %c0_153 = arith.constant 0 : index
    %c0_154 = arith.constant 0 : index
    %294 = vector.load %arg11[%c0_153, %c0_154] : memref<2x32xf32, #tpu.memory_space<vmem>>, vector<2x32xf32>
    tpu.vector_store %arg11[%c0_153, %c0_154], %292 {strides = array<i32>} : memref<2x32xf32, #tpu.memory_space<vmem>>, vector<2x32xf32>,
    %c0_155 = arith.constant 0 : index
    %c0_156 = arith.constant 0 : index
    %295 = vector.load %arg15[%c0_155, %c0_156] : memref<2x32xf32, #tpu.memory_space<vmem>>, vector<2x32xf32>
    %296 = arith.addf %295, %292 : vector<2x32xf32>
    %c0_157 = arith.constant 0 : index
    %c0_158 = arith.constant 0 : index
    %297 = vector.load %arg15[%c0_157, %c0_158] : memref<2x32xf32, #tpu.memory_space<vmem>>, vector<2x32xf32>
    tpu.vector_store %arg15[%c0_157, %c0_158], %296 {strides = array<i32>} : memref<2x32xf32, #tpu.memory_space<vmem>>, vector<2x32xf32>,
    %298 = vector.extract_strided_slice %18 {offsets = [0, 3, 0], sizes = [2, 1, 128], strides = [1, 1, 1]} : vector<2x8x128xf32> to vector<2x1x128xf32>
    %299 = vector.shape_cast %298 : vector<2x1x128xf32> to vector<2x128xf32>
    %c0_159 = arith.constant 0 : index
    %c0_160 = arith.constant 0 : index
    %300 = vector.load %arg13[%c0_159, %c0_160] : memref<2x32xf32, #tpu.memory_space<vmem>>, vector<2x32xf32>
    %c0_161 = arith.constant 0 : index
    %c0_162 = arith.constant 0 : index
    %301 = vector.load %arg9[%c0_161, %c0_162] : memref<32x128xf32, #tpu.memory_space<vmem>>, vector<32x128xf32>
    %cst_163 = arith.constant dense<0.000000e+00> : vector<2x128xf32>
    %302 = tpu.matmul %300, %301, %cst_163 {dimension_numbers = #tpu.dot_dimension_numbers<[1], [0], [0], [1], [0, 0, 1, 1], [], []>} : vector<2x32xf32>, vector<32x128xf32>, vector<2x128xf32> -> vector<2x128xf32>
    %303 = vector.extract_strided_slice %299 {offsets = [0, 0], sizes = [2, 96], strides = [1, 1]} : vector<2x128xf32> to vector<2x96xf32>
    %304 = vector.extract_strided_slice %302 {offsets = [0, 0], sizes = [2, 96], strides = [1, 1]} : vector<2x128xf32> to vector<2x96xf32>
    %305 = arith.addf %303, %304 : vector<2x96xf32>
    %306 = arith.negf %305 : vector<2x96xf32>
    %307 = math.exp %306 : vector<2x96xf32>
    %cst_164 = arith.constant 1.000000e+00 : f32
    %308 = vector.broadcast %cst_164 : f32 to vector<2x96xf32>
    %309 = arith.addf %308, %307 : vector<2x96xf32>
    %310 = arith.divf %308, %309 : vector<2x96xf32>
    %311 = vector.extract_strided_slice %299 {offsets = [0, 96], sizes = [2, 32], strides = [1, 1]} : vector<2x128xf32> to vector<2x32xf32>
    %312 = vector.extract_strided_slice %302 {offsets = [0, 96], sizes = [2, 32], strides = [1, 1]} : vector<2x128xf32> to vector<2x32xf32>
    %313 = arith.addf %311, %312 : vector<2x32xf32>
    %314 = math.tanh %313 : vector<2x32xf32>
    %315 = vector.extract_strided_slice %310 {offsets = [0, 32], sizes = [2, 32], strides = [1, 1]} : vector<2x96xf32> to vector<2x32xf32>
    %c0_165 = arith.constant 0 : index
    %c0_166 = arith.constant 0 : index
    %316 = vector.load %arg14[%c0_165, %c0_166] : memref<2x32xf32, #tpu.memory_space<vmem>>, vector<2x32xf32>
    %317 = arith.mulf %315, %316 : vector<2x32xf32>
    %318 = vector.extract_strided_slice %310 {offsets = [0, 0], sizes = [2, 32], strides = [1, 1]} : vector<2x96xf32> to vector<2x32xf32>
    %319 = arith.mulf %318, %314 : vector<2x32xf32>
    %320 = arith.addf %317, %319 : vector<2x32xf32>
    %321 = vector.extract_strided_slice %310 {offsets = [0, 64], sizes = [2, 32], strides = [1, 1]} : vector<2x96xf32> to vector<2x32xf32>
    %322 = math.tanh %320 : vector<2x32xf32>
    %323 = arith.mulf %321, %322 : vector<2x32xf32>
    %c0_167 = arith.constant 0 : index
    %c0_168 = arith.constant 0 : index
    %324 = vector.load %arg14[%c0_167, %c0_168] : memref<2x32xf32, #tpu.memory_space<vmem>>, vector<2x32xf32>
    tpu.vector_store %arg14[%c0_167, %c0_168], %320 {strides = array<i32>} : memref<2x32xf32, #tpu.memory_space<vmem>>, vector<2x32xf32>,
    %c0_169 = arith.constant 0 : index
    %c0_170 = arith.constant 0 : index
    %325 = vector.load %arg13[%c0_169, %c0_170] : memref<2x32xf32, #tpu.memory_space<vmem>>, vector<2x32xf32>
    tpu.vector_store %arg13[%c0_169, %c0_170], %323 {strides = array<i32>} : memref<2x32xf32, #tpu.memory_space<vmem>>, vector<2x32xf32>,
    %c0_171 = arith.constant 0 : index
    %c0_172 = arith.constant 0 : index
    %326 = vector.load %arg16[%c0_171, %c0_172] : memref<2x32xf32, #tpu.memory_space<vmem>>, vector<2x32xf32>
    %327 = arith.addf %326, %323 : vector<2x32xf32>
    %c0_173 = arith.constant 0 : index
    %c0_174 = arith.constant 0 : index
    %328 = vector.load %arg16[%c0_173, %c0_174] : memref<2x32xf32, #tpu.memory_space<vmem>>, vector<2x32xf32>
    tpu.vector_store %arg16[%c0_173, %c0_174], %327 {strides = array<i32>} : memref<2x32xf32, #tpu.memory_space<vmem>>, vector<2x32xf32>,
    %329 = vector.extract_strided_slice %10 {offsets = [0, 5, 0], sizes = [2, 1, 128], strides = [1, 1, 1]} : vector<2x8x128xf32> to vector<2x1x128xf32>
    %330 = vector.shape_cast %329 : vector<2x1x128xf32> to vector<2x128xf32>
    %c0_175 = arith.constant 0 : index
    %c0_176 = arith.constant 0 : index
    %331 = vector.load %arg11[%c0_175, %c0_176] : memref<2x32xf32, #tpu.memory_space<vmem>>, vector<2x32xf32>
    %c0_177 = arith.constant 0 : index
    %c0_178 = arith.constant 0 : index
    %332 = vector.load %arg8[%c0_177, %c0_178] : memref<32x128xf32, #tpu.memory_space<vmem>>, vector<32x128xf32>
    %cst_179 = arith.constant dense<0.000000e+00> : vector<2x128xf32>
    %333 = tpu.matmul %331, %332, %cst_179 {dimension_numbers = #tpu.dot_dimension_numbers<[1], [0], [0], [1], [0, 0, 1, 1], [], []>} : vector<2x32xf32>, vector<32x128xf32>, vector<2x128xf32> -> vector<2x128xf32>
    %334 = vector.extract_strided_slice %330 {offsets = [0, 0], sizes = [2, 96], strides = [1, 1]} : vector<2x128xf32> to vector<2x96xf32>
    %335 = vector.extract_strided_slice %333 {offsets = [0, 0], sizes = [2, 96], strides = [1, 1]} : vector<2x128xf32> to vector<2x96xf32>
    %336 = arith.addf %334, %335 : vector<2x96xf32>
    %337 = arith.negf %336 : vector<2x96xf32>
    %338 = math.exp %337 : vector<2x96xf32>
    %cst_180 = arith.constant 1.000000e+00 : f32
    %339 = vector.broadcast %cst_180 : f32 to vector<2x96xf32>
    %340 = arith.addf %339, %338 : vector<2x96xf32>
    %341 = arith.divf %339, %340 : vector<2x96xf32>
    %342 = vector.extract_strided_slice %330 {offsets = [0, 96], sizes = [2, 32], strides = [1, 1]} : vector<2x128xf32> to vector<2x32xf32>
    %343 = vector.extract_strided_slice %333 {offsets = [0, 96], sizes = [2, 32], strides = [1, 1]} : vector<2x128xf32> to vector<2x32xf32>
    %344 = arith.addf %342, %343 : vector<2x32xf32>
    %345 = math.tanh %344 : vector<2x32xf32>
    %346 = vector.extract_strided_slice %341 {offsets = [0, 32], sizes = [2, 32], strides = [1, 1]} : vector<2x96xf32> to vector<2x32xf32>
    %c0_181 = arith.constant 0 : index
    %c0_182 = arith.constant 0 : index
    %347 = vector.load %arg12[%c0_181, %c0_182] : memref<2x32xf32, #tpu.memory_space<vmem>>, vector<2x32xf32>
    %348 = arith.mulf %346, %347 : vector<2x32xf32>
    %349 = vector.extract_strided_slice %341 {offsets = [0, 0], sizes = [2, 32], strides = [1, 1]} : vector<2x96xf32> to vector<2x32xf32>
    %350 = arith.mulf %349, %345 : vector<2x32xf32>
    %351 = arith.addf %348, %350 : vector<2x32xf32>
    %352 = vector.extract_strided_slice %341 {offsets = [0, 64], sizes = [2, 32], strides = [1, 1]} : vector<2x96xf32> to vector<2x32xf32>
    %353 = math.tanh %351 : vector<2x32xf32>
    %354 = arith.mulf %352, %353 : vector<2x32xf32>
    %c0_183 = arith.constant 0 : index
    %c0_184 = arith.constant 0 : index
    %355 = vector.load %arg12[%c0_183, %c0_184] : memref<2x32xf32, #tpu.memory_space<vmem>>, vector<2x32xf32>
    tpu.vector_store %arg12[%c0_183, %c0_184], %351 {strides = array<i32>} : memref<2x32xf32, #tpu.memory_space<vmem>>, vector<2x32xf32>,
    %c0_185 = arith.constant 0 : index
    %c0_186 = arith.constant 0 : index
    %356 = vector.load %arg11[%c0_185, %c0_186] : memref<2x32xf32, #tpu.memory_space<vmem>>, vector<2x32xf32>
    tpu.vector_store %arg11[%c0_185, %c0_186], %354 {strides = array<i32>} : memref<2x32xf32, #tpu.memory_space<vmem>>, vector<2x32xf32>,
    %c0_187 = arith.constant 0 : index
    %c0_188 = arith.constant 0 : index
    %357 = vector.load %arg15[%c0_187, %c0_188] : memref<2x32xf32, #tpu.memory_space<vmem>>, vector<2x32xf32>
    %358 = arith.addf %357, %354 : vector<2x32xf32>
    %c0_189 = arith.constant 0 : index
    %c0_190 = arith.constant 0 : index
    %359 = vector.load %arg15[%c0_189, %c0_190] : memref<2x32xf32, #tpu.memory_space<vmem>>, vector<2x32xf32>
    tpu.vector_store %arg15[%c0_189, %c0_190], %358 {strides = array<i32>} : memref<2x32xf32, #tpu.memory_space<vmem>>, vector<2x32xf32>,
    %360 = vector.extract_strided_slice %18 {offsets = [0, 2, 0], sizes = [2, 1, 128], strides = [1, 1, 1]} : vector<2x8x128xf32> to vector<2x1x128xf32>
    %361 = vector.shape_cast %360 : vector<2x1x128xf32> to vector<2x128xf32>
    %c0_191 = arith.constant 0 : index
    %c0_192 = arith.constant 0 : index
    %362 = vector.load %arg13[%c0_191, %c0_192] : memref<2x32xf32, #tpu.memory_space<vmem>>, vector<2x32xf32>
    %c0_193 = arith.constant 0 : index
    %c0_194 = arith.constant 0 : index
    %363 = vector.load %arg9[%c0_193, %c0_194] : memref<32x128xf32, #tpu.memory_space<vmem>>, vector<32x128xf32>
    %cst_195 = arith.constant dense<0.000000e+00> : vector<2x128xf32>
    %364 = tpu.matmul %362, %363, %cst_195 {dimension_numbers = #tpu.dot_dimension_numbers<[1], [0], [0], [1], [0, 0, 1, 1], [], []>} : vector<2x32xf32>, vector<32x128xf32>, vector<2x128xf32> -> vector<2x128xf32>
    %365 = vector.extract_strided_slice %361 {offsets = [0, 0], sizes = [2, 96], strides = [1, 1]} : vector<2x128xf32> to vector<2x96xf32>
    %366 = vector.extract_strided_slice %364 {offsets = [0, 0], sizes = [2, 96], strides = [1, 1]} : vector<2x128xf32> to vector<2x96xf32>
    %367 = arith.addf %365, %366 : vector<2x96xf32>
    %368 = arith.negf %367 : vector<2x96xf32>
    %369 = math.exp %368 : vector<2x96xf32>
    %cst_196 = arith.constant 1.000000e+00 : f32
    %370 = vector.broadcast %cst_196 : f32 to vector<2x96xf32>
    %371 = arith.addf %370, %369 : vector<2x96xf32>
    %372 = arith.divf %370, %371 : vector<2x96xf32>
    %373 = vector.extract_strided_slice %361 {offsets = [0, 96], sizes = [2, 32], strides = [1, 1]} : vector<2x128xf32> to vector<2x32xf32>
    %374 = vector.extract_strided_slice %364 {offsets = [0, 96], sizes = [2, 32], strides = [1, 1]} : vector<2x128xf32> to vector<2x32xf32>
    %375 = arith.addf %373, %374 : vector<2x32xf32>
    %376 = math.tanh %375 : vector<2x32xf32>
    %377 = vector.extract_strided_slice %372 {offsets = [0, 32], sizes = [2, 32], strides = [1, 1]} : vector<2x96xf32> to vector<2x32xf32>
    %c0_197 = arith.constant 0 : index
    %c0_198 = arith.constant 0 : index
    %378 = vector.load %arg14[%c0_197, %c0_198] : memref<2x32xf32, #tpu.memory_space<vmem>>, vector<2x32xf32>
    %379 = arith.mulf %377, %378 : vector<2x32xf32>
    %380 = vector.extract_strided_slice %372 {offsets = [0, 0], sizes = [2, 32], strides = [1, 1]} : vector<2x96xf32> to vector<2x32xf32>
    %381 = arith.mulf %380, %376 : vector<2x32xf32>
    %382 = arith.addf %379, %381 : vector<2x32xf32>
    %383 = vector.extract_strided_slice %372 {offsets = [0, 64], sizes = [2, 32], strides = [1, 1]} : vector<2x96xf32> to vector<2x32xf32>
    %384 = math.tanh %382 : vector<2x32xf32>
    %385 = arith.mulf %383, %384 : vector<2x32xf32>
    %c0_199 = arith.constant 0 : index
    %c0_200 = arith.constant 0 : index
    %386 = vector.load %arg14[%c0_199, %c0_200] : memref<2x32xf32, #tpu.memory_space<vmem>>, vector<2x32xf32>
    tpu.vector_store %arg14[%c0_199, %c0_200], %382 {strides = array<i32>} : memref<2x32xf32, #tpu.memory_space<vmem>>, vector<2x32xf32>,
    %c0_201 = arith.constant 0 : index
    %c0_202 = arith.constant 0 : index
    %387 = vector.load %arg13[%c0_201, %c0_202] : memref<2x32xf32, #tpu.memory_space<vmem>>, vector<2x32xf32>
    tpu.vector_store %arg13[%c0_201, %c0_202], %385 {strides = array<i32>} : memref<2x32xf32, #tpu.memory_space<vmem>>, vector<2x32xf32>,
    %c0_203 = arith.constant 0 : index
    %c0_204 = arith.constant 0 : index
    %388 = vector.load %arg16[%c0_203, %c0_204] : memref<2x32xf32, #tpu.memory_space<vmem>>, vector<2x32xf32>
    %389 = arith.addf %388, %385 : vector<2x32xf32>
    %c0_205 = arith.constant 0 : index
    %c0_206 = arith.constant 0 : index
    %390 = vector.load %arg16[%c0_205, %c0_206] : memref<2x32xf32, #tpu.memory_space<vmem>>, vector<2x32xf32>
    tpu.vector_store %arg16[%c0_205, %c0_206], %389 {strides = array<i32>} : memref<2x32xf32, #tpu.memory_space<vmem>>, vector<2x32xf32>,
    %391 = vector.extract_strided_slice %10 {offsets = [0, 6, 0], sizes = [2, 1, 128], strides = [1, 1, 1]} : vector<2x8x128xf32> to vector<2x1x128xf32>
    %392 = vector.shape_cast %391 : vector<2x1x128xf32> to vector<2x128xf32>
    %c0_207 = arith.constant 0 : index
    %c0_208 = arith.constant 0 : index
    %393 = vector.load %arg11[%c0_207, %c0_208] : memref<2x32xf32, #tpu.memory_space<vmem>>, vector<2x32xf32>
    %c0_209 = arith.constant 0 : index
    %c0_210 = arith.constant 0 : index
    %394 = vector.load %arg8[%c0_209, %c0_210] : memref<32x128xf32, #tpu.memory_space<vmem>>, vector<32x128xf32>
    %cst_211 = arith.constant dense<0.000000e+00> : vector<2x128xf32>
    %395 = tpu.matmul %393, %394, %cst_211 {dimension_numbers = #tpu.dot_dimension_numbers<[1], [0], [0], [1], [0, 0, 1, 1], [], []>} : vector<2x32xf32>, vector<32x128xf32>, vector<2x128xf32> -> vector<2x128xf32>
    %396 = vector.extract_strided_slice %392 {offsets = [0, 0], sizes = [2, 96], strides = [1, 1]} : vector<2x128xf32> to vector<2x96xf32>
    %397 = vector.extract_strided_slice %395 {offsets = [0, 0], sizes = [2, 96], strides = [1, 1]} : vector<2x128xf32> to vector<2x96xf32>
    %398 = arith.addf %396, %397 : vector<2x96xf32>
    %399 = arith.negf %398 : vector<2x96xf32>
    %400 = math.exp %399 : vector<2x96xf32>
    %cst_212 = arith.constant 1.000000e+00 : f32
    %401 = vector.broadcast %cst_212 : f32 to vector<2x96xf32>
    %402 = arith.addf %401, %400 : vector<2x96xf32>
    %403 = arith.divf %401, %402 : vector<2x96xf32>
    %404 = vector.extract_strided_slice %392 {offsets = [0, 96], sizes = [2, 32], strides = [1, 1]} : vector<2x128xf32> to vector<2x32xf32>
    %405 = vector.extract_strided_slice %395 {offsets = [0, 96], sizes = [2, 32], strides = [1, 1]} : vector<2x128xf32> to vector<2x32xf32>
    %406 = arith.addf %404, %405 : vector<2x32xf32>
    %407 = math.tanh %406 : vector<2x32xf32>
    %408 = vector.extract_strided_slice %403 {offsets = [0, 32], sizes = [2, 32], strides = [1, 1]} : vector<2x96xf32> to vector<2x32xf32>
    %c0_213 = arith.constant 0 : index
    %c0_214 = arith.constant 0 : index
    %409 = vector.load %arg12[%c0_213, %c0_214] : memref<2x32xf32, #tpu.memory_space<vmem>>, vector<2x32xf32>
    %410 = arith.mulf %408, %409 : vector<2x32xf32>
    %411 = vector.extract_strided_slice %403 {offsets = [0, 0], sizes = [2, 32], strides = [1, 1]} : vector<2x96xf32> to vector<2x32xf32>
    %412 = arith.mulf %411, %407 : vector<2x32xf32>
    %413 = arith.addf %410, %412 : vector<2x32xf32>
    %414 = vector.extract_strided_slice %403 {offsets = [0, 64], sizes = [2, 32], strides = [1, 1]} : vector<2x96xf32> to vector<2x32xf32>
    %415 = math.tanh %413 : vector<2x32xf32>
    %416 = arith.mulf %414, %415 : vector<2x32xf32>
    %c0_215 = arith.constant 0 : index
    %c0_216 = arith.constant 0 : index
    %417 = vector.load %arg12[%c0_215, %c0_216] : memref<2x32xf32, #tpu.memory_space<vmem>>, vector<2x32xf32>
    tpu.vector_store %arg12[%c0_215, %c0_216], %413 {strides = array<i32>} : memref<2x32xf32, #tpu.memory_space<vmem>>, vector<2x32xf32>,
    %c0_217 = arith.constant 0 : index
    %c0_218 = arith.constant 0 : index
    %418 = vector.load %arg11[%c0_217, %c0_218] : memref<2x32xf32, #tpu.memory_space<vmem>>, vector<2x32xf32>
    tpu.vector_store %arg11[%c0_217, %c0_218], %416 {strides = array<i32>} : memref<2x32xf32, #tpu.memory_space<vmem>>, vector<2x32xf32>,
    %c0_219 = arith.constant 0 : index
    %c0_220 = arith.constant 0 : index
    %419 = vector.load %arg15[%c0_219, %c0_220] : memref<2x32xf32, #tpu.memory_space<vmem>>, vector<2x32xf32>
    %420 = arith.addf %419, %416 : vector<2x32xf32>
    %c0_221 = arith.constant 0 : index
    %c0_222 = arith.constant 0 : index
    %421 = vector.load %arg15[%c0_221, %c0_222] : memref<2x32xf32, #tpu.memory_space<vmem>>, vector<2x32xf32>
    tpu.vector_store %arg15[%c0_221, %c0_222], %420 {strides = array<i32>} : memref<2x32xf32, #tpu.memory_space<vmem>>, vector<2x32xf32>,
    %422 = vector.extract_strided_slice %18 {offsets = [0, 1, 0], sizes = [2, 1, 128], strides = [1, 1, 1]} : vector<2x8x128xf32> to vector<2x1x128xf32>
    %423 = vector.shape_cast %422 : vector<2x1x128xf32> to vector<2x128xf32>
    %c0_223 = arith.constant 0 : index
    %c0_224 = arith.constant 0 : index
    %424 = vector.load %arg13[%c0_223, %c0_224] : memref<2x32xf32, #tpu.memory_space<vmem>>, vector<2x32xf32>
    %c0_225 = arith.constant 0 : index
    %c0_226 = arith.constant 0 : index
    %425 = vector.load %arg9[%c0_225, %c0_226] : memref<32x128xf32, #tpu.memory_space<vmem>>, vector<32x128xf32>
    %cst_227 = arith.constant dense<0.000000e+00> : vector<2x128xf32>
    %426 = tpu.matmul %424, %425, %cst_227 {dimension_numbers = #tpu.dot_dimension_numbers<[1], [0], [0], [1], [0, 0, 1, 1], [], []>} : vector<2x32xf32>, vector<32x128xf32>, vector<2x128xf32> -> vector<2x128xf32>
    %427 = vector.extract_strided_slice %423 {offsets = [0, 0], sizes = [2, 96], strides = [1, 1]} : vector<2x128xf32> to vector<2x96xf32>
    %428 = vector.extract_strided_slice %426 {offsets = [0, 0], sizes = [2, 96], strides = [1, 1]} : vector<2x128xf32> to vector<2x96xf32>
    %429 = arith.addf %427, %428 : vector<2x96xf32>
    %430 = arith.negf %429 : vector<2x96xf32>
    %431 = math.exp %430 : vector<2x96xf32>
    %cst_228 = arith.constant 1.000000e+00 : f32
    %432 = vector.broadcast %cst_228 : f32 to vector<2x96xf32>
    %433 = arith.addf %432, %431 : vector<2x96xf32>
    %434 = arith.divf %432, %433 : vector<2x96xf32>
    %435 = vector.extract_strided_slice %423 {offsets = [0, 96], sizes = [2, 32], strides = [1, 1]} : vector<2x128xf32> to vector<2x32xf32>
    %436 = vector.extract_strided_slice %426 {offsets = [0, 96], sizes = [2, 32], strides = [1, 1]} : vector<2x128xf32> to vector<2x32xf32>
    %437 = arith.addf %435, %436 : vector<2x32xf32>
    %438 = math.tanh %437 : vector<2x32xf32>
    %439 = vector.extract_strided_slice %434 {offsets = [0, 32], sizes = [2, 32], strides = [1, 1]} : vector<2x96xf32> to vector<2x32xf32>
    %c0_229 = arith.constant 0 : index
    %c0_230 = arith.constant 0 : index
    %440 = vector.load %arg14[%c0_229, %c0_230] : memref<2x32xf32, #tpu.memory_space<vmem>>, vector<2x32xf32>
    %441 = arith.mulf %439, %440 : vector<2x32xf32>
    %442 = vector.extract_strided_slice %434 {offsets = [0, 0], sizes = [2, 32], strides = [1, 1]} : vector<2x96xf32> to vector<2x32xf32>
    %443 = arith.mulf %442, %438 : vector<2x32xf32>
    %444 = arith.addf %441, %443 : vector<2x32xf32>
    %445 = vector.extract_strided_slice %434 {offsets = [0, 64], sizes = [2, 32], strides = [1, 1]} : vector<2x96xf32> to vector<2x32xf32>
    %446 = math.tanh %444 : vector<2x32xf32>
    %447 = arith.mulf %445, %446 : vector<2x32xf32>
    %c0_231 = arith.constant 0 : index
    %c0_232 = arith.constant 0 : index
    %448 = vector.load %arg14[%c0_231, %c0_232] : memref<2x32xf32, #tpu.memory_space<vmem>>, vector<2x32xf32>
    tpu.vector_store %arg14[%c0_231, %c0_232], %444 {strides = array<i32>} : memref<2x32xf32, #tpu.memory_space<vmem>>, vector<2x32xf32>,
    %c0_233 = arith.constant 0 : index
    %c0_234 = arith.constant 0 : index
    %449 = vector.load %arg13[%c0_233, %c0_234] : memref<2x32xf32, #tpu.memory_space<vmem>>, vector<2x32xf32>
    tpu.vector_store %arg13[%c0_233, %c0_234], %447 {strides = array<i32>} : memref<2x32xf32, #tpu.memory_space<vmem>>, vector<2x32xf32>,
    %c0_235 = arith.constant 0 : index
    %c0_236 = arith.constant 0 : index
    %450 = vector.load %arg16[%c0_235, %c0_236] : memref<2x32xf32, #tpu.memory_space<vmem>>, vector<2x32xf32>
    %451 = arith.addf %450, %447 : vector<2x32xf32>
    %c0_237 = arith.constant 0 : index
    %c0_238 = arith.constant 0 : index
    %452 = vector.load %arg16[%c0_237, %c0_238] : memref<2x32xf32, #tpu.memory_space<vmem>>, vector<2x32xf32>
    tpu.vector_store %arg16[%c0_237, %c0_238], %451 {strides = array<i32>} : memref<2x32xf32, #tpu.memory_space<vmem>>, vector<2x32xf32>,
    %453 = vector.extract_strided_slice %10 {offsets = [0, 7, 0], sizes = [2, 1, 128], strides = [1, 1, 1]} : vector<2x8x128xf32> to vector<2x1x128xf32>
    %454 = vector.shape_cast %453 : vector<2x1x128xf32> to vector<2x128xf32>
    %c0_239 = arith.constant 0 : index
    %c0_240 = arith.constant 0 : index
    %455 = vector.load %arg11[%c0_239, %c0_240] : memref<2x32xf32, #tpu.memory_space<vmem>>, vector<2x32xf32>
    %c0_241 = arith.constant 0 : index
    %c0_242 = arith.constant 0 : index
    %456 = vector.load %arg8[%c0_241, %c0_242] : memref<32x128xf32, #tpu.memory_space<vmem>>, vector<32x128xf32>
    %cst_243 = arith.constant dense<0.000000e+00> : vector<2x128xf32>
    %457 = tpu.matmul %455, %456, %cst_243 {dimension_numbers = #tpu.dot_dimension_numbers<[1], [0], [0], [1], [0, 0, 1, 1], [], []>} : vector<2x32xf32>, vector<32x128xf32>, vector<2x128xf32> -> vector<2x128xf32>
    %458 = vector.extract_strided_slice %454 {offsets = [0, 0], sizes = [2, 96], strides = [1, 1]} : vector<2x128xf32> to vector<2x96xf32>
    %459 = vector.extract_strided_slice %457 {offsets = [0, 0], sizes = [2, 96], strides = [1, 1]} : vector<2x128xf32> to vector<2x96xf32>
    %460 = arith.addf %458, %459 : vector<2x96xf32>
    %461 = arith.negf %460 : vector<2x96xf32>
    %462 = math.exp %461 : vector<2x96xf32>
    %cst_244 = arith.constant 1.000000e+00 : f32
    %463 = vector.broadcast %cst_244 : f32 to vector<2x96xf32>
    %464 = arith.addf %463, %462 : vector<2x96xf32>
    %465 = arith.divf %463, %464 : vector<2x96xf32>
    %466 = vector.extract_strided_slice %454 {offsets = [0, 96], sizes = [2, 32], strides = [1, 1]} : vector<2x128xf32> to vector<2x32xf32>
    %467 = vector.extract_strided_slice %457 {offsets = [0, 96], sizes = [2, 32], strides = [1, 1]} : vector<2x128xf32> to vector<2x32xf32>
    %468 = arith.addf %466, %467 : vector<2x32xf32>
    %469 = math.tanh %468 : vector<2x32xf32>
    %470 = vector.extract_strided_slice %465 {offsets = [0, 32], sizes = [2, 32], strides = [1, 1]} : vector<2x96xf32> to vector<2x32xf32>
    %c0_245 = arith.constant 0 : index
    %c0_246 = arith.constant 0 : index
    %471 = vector.load %arg12[%c0_245, %c0_246] : memref<2x32xf32, #tpu.memory_space<vmem>>, vector<2x32xf32>
    %472 = arith.mulf %470, %471 : vector<2x32xf32>
    %473 = vector.extract_strided_slice %465 {offsets = [0, 0], sizes = [2, 32], strides = [1, 1]} : vector<2x96xf32> to vector<2x32xf32>
    %474 = arith.mulf %473, %469 : vector<2x32xf32>
    %475 = arith.addf %472, %474 : vector<2x32xf32>
    %476 = vector.extract_strided_slice %465 {offsets = [0, 64], sizes = [2, 32], strides = [1, 1]} : vector<2x96xf32> to vector<2x32xf32>
    %477 = math.tanh %475 : vector<2x32xf32>
    %478 = arith.mulf %476, %477 : vector<2x32xf32>
    %c0_247 = arith.constant 0 : index
    %c0_248 = arith.constant 0 : index
    %479 = vector.load %arg12[%c0_247, %c0_248] : memref<2x32xf32, #tpu.memory_space<vmem>>, vector<2x32xf32>
    tpu.vector_store %arg12[%c0_247, %c0_248], %475 {strides = array<i32>} : memref<2x32xf32, #tpu.memory_space<vmem>>, vector<2x32xf32>,
    %c0_249 = arith.constant 0 : index
    %c0_250 = arith.constant 0 : index
    %480 = vector.load %arg11[%c0_249, %c0_250] : memref<2x32xf32, #tpu.memory_space<vmem>>, vector<2x32xf32>
    tpu.vector_store %arg11[%c0_249, %c0_250], %478 {strides = array<i32>} : memref<2x32xf32, #tpu.memory_space<vmem>>, vector<2x32xf32>,
    %c0_251 = arith.constant 0 : index
    %c0_252 = arith.constant 0 : index
    %481 = vector.load %arg15[%c0_251, %c0_252] : memref<2x32xf32, #tpu.memory_space<vmem>>, vector<2x32xf32>
    %482 = arith.addf %481, %478 : vector<2x32xf32>
    %c0_253 = arith.constant 0 : index
    %c0_254 = arith.constant 0 : index
    %483 = vector.load %arg15[%c0_253, %c0_254] : memref<2x32xf32, #tpu.memory_space<vmem>>, vector<2x32xf32>
    tpu.vector_store %arg15[%c0_253, %c0_254], %482 {strides = array<i32>} : memref<2x32xf32, #tpu.memory_space<vmem>>, vector<2x32xf32>,
    %484 = vector.extract_strided_slice %18 {offsets = [0, 0, 0], sizes = [2, 1, 128], strides = [1, 1, 1]} : vector<2x8x128xf32> to vector<2x1x128xf32>
    %485 = vector.shape_cast %484 : vector<2x1x128xf32> to vector<2x128xf32>
    %c0_255 = arith.constant 0 : index
    %c0_256 = arith.constant 0 : index
    %486 = vector.load %arg13[%c0_255, %c0_256] : memref<2x32xf32, #tpu.memory_space<vmem>>, vector<2x32xf32>
    %c0_257 = arith.constant 0 : index
    %c0_258 = arith.constant 0 : index
    %487 = vector.load %arg9[%c0_257, %c0_258] : memref<32x128xf32, #tpu.memory_space<vmem>>, vector<32x128xf32>
    %cst_259 = arith.constant dense<0.000000e+00> : vector<2x128xf32>
    %488 = tpu.matmul %486, %487, %cst_259 {dimension_numbers = #tpu.dot_dimension_numbers<[1], [0], [0], [1], [0, 0, 1, 1], [], []>} : vector<2x32xf32>, vector<32x128xf32>, vector<2x128xf32> -> vector<2x128xf32>
    %489 = vector.extract_strided_slice %485 {offsets = [0, 0], sizes = [2, 96], strides = [1, 1]} : vector<2x128xf32> to vector<2x96xf32>
    %490 = vector.extract_strided_slice %488 {offsets = [0, 0], sizes = [2, 96], strides = [1, 1]} : vector<2x128xf32> to vector<2x96xf32>
    %491 = arith.addf %489, %490 : vector<2x96xf32>
    %492 = arith.negf %491 : vector<2x96xf32>
    %493 = math.exp %492 : vector<2x96xf32>
    %cst_260 = arith.constant 1.000000e+00 : f32
    %494 = vector.broadcast %cst_260 : f32 to vector<2x96xf32>
    %495 = arith.addf %494, %493 : vector<2x96xf32>
    %496 = arith.divf %494, %495 : vector<2x96xf32>
    %497 = vector.extract_strided_slice %485 {offsets = [0, 96], sizes = [2, 32], strides = [1, 1]} : vector<2x128xf32> to vector<2x32xf32>
    %498 = vector.extract_strided_slice %488 {offsets = [0, 96], sizes = [2, 32], strides = [1, 1]} : vector<2x128xf32> to vector<2x32xf32>
    %499 = arith.addf %497, %498 : vector<2x32xf32>
    %500 = math.tanh %499 : vector<2x32xf32>
    %501 = vector.extract_strided_slice %496 {offsets = [0, 32], sizes = [2, 32], strides = [1, 1]} : vector<2x96xf32> to vector<2x32xf32>
    %c0_261 = arith.constant 0 : index
    %c0_262 = arith.constant 0 : index
    %502 = vector.load %arg14[%c0_261, %c0_262] : memref<2x32xf32, #tpu.memory_space<vmem>>, vector<2x32xf32>
    %503 = arith.mulf %501, %502 : vector<2x32xf32>
    %504 = vector.extract_strided_slice %496 {offsets = [0, 0], sizes = [2, 32], strides = [1, 1]} : vector<2x96xf32> to vector<2x32xf32>
    %505 = arith.mulf %504, %500 : vector<2x32xf32>
    %506 = arith.addf %503, %505 : vector<2x32xf32>
    %507 = vector.extract_strided_slice %496 {offsets = [0, 64], sizes = [2, 32], strides = [1, 1]} : vector<2x96xf32> to vector<2x32xf32>
    %508 = math.tanh %506 : vector<2x32xf32>
    %509 = arith.mulf %507, %508 : vector<2x32xf32>
    %c0_263 = arith.constant 0 : index
    %c0_264 = arith.constant 0 : index
    %510 = vector.load %arg14[%c0_263, %c0_264] : memref<2x32xf32, #tpu.memory_space<vmem>>, vector<2x32xf32>
    tpu.vector_store %arg14[%c0_263, %c0_264], %506 {strides = array<i32>} : memref<2x32xf32, #tpu.memory_space<vmem>>, vector<2x32xf32>,
    %c0_265 = arith.constant 0 : index
    %c0_266 = arith.constant 0 : index
    %511 = vector.load %arg13[%c0_265, %c0_266] : memref<2x32xf32, #tpu.memory_space<vmem>>, vector<2x32xf32>
    tpu.vector_store %arg13[%c0_265, %c0_266], %509 {strides = array<i32>} : memref<2x32xf32, #tpu.memory_space<vmem>>, vector<2x32xf32>,
    %c0_267 = arith.constant 0 : index
    %c0_268 = arith.constant 0 : index
    %512 = vector.load %arg16[%c0_267, %c0_268] : memref<2x32xf32, #tpu.memory_space<vmem>>, vector<2x32xf32>
    %513 = arith.addf %512, %509 : vector<2x32xf32>
    %c0_269 = arith.constant 0 : index
    %c0_270 = arith.constant 0 : index
    %514 = vector.load %arg16[%c0_269, %c0_270] : memref<2x32xf32, #tpu.memory_space<vmem>>, vector<2x32xf32>
    tpu.vector_store %arg16[%c0_269, %c0_270], %513 {strides = array<i32>} : memref<2x32xf32, #tpu.memory_space<vmem>>, vector<2x32xf32>,
    %c1_i32 = arith.constant 1 : i32
    %515 = arith.cmpi eq, %arg1, %c1_i32 : i32
    %516 = arith.extui %515 : i1 to i32
    %c0_i32_271 = arith.constant 0 : i32
    %517 = arith.cmpi ne, %516, %c0_i32_271 : i32
    scf.if %517 {
      %c0_272 = arith.constant 0 : index
      %c0_273 = arith.constant 0 : index
      %518 = vector.load %arg15[%c0_272, %c0_273] : memref<2x32xf32, #tpu.memory_space<vmem>>, vector<2x32xf32>
      %c0_274 = arith.constant 0 : index
      %c0_275 = arith.constant 0 : index
      %519 = vector.load %arg16[%c0_274, %c0_275] : memref<2x32xf32, #tpu.memory_space<vmem>>, vector<2x32xf32>
      %520 = tpu.concatenate %518, %519 in 1 : vector<2x32xf32>, vector<2x32xf32> -> vector<2x64xf32>
      %cst_276 = arith.constant 6.250000e-02 : f32
      %521 = vector.broadcast %cst_276 : f32 to vector<2x64xf32>
      %522 = arith.mulf %520, %521 : vector<2x64xf32>
      %c0_277 = arith.constant 0 : index
      %c0_278 = arith.constant 0 : index
      %523 = vector.load %arg10[%c0_277, %c0_278] : memref<2x64xf32, #tpu.memory_space<vmem>>, vector<2x64xf32>
      tpu.vector_store %arg10[%c0_277, %c0_278], %522 {strides = array<i32>} : memref<2x64xf32, #tpu.memory_space<vmem>>, vector<2x64xf32>,
    } else {
    }
    return
  }
  func.func @transform_0(%arg0: i32, %arg1: i32) -> (i32, i32, i32) {
    %c0_i32 = arith.constant 0 : i32
    %c0_i32_0 = arith.constant 0 : i32
    return %arg0, %arg1, %c0_i32 : i32, i32, i32
  }
  func.func @transform_1(%arg0: i32, %arg1: i32) -> (i32, i32, i32) {
    %c1_i32 = arith.constant 1 : i32
    %0 = arith.subi %c1_i32, %arg1 : i32
    %c0_i32 = arith.constant 0 : i32
    %c0_i32_0 = arith.constant 0 : i32
    return %arg0, %0, %c0_i32 : i32, i32, i32
  }
  func.func @transform_2(%arg0: i32, %arg1: i32) -> (i32, i32) {
    %c0_i32 = arith.constant 0 : i32
    %c0_i32_0 = arith.constant 0 : i32
    %c0_i32_1 = arith.constant 0 : i32
    return %c0_i32, %c0_i32_0 : i32, i32
  }
  func.func @transform_3(%arg0: i32, %arg1: i32) -> (i32, i32) {
    %c0_i32 = arith.constant 0 : i32
    %c0_i32_0 = arith.constant 0 : i32
    %c0_i32_1 = arith.constant 0 : i32
    return %c0_i32, %c0_i32_0 : i32, i32
  }
  func.func @transform_4(%arg0: i32, %arg1: i32) -> (i32, i32) {
    %c0_i32 = arith.constant 0 : i32
    %c0_i32_0 = arith.constant 0 : i32
    %c0_i32_1 = arith.constant 0 : i32
    return %c0_i32, %c0_i32_0 : i32, i32
  }
  func.func @transform_5(%arg0: i32, %arg1: i32) -> (i32, i32) {
    %c0_i32 = arith.constant 0 : i32
    %c0_i32_0 = arith.constant 0 : i32
    %c0_i32_1 = arith.constant 0 : i32
    return %c0_i32, %c0_i32_0 : i32, i32
  }
  func.func @transform_6(%arg0: i32, %arg1: i32) -> (i32, i32) {
    %c0_i32 = arith.constant 0 : i32
    %c0_i32_0 = arith.constant 0 : i32
    %c0_i32_1 = arith.constant 0 : i32
    return %c0_i32, %c0_i32_0 : i32, i32
  }
  func.func @transform_7(%arg0: i32, %arg1: i32) -> (i32, i32) {
    %c0_i32 = arith.constant 0 : i32
    %c0_i32_0 = arith.constant 0 : i32
    %c0_i32_1 = arith.constant 0 : i32
    return %c0_i32, %c0_i32_0 : i32, i32
  }
  func.func @transform_8(%arg0: i32, %arg1: i32) -> (i32, i32) {
    %c0_i32 = arith.constant 0 : i32
    %c0_i32_0 = arith.constant 0 : i32
    return %arg0, %c0_i32 : i32, i32
  }
}

</mosaic_0001>

<bundles_post_ra>
// kernel: tpu_custom_call.1
= control target key start
LH: loop header
LB: loop body
LE: loop exit
PB: predicated region body
PF: predicated region fallthrough
CT: control target
= control target key end

     0   :  { %s4581_s0 = inlined_call_operand.hbm [shape: f32[2,16,16], index: 0, kind: input, shape index: {}]   ;;  %s4582_s1 = inlined_call_operand.hbm [shape: f32[2,16,16], index: 1, kind: input, shape index: {}]   ;;  %s4583_s2 = inlined_call_operand.hbm [shape: f32[16,128], index: 2, kind: input, shape index: {}]   ;;  %s4584_s3 = inlined_call_operand.hbm [shape: f32[16,128], index: 3, kind: input, shape index: {}]   ;;  %s4585_s4 = inlined_call_operand.vmem [shape: f32[1,128], index: 4, kind: input, shape index: {}]   ;;  %s4586_s5 = inlined_call_operand.vmem [shape: f32[1,128], index: 5, kind: input, shape index: {}]   ;;  %s4587_s6 = inlined_call_operand.hbm [shape: f32[32,128], index: 6, kind: input, shape index: {}]   ;;  %s4588_s7 = inlined_call_operand.hbm [shape: f32[32,128], index: 7, kind: input, shape index: {}]   ;;  %s4589_s8 = inlined_call_operand.hbm [shape: f32[2,64], index: 8, kind: output, shape index: {}]  }
   0x1   :  { %4604 = sst [smem:[#allocation28_spill]] %s4581_s0 }
   0x2   :  { %4605 = sst [smem:[#allocation29_spill]] %s4583_s2 }
   0x3   :  { %4606 = sst [smem:[#allocation30_spill]] %s4584_s3 }
   0x4   :  { %4607 = sst [smem:[#allocation31_spill]] %s4586_s5 }
   0x5   :  { %4608 = sst [smem:[#allocation32_spill]] %s4587_s6 }
   0x6   :  { %4609 = sst [smem:[#allocation33_spill]] %s4588_s7 }
   0x7   :  { %4610 = sst [smem:[#allocation34_spill]] %s4589_s8 }
   0x8   :  { %13 = vsyncpa [#allocation9], 0 }
   0x9   :  { %15 = vsyncpa [#allocation9 + $0x1], 0 }
   0xa   :  { %16 = vsyncpa [#allocation12], 0 }
   0xb   :  { %18 = vsyncpa [#allocation12 + $0x1], 0 }
   0xc   :  { %19 = vsyncpa [#allocation15], 0 }
   0xd   :  { %20 = vsyncpa [#allocation18], 0 }
   0xe   :  { %21 = vsyncpa [#allocation10], 0  ;;  %s3837_s27 = smov 0   ;;  %s3839_s28 = smov 0  }
   0xf   :  { %s3841_s29 = smov 0   ;;  %s3843_s30 = smov 0  }
  0x10   :  { %s3845_s9 = smov 0   ;;  %s3847_s10 = smov 0  }
  0x11   :  { %s3849_s11 = smov 0   ;;  %s3851_s12 = smov 0  }
  0x12   :  { %s3853_s13 = smov 0  }
  0x13 LB: > { %4611 = sst [smem:[#allocation26_spill]] %s3765_s10  ;;  %s3879_s14 = sadd.s32 4294967295, %s3777_s13   ;;  %s3777_s13 = sphi %s3853_s13, %s27_s13   ;;  %s3773_s12 = sphi %s3851_s12, %s4675_s12   ;;  %s3769_s11 = sphi %s3849_s11, %s4674_s11   ;;  %s3765_s10 = sphi %s3847_s10, %s4668_s10   ;;  %s3761_s9 = sphi %s3845_s9, %s4673_s9   ;;  %s3757_s30 = sphi %s3843_s30, %s4672_s30   ;;  %s3753_s29 = sphi %s3841_s29, %s4671_s29   ;;  %s3749_s28 = sphi %s3839_s28, %s4670_s28   ;;  %s3745_s27 = sphi %s3837_s27, %s4669_s27  }
  0x14   : > { %p61_p0 = scmp.ne.s32.totalorder %s3761_s9, %s3757_s30  ;;  %p62_p1 = scmp.eq.s32.totalorder %s3879_s14, 0 }
  0x15   : > { %p91_p2 = scmp.ne.s32.totalorder %s3749_s28, %s3745_s27  ;;  %p3002_p3 = scmp.ge.s32.totalorder %s3777_s13, 1 }
  0x16   : > { %p254_p4 = scmp.lt.s32.totalorder %s3777_s13, 3  ;;  %p3888_p5 = por %p62_p1, %p61_p0 }
  0x17   : > { %p3894_p6 = por %p91_p2, %p62_p1  ;;  %s4615_s2 = sld [smem:[#allocation29_spill]] }
  0x18   : > { %p3898_p7 = pnand %p3002_p3, %p254_p4  ;;  %s3779_s21 = smov [#allocation13]  }
  0x19   : > { %s267_s22 = sshll.u32 %s3779_s21, 4  ;;  %s4617_s3 = sld [smem:[#allocation30_spill]]  ;;  %s268_s22 = int_to_ptr.vmem [resolvable:$true] %s267_s22 }
  0x1a   : > { %p3101_p8 = pneg %p3898_p7  ;;  %s4590_s27 = smov 128  }
  0x1b   : > { %s4592_s30 = smov 8   ;;  %s3782_s18 = smov [#allocation14]  }
  0x1c   : > { %p3909_p9 = pnand %p3101_p8, %p62_p1  ;;  %s281_s19 = sshll.u32 %s3782_s18, 4  ;;  %s282_s19 = int_to_ptr.vmem [resolvable:$true] %s281_s19 }
  0x1d   : > { %s265_s20 = sshll.u32 %s4615_s2, 4  ;;  %s4618_s6 = sld [smem:[#allocation32_spill]]  ;;  %s266_s20 = int_to_ptr.hbm [resolvable:$true] %s265_s20 }
  0x1e   : > { %3104 = dma.hbm_to_vmem [thread:$0]  (!%p3909_p9), %s266_s20, 256, %s268_s22, [#allocation12], %s4590_s27, %s4590_s27, %s4592_s30  }
  0x1f   : > { %s279_s26 = sshll.u32 %s4617_s3, 4  ;;  %s4619_s7 = sld [smem:[#allocation33_spill]]  ;;  %s280_s26 = int_to_ptr.hbm [resolvable:$true] %s279_s26 }
  0x20   : > { %3107 = dma.hbm_to_vmem [thread:$0]  (!%p3909_p9), %s280_s26, 256, %s282_s19, [#allocation15], %s4590_s27, %s4590_s27, %s4592_s30  }
  0x21   : > { %s3783_s18 = smov [#allocation16]   ;;  %s3784_s21 = smov [#allocation17]  }
  0x22   : > { %s301_s2 = sshll.u32 %s3783_s18, 4  ;;  %s315_s26 = sshll.u32 %s3784_s21, 4  ;;  %s302_s2 = int_to_ptr.vmem [resolvable:$true] %s301_s2  ;;  %s316_s26 = int_to_ptr.vmem [resolvable:$true] %s315_s26 }
  0x23   : > { %s299_s24 = sshll.u32 %s4618_s6, 4  ;;  %s36_s19 = sadd.s32 1, %s3773_s12  ;;  %s300_s24 = int_to_ptr.hbm [resolvable:$true] %s299_s24 }
  0x24   : > { %3110 = dma.hbm_to_vmem [thread:$0]  (!%p3909_p9), %s300_s24, 512, %s302_s2, [#allocation15], %s4590_s27, %s4590_s27, %s4592_s30  }
  0x25   : > { %s313_s25 = sshll.u32 %s4619_s7, 4  ;;  %s48_s20 = sadd.s32 1, %s3765_s10  ;;  %s314_s25 = int_to_ptr.hbm [resolvable:$true] %s313_s25 }
  0x26   : > { %3113 = dma.hbm_to_vmem [thread:$0]  (!%p3909_p9), %s314_s25, 512, %s316_s26, [#allocation18], %s4590_s27, %s4590_s27, %s4592_s30  }
  0x27   : > { %p37_p10 = scmp.ge.s32.totalorder %s36_s19, 2  ;;  %p55_p11 = scmp.ne.s32.totalorder %s3765_s10, %s3761_s9 }
  0x28   : > { %p56_p12 = scmp.eq.s32.totalorder %s3777_s13, 0  ;;  %p3125_p13 = scmp.lt.s32.totalorder %s3777_s13, 2 }
  0x29   : > { %s4677_s19 = smov (%p37_p10, %s36_s19), 0  ;;  %s329_s23 = sand.u32 1, %s3765_s10  }
  0x2a   : > { %p3952_p0 = por %p56_p12, %p55_p11  ;;  %s44_s22 = ssub.s32 %s3773_s12, %s4677_s19 }
  0x2b   : > { %p46_p2 = scmp.eq.s32.totalorder %s44_s22, 0  ;;  %s3008_s25 = sshll.u32 %s329_s23, 4 }
  0x2c   : > { %s3009_s18 = sshll.u32 %s3773_s12, 3  ;;  %s4622_s0 = sld [smem:[#allocation28_spill]] }
  0x2d   : > { %s3961_s2 = scalar_select %p46_p2, %s3765_s10, %s48_s20  }
  0x2e   : > { %s333_s30 = scalar_lea.vmem [#allocation8], %s3008_s25  ;;  %p3115_p3 = pnand %p3125_p13, %p3952_p0 }
  0x2f   : > { %4621 = sst [smem:[#allocation27_spill]] %s3961_s2  ;;  %s343_s3 = sshll.u32 %s333_s30, 4  ;;  %s344_s3 = int_to_ptr.vmem [resolvable:$true] %s343_s3 }
  0x30   : > { %s330_s20 = scalar_lea.sflag [#allocation9], %s329_s23  ;;  %s3785_s22 = smov 256  }
  0x31   : > { %s4623_s7 = smov 8   ;;  %s4624_s2 = smov 128  }
  0x32   : > { %s340_s27 = scalar_lea.hbm %s4622_s0, %s3009_s18  ;;  %s71_s21 = ssub.s32 1, %s3773_s12 }
  0x33   : > { %s341_s6 = sshll.u32 %s340_s27, 4  ;;  %s72_s26 = ssub.s32 1, %s4677_s19  ;;  %s342_s6 = int_to_ptr.hbm [resolvable:$true] %s341_s6 }
  0x34   : > { %3117 = dma.hbm_to_vmem [thread:$0]  (!%p3115_p3), %s342_s6, 256, %s344_s3, %s330_s20, %s3785_s22, %s4624_s2, %s4623_s7  }
  0x35   : > { %s74_s18 = ssub.s32 %s71_s21, %s72_s26  ;;  %s78_s25 = sadd.s32 1, %s3753_s29 }
  0x36   : > { %p76_p4 = scmp.eq.s32.totalorder %s74_s18, 0  ;;  %p85_p8 = scmp.ne.s32.totalorder %s3753_s29, %s3749_s28 }
  0x37   : > { %s355_s30 = sand.u32 1, %s3753_s29   ;;  %s353_s24 = sand.u32 1, %s3777_s13  }
  0x38   : > { %s3979_s27 = scalar_select %p76_p4, %s3753_s29, %s78_s25  }
  0x39   : > { %p87_p9 = por %p85_p8, %p56_p12  ;;  %s3010_s0 = sshll.u32 %s355_s30, 4 }
  0x3a   : > { %s3011_s10 = sshll.u32 %s71_s21, 3  ;;  %s357_s6 = scalar_lea.vmem [#allocation11], %s3010_s0 }
  0x3b   : > { %s365_s5 = scalar_lea.hbm %s4582_s1, %s3011_s10  ;;  %s368_s20 = sshll.u32 %s357_s6, 4  ;;  %s369_s20 = int_to_ptr.vmem [resolvable:$true] %s368_s20 }
  0x3c   : > { %s366_s3 = sshll.u32 %s365_s5, 4  ;;  %p3118_p10 = pnand %p3125_p13, %p87_p9  ;;  %s367_s3 = int_to_ptr.hbm [resolvable:$true] %s366_s3 }
  0x3d   : > { %s354_s26 = scalar_lea.sflag [#allocation12], %s353_s24  ;;  %380 = sbr.rel (%p3898_p7) target bundleno = 5183 (0x143f), region = 52 }
  0x3e   : > { %3120 = dma.hbm_to_vmem [thread:$0]  (!%p3118_p10), %s367_s3, 256, %s369_s20, %s354_s26, %s3785_s22, %s4624_s2, %s4623_s7  }
  0x3f   : > { %s382_s21 = sand.u32 (!%p3898_p7), 1, %s3761_s9  }
  0x40   : > { %s3994_s18 = sshll.u32 (!%p3898_p7), %s382_s21, 4  ;;  %s383_s5 = scalar_lea.sflag (!%p3898_p7), [#allocation9], %s382_s21 }
  0x41   : > { %s386_s0 = scalar_lea.vmem (!%p3898_p7), [#allocation8], %s3994_s18 }
  0x42   : > { %3720 = dma.done.wait (%p3888_p5), %s383_s5, 256  }
  0x43   : > { %3722 = vsyncadd (%p3888_p5), %s383_s5, 4294967040  ;;  %s392_s7 = sand.u32 1, %s3879_s14   ;;  %s394_s8 = sand.u32 1, %s3749_s28  }
  0x44   : > { %s4003_s10 = sshll.u32 %s394_s8, 4  ;;  %s393_s17 = scalar_lea.sflag [#allocation12], %s392_s7 }
  0x45   : > { %s396_s2 = scalar_lea.vmem [#allocation11], %s4003_s10 }
  0x46   : > { %3724 = dma.done.wait (%p3894_p6), %s393_s17, 256  }
  0x47   : > { %3726 = vsyncadd (%p3894_p6), %s393_s17, 4294967040 }
  0x48   : > { %3728 = dma.done.wait (%p62_p1), [#allocation12], 256  }
  0x49   : > { %3730 = vsyncadd (%p62_p1), [#allocation12], 4294967040 }
  0x4a   : > { %3732 = dma.done.wait (%p62_p1), [#allocation15], 768  }
  0x4b   : > { %3734 = vsyncadd (%p62_p1), [#allocation15], 4294966528 }
  0x4c   : > { %3736 = dma.done.wait (%p62_p1), [#allocation18], 512  }
  0x4d   : > { %3738 = vsyncadd (%p62_p1), [#allocation18], 4294966784  ;;  %p3019_p5 = scmp.ne.s32.totalorder %s3769_s11, 0 }
  0x4f   : > { %456 = sbr.rel (%p3019_p5) target bundleno = 91 (0x5b), region = 80 }
  0x54   : > { %vm457_vm0 = vcmask 254976   ;;  %v3786_v0 = vmov 0.0  }
  0x55   : > { %458 = vst.msk [vmem:[#allocation2] sm:$0x3] %vm457_vm0, %v3786_v0 }
  0x56   : > { %459 = vst.msk [vmem:[#allocation3] sm:$0x3] %vm457_vm0, %v3786_v0 }
  0x57   : > { %460 = vst.msk [vmem:[#allocation4] sm:$0x3] %vm457_vm0, %v3786_v0 }
  0x58   : > { %461 = vst.msk [vmem:[#allocation5] sm:$0x3] %vm457_vm0, %v3786_v0 }
  0x59   : > { %462 = vst.msk [vmem:[#allocation6] sm:$0x3] %vm457_vm0, %v3786_v0 }
  0x5a   : > { %463 = vst.msk [vmem:[#allocation7] sm:$0x3] %vm457_vm0, %v3786_v0 }
  0x5b PF: > { %v543_v1 = vld [vmem:[#allocation16 + $0x18] sm:$0xff]  ;;  %v467_v2 = vld [vmem:[#allocation13 + $0x8] sm:$0xff]  ;;  %v542_v3 = vld [vmem:[#allocation16 + $0x10] sm:$0xff]  ;;  %vm472_vm1 = vcmask 130048   ;;  %vm544_vm2 = vcmask 261120   ;;  %s3787_s15 = smov 32  }
  0x5c   : > { %560 = vmatpush.msra.mxu2 %v543_v1  ;;  %493 = vmatpush.msra.mxu0 %v467_v2  ;;  %v466_v4 = vld [vmem:[#allocation13] sm:$0xff]  ;;  %v541_v6 = vld [vmem:[#allocation16 + $0x8] sm:$0xff]  ;;  %v682_v7 = vld [vmem:[#allocation17 + $0x18] sm:$0xff]  ;;  %s4625_s24 = sld [smem:[#allocation31_spill]]  ;;  %s3788_s23 = smov 64  }
  0x5d   : > { %v464_v5 = vld [vmem:[%s386_s0] sm:$0xff]  ;;  %v505_v9 = vld [vmem:[#allocation14 + $0x8] sm:$0xff]  ;;  %698 = vmatpush.msra.mxu3 %v682_v7  ;;  %v680_v13 = vld [vmem:[#allocation17 + $0x8] sm:$0xff]  ;;  %s3789_s3 = smov 96   ;;  %p3072_p1 = scmp.ne.s32.totalorder %s3769_s11, 1 }
  0x5e   : > { %561 = vmatpush.msra.mxu2 %v542_v3  ;;  %494 = vmatpush.msra.mxu0 %v466_v4  ;;  %v681_v8 = vld [vmem:[#allocation17 + $0x10] sm:$0xff]  ;;  %v540_v10 = vld [vmem:[#allocation16] sm:$0xff]  ;;  %v678_v18 = vld [vmem:[#allocation4] sm:$0x3]  ;;  %s3790_s6 = smov (!%p3072_p1), 32  }
  0x5f   : > { %3020 = vmatmul.msk.f32.vlgmr.msra.gmra.mxu0 %vm472_vm1, %v464_v5  ;;  %v504_v11 = vld [vmem:[#allocation14] sm:$0xff]  ;;  %530 = vmatpush.msra.mxu1 %v505_v9  ;;  %v679_v16 = vld [vmem:[#allocation17] sm:$0xff]  ;;  %v465_v19 = vld [vmem:[%s386_s0 + $0x8] sm:$0xff] }
  0x60   : > { %562 = vmatpush.msra.mxu2 %v541_v6  ;;  %v539_v12 = vld [vmem:[#allocation2] sm:$0x3]  ;;  %699 = vmatpush.msra.mxu3 %v681_v8  ;;  %v4028_v15 = vld [vmem:[#allocation3] sm:$0x3]  ;;  %v503_v20 = vld [vmem:[%s396_s2 + $0x8] sm:$0xff] }
  0x61   : > { %v502_v14 = vld [vmem:[%s396_s2] sm:$0xff]  ;;  %1139 = vmatpush.msrb.mxu0 %v543_v1  ;;  %531 = vmatpush.msra.mxu1 %v504_v11  ;;  %v616_v17 = vrot.slane %v4028_v15, 1  ;;  %v753_v21 = vld [vmem:[#allocation5] sm:$0x3] }
  0x62   : > { %563 = vmatpush.msra.mxu2 %v540_v10  ;;  %700 = vmatpush.msra.mxu3 %v680_v13  ;;  %v756_v22 = vrot.slane %v753_v21, 2  ;;  %v755_v23 = vrot.slane %v753_v21, 1  ;;  %v3217_v25 = vld [vmem:[%s4585_s4] ss:$0 sm:$0xff] }
  0x63   : > { %3024 = vmatmul.msk.f32.vlgmr.msra.gmra.mxu2 %vm544_vm2, %v539_v12  ;;  %3022 = vmatmul.msk.f32.vlgmr.msra.gmra.mxu1 %vm472_vm1, %v502_v14  ;;  %v3218_v28 = vld [vmem:[%s4625_s24] ss:$0 sm:$0xff] }
  0x64   : > { %619 = vrot.lane.b32.xlu2 %v616_v17, %s3787_s15  ;;  %701 = vmatpush.msra.mxu3 %v679_v16 }
  0x65   : > { %850 = vmatpush.msrb.mxu2 %v543_v1  ;;  %3027 = vmatmul.msk.f32.vlgmr.msra.gmra.mxu3 %vm544_vm2, %v678_v18 }
  0x66   : > { %1140 = vmatpush.msrb.mxu0 %v542_v3  ;;  %993 = vmatpush.msrb.mxu3 %v682_v7 }
  0x67   : > { %3021 = vmatmul.msk.f32.gmra.mxu0 %vm472_vm1, %v465_v19  ;;  %851 = vmatpush.msrb.mxu2 %v542_v3 }
  0x68   : > { %1141 = vmatpush.msrb.mxu0 %v541_v6  ;;  %1285 = vmatpush.msrb.mxu1 %v682_v7 }
  0x69   : > { %852 = vmatpush.msrb.mxu2 %v541_v6  ;;  %994 = vmatpush.msrb.mxu3 %v681_v8 }
  0x6a   : > { %1142 = vmatpush.msrb.mxu0 %v540_v10  ;;  %1286 = vmatpush.msrb.mxu1 %v681_v8 }
  0x6b   : > { %853 = vmatpush.msrb.mxu2 %v540_v10  ;;  %3023 = vmatmul.msk.f32.gmra.mxu1 %vm472_vm1, %v503_v20 }
  0x6c   : > { %995 = vmatpush.msrb.mxu3 %v680_v13  ;;  %1287 = vmatpush.msrb.mxu1 %v680_v13 }
  0x6d   : > { %759 = vrot.lane.b32.xlu2 %v756_v22, %s3787_s15 }
  0x6e   : > { %996 = vmatpush.msrb.mxu3 %v679_v16  ;;  %1288 = vmatpush.msrb.mxu1 %v679_v16 }
  0x75   : > { %757 = vrot.lane.b32.xlu2 %v755_v23, %s3787_s15 }
  0xdc   : > { %v496_v24 = vpop.f32.mrf.mxu0 }
  0xdd   : > { %v4049_v29 = vadd.f32 %v3217_v25, %v496_v24 }
  0xe0   : > { %v533_v26 = vpop.f32.mrf.mxu1 }
  0xe1   : > { %v4054_v34 = vadd.f32 %v3218_v28, %v533_v26 }
  0xe4   : > { %v499_v27 = vpop.f32.mrf.mxu0 }
  0xe5   : > { %v4051_v30 = vadd.f32 %v3217_v25, %v499_v27 }
  0xe6   : > { %v565_v31 = vpop.f32.mrf.mxu2 }
  0xe7   : > { %v569_v32 = vrot.slane %v565_v31, 1  ;;  %v572_v33 = vadd.f32 %v565_v31, %v4049_v29 }
  0xe8   : > { %v703_v36 = vpop.f32.mrf.mxu3  ;;  %v536_v37 = vpop.f32.mrf.mxu1 }
  0xe9   : > { %v573_v35 = vadd.f32 %v569_v32, %v4051_v30  ;;  %3219 = vtanh.f32 %v572_v33  ;;  %v707_v38 = vrot.slane %v703_v36, 1  ;;  %v708_v39 = vrot.slane %v703_v36, 2 }
  0xea   : > { %v4057_v40 = vadd.f32 %v3218_v28, %v536_v37  ;;  %v3025_v49 = vmul.f32 -1.442695, %v572_v33 }
  0xeb   : > { %3221 = vtanh.f32 %v573_v35  ;;  %v711_v41 = vadd.f32 %v707_v38, %v4054_v34  ;;  %v3026_v47 = vmul.f32 -1.442695, %v573_v35 }
  0xec   : > { %v712_v42 = vadd.f32 %v708_v39, %v4057_v40 }
  0xed   : > { %3223 = vtanh.f32 %v711_v41  ;;  %v3028_v48 = vmul.f32 -1.442695, %v711_v41 }
  0xee   : > { %3225 = vtanh.f32 %v712_v42  ;;  %v3029_v50 = vmul.f32 -1.442695, %v712_v42 }
  0xef   : > { %v3220_v43 = vpop.eup %3219  ;;  %3227 = vpow2.f32 %v3026_v47 }
  0xf0   : > { %627 = vrot.lane.b32.xlu1 %v3220_v43, %s3787_s15  ;;  %3229 = vpow2.f32 %v3028_v48 }
  0xf1   : > { %v3222_v44 = vpop.eup %3221  ;;  %3231 = vpow2.f32 %v3025_v49 }
  0xf2   : > { %629 = vrot.lane.b32.xlu0 %v3222_v44, %s3787_s15  ;;  %3233 = vpow2.f32 %v3029_v50  ;;  %v620_v50 = vpop.permute.xlu2 %619 }
  0xf3   : > { %v3224_v45 = vpop.eup %3223 }
  0xf4   : > { %v3226_v46 = vpop.eup %3225 }
  0xf5   : > { %v3228_v51 = vpop.eup %3227 }
  0xf6   : > { %v581_v52 = vadd.f32 1.0, %v3228_v51  ;;  %v3230_v53 = vpop.eup %3229 }
  0xf7   : > { %v3232_v54 = vpop.eup %3231  ;;  %v719_v56 = vadd.f32 1.0, %v3230_v53 }
  0xf8   : > { %767 = vrot.lane.b32.xlu1 %v3224_v45, %s3787_s15  ;;  %3235 = vrcp.f32 %v581_v52  ;;  %v3234_v55 = vpop.eup %3233  ;;  %v4067_v57 = vadd.f32 1.0, %v3232_v54  ;;  %v608_v9 = vand.u32 2147483648, %v581_v52  ;;  %vm602_vm4 = vweird.f32 %v581_v52 }
  0xf9   : > { %v720_v58 = vadd.f32 1.0, %v3234_v55  ;;  %3237 = vrcp.f32 %v719_v56  ;;  %v606_v11 = vand.u32 2147483647, %v581_v52  ;;  %vm726_vm6 = vweird.f32 %v719_v56 }
  0xfa   : > { %769 = vrot.lane.b32.xlu0 %v3226_v46, %s3787_s15  ;;  %3239 = vrcp.f32 %v4067_v57  ;;  %v609_v18 = vor.u32 1.1754944e-38, %v608_v9  ;;  %v730_v20 = vand.u32 2147483647, %v719_v56  ;;  %v593_v35 = vand.u32 2147483648, %v4067_v57  ;;  %v760_v51 = vpop.permute.xlu2 %759 }
  0xfb   : > { %3241 = vrcp.f32 %v720_v58  ;;  %vm607_vm8 = vcmp.eq.f32.partialorder %v606_v11, 8.507059e+37  ;;  %vm741_vm9 = vweird.f32 %v720_v58  ;;  %v745_v23 = vand.u32 2147483647, %v720_v58 }
  0xfc   : > { %v747_v24 = vand.u32 2147483648, %v720_v58  ;;  %vm731_vm14 = vcmp.eq.f32.partialorder %v730_v20, 8.507059e+37  ;;  %vm587_vm15 = vweird.f32 %v4067_v57  ;;  %v591_v36 = vand.u32 2147483647, %v4067_v57 }
  0xfd   : > { %vm746_vm1 = vcmp.eq.f32.partialorder %v745_v23, 8.507059e+37  ;;  %v594_v43 = vor.u32 1.1754944e-38, %v593_v35 }
  0xfe   : > { %v3236_v59 = vpop.eup %3235  ;;  %v748_v37 = vor.u32 1.1754944e-38, %v747_v24 }
  0xff   : > { %v598_v60 = vmul.f32 %v3236_v59, %v581_v52  ;;  %v3238_v61 = vpop.eup %3237  ;;  %vm603_vm3 = vweird.f32 %v3236_v59 }
 0x100   : > { %v3240_v62 = vpop.eup %3239  ;;  %v722_v1 = vmul.f32 %v3238_v61, %v719_v56  ;;  %vm4071_vm5 = vmor %vm602_vm4, %vm603_vm3  ;;  %vm727_vm7 = vweird.f32 %v3238_v61  ;;  %vm592_vm3 = vcmp.eq.f32.partialorder %v591_v36, 8.507059e+37  ;;  %vm660_vm4 = vcmask 1041409  }
 0x101   : > { %v599_v63 = vsub.f32 1.0, %v598_v60  ;;  %v3242_v0 = vpop.eup %3241  ;;  %v583_v4 = vmul.f32 %v3240_v62, %v4067_v57  ;;  %vm4077_vm11 = vmor %vm726_vm6, %vm727_vm7  ;;  %vm588_vm12 = vweird.f32 %v3240_v62  ;;  %vm4597_vm6 = vcmask 254976  }
 0x102   : > { %617 = vrot.lane.b32.xlu0 %v4028_v15, %s3787_s15  ;;  %v737_v3 = vmul.f32 %v3242_v0, %v720_v58  ;;  %v723_v5 = vsub.f32 1.0, %v722_v1  ;;  %v732_v15 = vand.u32 2147483648, %v719_v56  ;;  %vm742_vm10 = vweird.f32 %v3242_v0  ;;  %vm589_vm0 = vmor %vm587_vm15, %vm588_vm12  ;;  %v758_v52 = vpop.permute.xlu2 %757 }
 0x103   : > { %v600_v2 = vmul.f32 %v3236_v59, %v599_v63  ;;  %v584_v8 = vsub.f32 1.0, %v583_v4  ;;  %vm4084_vm13 = vmor %vm741_vm9, %vm742_vm10  ;;  %vm4595_vm7 = vcmask 253952  }
 0x104   : > { %v738_v7 = vsub.f32 1.0, %v737_v3  ;;  %v724_v10 = vmul.f32 %v3238_v61, %v723_v5  ;;  %v733_v27 = vor.u32 1.1754944e-38, %v732_v15 }
 0x105   : > { %v601_v6 = vadd.f32 %v3236_v59, %v600_v2  ;;  %v585_v17 = vmul.f32 %v3240_v62, %v584_v8 }
 0x106   : > { %v739_v14 = vmul.f32 %v3242_v0, %v738_v7  ;;  %v725_v19 = vadd.f32 %v3238_v61, %v724_v10 }
 0x107   : > { %v605_v13 = vsel %vm4071_vm5, %v3236_v59, %v601_v6  ;;  %v586_v28 = vadd.f32 %v3240_v62, %v585_v17  ;;  %vm4596_vm5 = vcmask 261127  }
 0x108   : > { %v4081_v22 = vsel %vm607_vm8, %v609_v18, %v605_v13  ;;  %v740_v26 = vadd.f32 %v3242_v0, %v739_v14  ;;  %v729_v33 = vsel %vm4077_vm11, %v3238_v61, %v725_v19 }
 0x109   : > { %v734_v39 = vsel %vm731_vm14, %v733_v27, %v729_v33  ;;  %v590_v41 = vsel %vm589_vm0, %v3240_v62, %v586_v28  ;;  %v624_v53 = vmul.f32 %v620_v50, %v4081_v22 }
 0x10a   : > { %v744_v38 = vsel %vm4084_vm13, %v3242_v0, %v740_v26  ;;  %v595_v46 = vsel %vm592_vm3, %v594_v43, %v590_v41  ;;  %v763_v58 = vmul.f32 %v758_v52, %v734_v39 }
 0x10b   : > { %v749_v45 = vsel %vm746_vm1, %v748_v37, %v744_v38 }
 0x10c   : > { %v764_v60 = vmul.f32 %v760_v51, %v749_v45 }
 0x162   : > { %v628_v16 = vpop.permute.xlu1 %627 }
 0x163   : > { %v633_v48 = vmul.f32 %v628_v16, %v595_v46 }
 0x164   : > { %v630_v25 = vpop.permute.xlu0 %629 }
 0x165   : > { %v634_v31 = vmul.f32 %v630_v25, %v4081_v22  ;;  %v675_v25 = vld [vmem:[#allocation6] sm:$0x3] }
 0x167   : > { %639 = vrot.lane.b32.xlu1 %v634_v31, %s3787_s15 }
 0x16a   : > { %v768_v42 = vpop.permute.xlu1 %767 }
 0x16b   : > { %v773_v44 = vmul.f32 %v768_v42, %v734_v39 }
 0x16c   : > { %v770_v47 = vpop.permute.xlu0 %769 }
 0x16d   : > { %777 = vrot.lane.b32.xlu2 %v773_v44, %s3787_s15  ;;  %v774_v49 = vmul.f32 %v770_v47, %v749_v45 }
 0x16f   : > { %779 = vrot.lane.b32.xlu0 %v774_v49, %s3787_s15  ;;  %637 = vrot.lane.b32.xlu1 %v633_v48, %s3787_s15 }
 0x174   : > { %v618_v54 = vpop.permute.xlu0 %617 }
 0x175   : > { %v623_v61 = vmul.f32 %v618_v54, %v595_v46 }
 0x1c7   : > { %v778_v57 = vpop.permute.xlu2 %777 }
 0x1c8   : > { %v783_v59 = vadd.f32 %v778_v57, %v763_v58 }
 0x1d9   : > { %v640_v55 = vpop.permute.xlu1 %639 }
 0x1da   : > { %v644_v56 = vadd.f32 %v640_v55, %v624_v53 }
 0x1dc   : > { %3243 = vtanh.f32 %v644_v56  ;;  %v659_v1 = vrot.slane %v644_v56, 7 }
 0x1dd   : > { %3245 = vtanh.f32 %v783_v59 }
 0x1e1   : > { %v780_v62 = vpop.permute.xlu0 %779  ;;  %v638_v63 = vpop.permute.xlu1 %637 }
 0x1e2   : > { %v3244_v0 = vpop.eup %3243  ;;  %v784_v2 = vadd.f32 %v780_v62, %v764_v60  ;;  %v643_v3 = vadd.f32 %v638_v63, %v623_v61 }
 0x1e3   : > { %651 = vrot.lane.b32.xlu0 %v3244_v0, %s3787_s15  ;;  %v3246_v5 = vpop.eup %3245 }
 0x1e4   : > { %3247 = vtanh.f32 %v784_v2  ;;  %v661_v4 = vsel %vm660_vm4, %v659_v1, %v643_v3 }
 0x1e5   : > { %3249 = vtanh.f32 %v643_v3 }
 0x1ea   : > { %v3248_v6 = vpop.eup %3247 }
 0x1eb   : > { %v3250_v7 = vpop.eup %3249  ;;  %789 = vrot.lane.b32.xlu0 %v3246_v5, %s3787_s15  ;;  %791 = vrot.lane.b32.xlu1 %v3248_v6, %s3787_s15 }
 0x1ec   : > { %649 = vrot.lane.b32.xlu2 %v3250_v7, %s3787_s15 }
 0x246   : > { %v650_v8 = vpop.permute.xlu2 %649 }
 0x247   : > { %v655_v11 = vmul.f32 %v650_v8, %v595_v46 }
 0x255   : > { %v652_v9 = vpop.permute.xlu0 %651 }
 0x256   : > { %v656_v10 = vmul.f32 %v652_v9, %v4081_v22  ;;  %v799_v22 = vrot.slane %v784_v2, 7 }
 0x258   : > { %v669_v12 = vrot.slane %v656_v10, 7 }
 0x25a   : > { %v670_v13 = vsel %vm660_vm4, %v669_v12, %v655_v11 }
 0x25b   : > { %671 = vrot.lane.b32.xlu1 %v670_v13, %s3788_s23 }
 0x25d   : > { %v790_v14 = vpop.permute.xlu0 %789  ;;  %v792_v15 = vpop.permute.xlu1 %791 }
 0x25e   : > { %v795_v16 = vmul.f32 %v790_v14, %v734_v39  ;;  %v796_v17 = vmul.f32 %v792_v15, %v749_v45 }
 0x260   : > { %v822_v18 = vrot.slane %v795_v16, 7  ;;  %v812_v19 = vrot.slane %v796_v17, 7  ;;  %v823_v20 = vrot.slane %v796_v17, 6  ;;  %813 = vrot.lane.b32.xlu2 %v795_v16, %s3788_s23 }
 0x262   : > { %815 = vrot.lane.b32.xlu0 %v812_v19, %s3788_s23  ;;  %v4111_v21 = vsel %vm660_vm4, %v823_v20, %v822_v18 }
 0x263   : > { %662 = vrot.lane.b32.xlu1 %v661_v4, %s3789_s3 }
 0x268   : > { %800 = vrot.lane.b32.xlu2 %v783_v59, %s3789_s3 }
 0x26a   : > { %802 = vrot.lane.b32.xlu0 %v799_v22, %s3789_s3 }
 0x2ba   : > { %v814_v23 = vpop.permute.xlu2 %813 }
 0x2bb   : > { %819 = vst.msk [vmem:[#allocation4 - $0x7] sm:$0x80] %vm4596_vm5, %v814_v23 }
 0x2c2   : > { %v801_v24 = vpop.permute.xlu2 %800 }
 0x2c3   : > { %807 = vst.msk [vmem:[#allocation5 - $0x7] sm:$0x80] %vm4596_vm5, %v801_v24 }
 0x2cd   : > { %v672_v26 = vpop.permute.xlu1 %671 }
 0x2ce   : > { %674 = vst.msk [vmem:[#allocation2] sm:$0x3] %vm4597_vm6, %v672_v26  ;;  %v676_v27 = vadd.f32 %v675_v25, %v672_v26 }
 0x2d0   : > { %677 = vst.msk [vmem:[#allocation6] sm:$0x3] %vm4597_vm6, %v676_v27 }
 0x2d4   : > { %v816_v28 = vpop.permute.xlu0 %815 }
 0x2d5   : > { %820 = vst.msk [vmem:[#allocation4 + $0x1] sm:$0x1] %vm4595_vm7, %v816_v28  ;;  %v663_v31 = vpop.permute.xlu1 %662  ;;  %v830_v32 = vld [vmem:[#allocation2] sm:$0x3] }
 0x2d6   : > { %666 = vst.msk [vmem:[#allocation3] sm:$0x3] %vm4597_vm6, %v663_v31  ;;  %3030 = vmatmul.msk.f32.vlgmr.msrb.gmra.mxu2 %vm544_vm2, %v830_v32 }
 0x2dc   : > { %v803_v33 = vpop.permute.xlu0 %802  ;;  %v973_v35 = vld [vmem:[#allocation4] sm:$0x3] }
 0x2dd   : > { %809 = vst.msk [vmem:[#allocation5 + $0x1] sm:$0x1] %vm4595_vm7, %v803_v33  ;;  %3033 = vmatmul.msk.f32.vlgmr.msrb.gmra.mxu3 %vm544_vm2, %v973_v35  ;;  %v904_v50 = vld [vmem:[#allocation3] sm:$0x3] }
 0x2de   : > { %v906_v52 = vrot.slane %v904_v50, 7 }
 0x2e4   : > { %v4134_v51 = vld [vmem:[#allocation5] sm:$0x3] }
 0x2e5   : > { %v1051_v53 = vrot.slane %v4134_v51, 3 }
 0x359   : > { %v855_v36 = vpop.f32.mrf.mxu2 }
 0x35a   : > { %v859_v37 = vrot.slane %v855_v36, 7  ;;  %v863_v38 = vadd.f32 %v855_v36, %v4051_v30 }
 0x35c   : > { %v862_v39 = vadd.f32 %v859_v37, %v4049_v29  ;;  %3251 = vtanh.f32 %v863_v38  ;;  %v3032_v57 = vmul.f32 -1.442695, %v863_v38 }
 0x35e   : > { %3253 = vtanh.f32 %v862_v39  ;;  %v3031_v54 = vmul.f32 -1.442695, %v862_v39 }
 0x360   : > { %v998_v41 = vpop.f32.mrf.mxu3 }
 0x361   : > { %v1002_v42 = vrot.slane %v998_v41, 2  ;;  %v1003_v43 = vrot.slane %v998_v41, 3 }
 0x362   : > { %v3252_v44 = vpop.eup %3251 }
 0x363   : > { %v1006_v45 = vadd.f32 %v1002_v42, %v4054_v34  ;;  %v1007_v46 = vadd.f32 %v1003_v43, %v4057_v40  ;;  %919 = vrot.lane.b32.xlu1 %v3252_v44, %s3787_s15 }
 0x364   : > { %v3254_v47 = vpop.eup %3253 }
 0x365   : > { %3255 = vtanh.f32 %v1006_v45  ;;  %917 = vrot.lane.b32.xlu2 %v3254_v47, %s3787_s15  ;;  %v3034_v60 = vmul.f32 -1.442695, %v1006_v45  ;;  %v3035_v63 = vmul.f32 -1.442695, %v1007_v46 }
 0x366   : > { %3257 = vtanh.f32 %v1007_v46 }
 0x367   : > { %3259 = vpow2.f32 %v3031_v54 }
 0x36b   : > { %v3256_v48 = vpop.eup %3255 }
 0x36c   : > { %v3258_v49 = vpop.eup %3257  ;;  %1062 = vrot.lane.b32.xlu1 %v3256_v48, %s3787_s15 }
 0x36d   : > { %1064 = vrot.lane.b32.xlu0 %v3258_v49, %s3787_s15  ;;  %909 = vrot.lane.b32.xlu2 %v904_v50, %s3787_s15  ;;  %v3260_v55 = vpop.eup %3259 }
 0x36e   : > { %v870_v56 = vadd.f32 1.0, %v3260_v55 }
 0x370   : > { %3261 = vrcp.f32 %v870_v56  ;;  %v883_v3 = vand.u32 2147483648, %v870_v56  ;;  %vm877_vm9 = vweird.f32 %v870_v56  ;;  %v881_v5 = vand.u32 2147483647, %v870_v56 }
 0x371   : > { %3263 = vpow2.f32 %v3032_v57 }
 0x372   : > { %3265 = vpow2.f32 %v3034_v60  ;;  %v884_v9 = vor.u32 1.1754944e-38, %v883_v3  ;;  %vm882_vm11 = vcmp.eq.f32.partialorder %v881_v5, 8.507059e+37 }
 0x373   : > { %3267 = vpow2.f32 %v3035_v63 }
 0x375   : > { %907 = vrot.lane.b32.xlu0 %v906_v52, %s3787_s15  ;;  %1054 = vrot.lane.b32.xlu2 %v1051_v53, %s3787_s15  ;;  %v1050_v52 = vrot.slane %v4134_v51, 2 }
 0x376   : > { %v3262_v58 = vpop.eup %3261 }
 0x377   : > { %v873_v59 = vmul.f32 %v3262_v58, %v870_v56  ;;  %v3264_v62 = vpop.eup %3263  ;;  %vm878_vm8 = vweird.f32 %v3262_v58 }
 0x378   : > { %v871_v0 = vadd.f32 1.0, %v3264_v62  ;;  %v3266_v4 = vpop.eup %3265  ;;  %vm879_vm10 = vmor %vm877_vm9, %vm878_vm8 }
 0x379   : > { %v874_v61 = vsub.f32 1.0, %v873_v59  ;;  %v3268_v6 = vpop.eup %3267  ;;  %v1014_v8 = vadd.f32 1.0, %v3266_v4 }
 0x37a   : > { %3269 = vrcp.f32 %v871_v0  ;;  %v1015_v11 = vadd.f32 1.0, %v3268_v6  ;;  %v898_v24 = vand.u32 2147483648, %v871_v0  ;;  %vm892_vm13 = vweird.f32 %v871_v0 }
 0x37b   : > { %v875_v1 = vmul.f32 %v3262_v58, %v874_v61  ;;  %3271 = vrcp.f32 %v1014_v8  ;;  %v896_v26 = vand.u32 2147483647, %v871_v0  ;;  %v1027_v41 = vand.u32 2147483648, %v1014_v8 }
 0x37c   : > { %3273 = vrcp.f32 %v1015_v11  ;;  %v899_v31 = vor.u32 1.1754944e-38, %v898_v24  ;;  %v1042_v42 = vand.u32 2147483648, %v1015_v11  ;;  %vm1021_vm3 = vweird.f32 %v1014_v8 }
 0x37d   : > { %v876_v2 = vadd.f32 %v3262_v58, %v875_v1  ;;  %vm897_vm15 = vcmp.eq.f32.partialorder %v896_v26, 8.507059e+37  ;;  %v1025_v43 = vand.u32 2147483647, %v1014_v8  ;;  %vm1036_vm8 = vweird.f32 %v1015_v11 }
 0x37e   : > { %v1040_v44 = vand.u32 2147483647, %v1015_v11  ;;  %v1028_v47 = vor.u32 1.1754944e-38, %v1027_v41  ;;  %v1043_v48 = vor.u32 1.1754944e-38, %v1042_v42 }
 0x37f   : > { %v880_v7 = vsel %vm879_vm10, %v3262_v58, %v876_v2 }
 0x380   : > { %v3270_v10 = vpop.eup %3269  ;;  %v4139_v12 = vsel %vm882_vm11, %v884_v9, %v880_v7  ;;  %vm1026_vm11 = vcmp.eq.f32.partialorder %v1025_v43, 8.507059e+37 }
 0x381   : > { %v888_v15 = vmul.f32 %v3270_v10, %v871_v0  ;;  %v3272_v17 = vpop.eup %3271  ;;  %vm893_vm12 = vweird.f32 %v3270_v10 }
 0x382   : > { %v3274_v18 = vpop.eup %3273  ;;  %v1017_v20 = vmul.f32 %v3272_v17, %v1014_v8  ;;  %vm894_vm14 = vmor %vm892_vm13, %vm893_vm12  ;;  %vm1022_vm0 = vweird.f32 %v3272_v17  ;;  %vm1041_vm12 = vcmp.eq.f32.partialorder %v1040_v44, 8.507059e+37  ;;  %vm4600_vm13 = vcmask 1047559  }
 0x383   : > { %v889_v16 = vsub.f32 1.0, %v888_v15  ;;  %v1032_v22 = vmul.f32 %v3274_v18, %v1015_v11  ;;  %vm1037_vm1 = vweird.f32 %v3274_v18  ;;  %vm1023_vm9 = vmor %vm1021_vm3, %vm1022_vm0  ;;  %vm4599_vm0 = vcmask 261126  }
 0x384   : > { %v1018_v25 = vsub.f32 1.0, %v1017_v20  ;;  %vm1038_vm10 = vmor %vm1036_vm8, %vm1037_vm1 }
 0x385   : > { %v890_v19 = vmul.f32 %v3270_v10, %v889_v16  ;;  %v1033_v27 = vsub.f32 1.0, %v1032_v22 }
 0x386   : > { %v1019_v32 = vmul.f32 %v3272_v17, %v1018_v25 }
 0x387   : > { %v891_v23 = vadd.f32 %v3270_v10, %v890_v19  ;;  %v1034_v33 = vmul.f32 %v3274_v18, %v1033_v27 }
 0x388   : > { %v1020_v38 = vadd.f32 %v3272_v17, %v1019_v32 }
 0x389   : > { %v895_v28 = vsel %vm894_vm14, %v3270_v10, %v891_v23  ;;  %v1035_v39 = vadd.f32 %v3274_v18, %v1034_v33  ;;  %vm4601_vm14 = vcmask 1042434  }
 0x38a   : > { %v4143_v35 = vsel %vm897_vm15, %v899_v31, %v895_v28  ;;  %v1024_v45 = vsel %vm1023_vm9, %v3272_v17, %v1020_v38  ;;  %vm4598_vm15 = vcmask 256001  }
 0x38b   : > { %v1039_v46 = vsel %vm1038_vm10, %v3274_v18, %v1035_v39  ;;  %v1029_v50 = vsel %vm1026_vm11, %v1028_v47, %v1024_v45 }
 0x38c   : > { %v1044_v53 = vsel %vm1041_vm12, %v1043_v48, %v1039_v46 }
 0x3bf   : > { %v918_v13 = vpop.permute.xlu2 %917 }
 0x3c0   : > { %v923_v14 = vmul.f32 %v918_v13, %v4139_v12 }
 0x3c2   : > { %927 = vrot.lane.b32.xlu0 %v923_v14, %s3787_s15 }
 0x3c7   : > { %v910_v57 = vpop.permute.xlu2 %909 }
 0x3c8   : > { %v914_v3 = vmul.f32 %v910_v57, %v4143_v35 }
 0x3cf   : > { %v1055_v59 = vpop.permute.xlu2 %1054 }
 0x3d0   : > { %v1059_v63 = vmul.f32 %v1055_v59, %v1044_v53 }
 0x3d5   : > { %v920_v36 = vpop.permute.xlu1 %919 }
 0x3d6   : > { %v924_v37 = vmul.f32 %v920_v36, %v4143_v35 }
 0x3d8   : > { %929 = vrot.lane.b32.xlu1 %v924_v37, %s3787_s15 }
 0x3de   : > { %v1063_v49 = vpop.permute.xlu1 %1062 }
 0x3df   : > { %v1065_v54 = vpop.permute.xlu0 %1064  ;;  %v1068_v55 = vmul.f32 %v1063_v49, %v1029_v50 }
 0x3e0   : > { %v1069_v56 = vmul.f32 %v1065_v54, %v1044_v53  ;;  %1052 = vrot.lane.b32.xlu1 %v1050_v52, %s3787_s15 }
 0x3e1   : > { %1072 = vrot.lane.b32.xlu0 %v1068_v55, %s3787_s15 }
 0x3e2   : > { %1074 = vrot.lane.b32.xlu2 %v1069_v56, %s3787_s15 }
 0x3e7   : > { %v908_v58 = vpop.permute.xlu0 %907 }
 0x3e8   : > { %v913_v60 = vmul.f32 %v908_v58, %v4139_v12 }
 0x434   : > { %v928_v61 = vpop.permute.xlu0 %927 }
 0x435   : > { %v933_v62 = vadd.f32 %v928_v61, %v913_v60 }
 0x437   : > { %3275 = vtanh.f32 %v933_v62 }
 0x43c   : > { %v1075_v51 = vpop.permute.xlu2 %1074 }
 0x43d   : > { %v1079_v0 = vadd.f32 %v1075_v51, %v1059_v63  ;;  %v3276_v1 = vpop.eup %3275 }
 0x43e   : > { %939 = vrot.lane.b32.xlu2 %v3276_v1, %s3787_s15 }
 0x43f   : > { %3277 = vtanh.f32 %v1079_v0  ;;  %v1094_v10 = vrot.slane %v1079_v0, 7 }
 0x445   : > { %v3278_v2 = vpop.eup %3277 }
 0x446   : > { %1086 = vrot.lane.b32.xlu0 %v3278_v2, %s3787_s15 }
 0x44a   : > { %v930_v4 = vpop.permute.xlu1 %929 }
 0x44b   : > { %v934_v5 = vadd.f32 %v930_v4, %v914_v3 }
 0x44d   : > { %3279 = vtanh.f32 %v934_v5  ;;  %v949_v15 = vrot.slane %v934_v5, 7 }
 0x44f   : > { %v951_v16 = vsel %vm4601_vm14, %v949_v15, %v933_v62 }
 0x452   : > { %v1053_v6 = vpop.permute.xlu1 %1052 }
 0x453   : > { %v3280_v7 = vpop.eup %3279  ;;  %v1058_v8 = vmul.f32 %v1053_v6, %v1029_v50  ;;  %v1073_v9 = vpop.permute.xlu0 %1072 }
 0x454   : > { %941 = vrot.lane.b32.xlu1 %v3280_v7, %s3787_s15 }
 0x455   : > { %v1078_v11 = vadd.f32 %v1073_v9, %v1058_v8 }
 0x457   : > { %3281 = vtanh.f32 %v1078_v11  ;;  %v1096_v13 = vsel %vm4600_vm13, %v1094_v10, %v1078_v11 }
 0x45d   : > { %v3282_v14 = vpop.eup %3281 }
 0x45e   : > { %1084 = vrot.lane.b32.xlu1 %v3282_v14, %s3787_s15 }
 0x466   : > { %952 = vrot.lane.b32.xlu1 %v951_v16, %s3789_s3 }
 0x498   : > { %v940_v17 = vpop.permute.xlu2 %939 }
 0x499   : > { %v945_v18 = vmul.f32 %v940_v17, %v4139_v12 }
 0x49b   : > { %v966_v20 = vrot.slane %v945_v18, 1 }
 0x4b8   : > { %v1087_v25 = vpop.permute.xlu0 %1086 }
 0x4b9   : > { %v1091_v27 = vmul.f32 %v1087_v25, %v1044_v53 }
 0x4bb   : > { %v1104_v31 = vrot.slane %v1091_v27, 7  ;;  %v1112_v33 = vrot.slane %v1091_v27, 5 }
 0x4c6   : > { %v942_v19 = vpop.permute.xlu1 %941 }
 0x4c7   : > { %v946_v22 = vmul.f32 %v942_v19, %v4143_v35 }
 0x4c9   : > { %v959_v23 = vrot.slane %v946_v22, 7  ;;  %v4163_v24 = vsel %vm660_vm4, %v946_v22, %v966_v20 }
 0x4cb   : > { %v960_v26 = vsel %vm4601_vm14, %v959_v23, %v945_v18 }
 0x4cc   : > { %961 = vrot.lane.b32.xlu2 %v960_v26, %s3788_s23 }
 0x4d0   : > { %v1085_v28 = vpop.permute.xlu1 %1084 }
 0x4d1   : > { %v1090_v32 = vmul.f32 %v1085_v28, %v1029_v50 }
 0x4d3   : > { %v1111_v36 = vrot.slane %v1090_v32, 6  ;;  %v1105_v12 = vsel %vm4600_vm13, %v1104_v31, %v1090_v32 }
 0x4d4   : > { %1106 = vrot.lane.b32.xlu0 %v1105_v12, %s3788_s23  ;;  %1097 = vrot.lane.b32.xlu2 %v1096_v13, %s3789_s3 }
 0x4d5   : > { %v4171_v35 = vsel %vm660_vm4, %v1112_v33, %v1111_v36 }
 0x4d8   : > { %v953_v37 = vpop.permute.xlu1 %952 }
 0x4d9   : > { %956 = vst.msk [vmem:[#allocation3 - $0x1] sm:$0x6] %vm4598_vm15, %v953_v37 }
 0x4e0   : > { %v1194_v52 = vld [vmem:[#allocation3] sm:$0x3] }
 0x4e1   : > { %v1197_v53 = vrot.slane %v1194_v52, 7  ;;  %v1196_v63 = vrot.slane %v1194_v52, 6 }
 0x526   : > { %v962_v38 = vpop.permute.xlu2 %961 }
 0x527   : > { %964 = vst.msk [vmem:[#allocation2 - $0x1] sm:$0x6] %vm4598_vm15, %v962_v38 }
 0x52e   : > { %v1098_v39 = vpop.permute.xlu2 %1097  ;;  %v1119_v41 = vld [vmem:[#allocation2] sm:$0x3] }
 0x52f   : > { %1101 = vst.msk [vmem:[#allocation5 - $0x6] sm:$0xc0] %vm4599_vm0, %v1098_v39  ;;  %3036 = vmatmul.msk.f32.vlgmr.msrb.gmra.mxu0 %vm544_vm2, %v1119_v41 }
 0x536   : > { %v4184_v54 = vld [vmem:[#allocation5] sm:$0x3] }
 0x537   : > { %v1343_v55 = vrot.slane %v4184_v54, 4 }
 0x546   : > { %v1107_v42 = vpop.permute.xlu0 %1106 }
 0x547   : > { %1109 = vst.msk [vmem:[#allocation4 - $0x6] sm:$0xc0] %vm4599_vm0, %v1107_v42 }
 0x54e   : > { %v1265_v43 = vld [vmem:[#allocation4] sm:$0x3] }
 0x54f   : > { %3039 = vmatmul.msk.f32.vlgmr.msrb.gmra.mxu1 %vm544_vm2, %v1265_v43 }
 0x5ac   : > { %v1144_v44 = vpop.f32.mrf.mxu0 }
 0x5ad   : > { %v1148_v45 = vrot.slane %v1144_v44, 6  ;;  %v1149_v46 = vrot.slane %v1144_v44, 7 }
 0x5af   : > { %v1152_v47 = vadd.f32 %v1148_v45, %v4049_v29  ;;  %v1153_v48 = vadd.f32 %v1149_v46, %v4051_v30 }
 0x5b1   : > { %3283 = vtanh.f32 %v1152_v47  ;;  %v3037_v51 = vmul.f32 -1.442695, %v1152_v47  ;;  %v3038_v0 = vmul.f32 -1.442695, %v1153_v48 }
 0x5b2   : > { %3285 = vtanh.f32 %v1153_v48 }
 0x5b7   : > { %v3284_v49 = vpop.eup %3283 }
 0x5b8   : > { %v3286_v50 = vpop.eup %3285  ;;  %1208 = vrot.lane.b32.xlu1 %v3284_v49, %s3787_s15 }
 0x5b9   : > { %1210 = vrot.lane.b32.xlu0 %v3286_v50, %s3787_s15 }
 0x5c0   : > { %1200 = vrot.lane.b32.xlu1 %v1197_v53, %s3787_s15 }
 0x5c8   : > { %1346 = vrot.lane.b32.xlu1 %v1343_v55, %s3787_s15 }
 0x5cc   : > { %v1290_v56 = vpop.f32.mrf.mxu1 }
 0x5cd   : > { %v1294_v57 = vrot.slane %v1290_v56, 3  ;;  %v1295_v58 = vrot.slane %v1290_v56, 4 }
 0x5cf   : > { %v1298_v59 = vadd.f32 %v1294_v57, %v4054_v34  ;;  %v1299_v60 = vadd.f32 %v1295_v58, %v4057_v40  ;;  %v1342_v57 = vrot.slane %v4184_v54, 3 }
 0x5d1   : > { %3287 = vtanh.f32 %v1298_v59  ;;  %v3041_v1 = vmul.f32 -1.442695, %v1299_v60  ;;  %v3040_v16 = vmul.f32 -1.442695, %v1298_v59 }
 0x5d2   : > { %3289 = vtanh.f32 %v1299_v60 }
 0x5d3   : > { %3291 = vpow2.f32 %v3037_v51 }
 0x5d4   : > { %3293 = vpow2.f32 %v3038_v0 }
 0x5d5   : > { %3295 = vpow2.f32 %v3041_v1 }
 0x5d7   : > { %v3288_v61 = vpop.eup %3287 }
 0x5d8   : > { %v3290_v62 = vpop.eup %3289  ;;  %1354 = vrot.lane.b32.xlu0 %v3288_v61, %s3787_s15 }
 0x5d9   : > { %1356 = vrot.lane.b32.xlu2 %v3290_v62, %s3787_s15  ;;  %v3292_v2 = vpop.eup %3291 }
 0x5da   : > { %v3294_v3 = vpop.eup %3293  ;;  %v1160_v4 = vadd.f32 1.0, %v3292_v2 }
 0x5db   : > { %v1161_v5 = vadd.f32 1.0, %v3294_v3  ;;  %v3296_v6 = vpop.eup %3295 }
 0x5dc   : > { %3297 = vrcp.f32 %v1160_v4  ;;  %v1307_v7 = vadd.f32 1.0, %v3296_v6  ;;  %v1173_v23 = vand.u32 2147483648, %v1160_v4  ;;  %vm1167_vm8 = vweird.f32 %v1160_v4 }
 0x5dd   : > { %3299 = vrcp.f32 %v1161_v5  ;;  %v1188_v26 = vand.u32 2147483648, %v1161_v5  ;;  %v1171_v27 = vand.u32 2147483647, %v1160_v4  ;;  %vm1182_vm9 = vweird.f32 %v1161_v5 }
 0x5de   : > { %3301 = vrcp.f32 %v1307_v7  ;;  %v1186_v28 = vand.u32 2147483647, %v1161_v5  ;;  %v1174_v36 = vor.u32 1.1754944e-38, %v1173_v23  ;;  %v1334_v47 = vand.u32 2147483648, %v1307_v7 }
 0x5df   : > { %3303 = vpow2.f32 %v3040_v16  ;;  %v1189_v37 = vor.u32 1.1754944e-38, %v1188_v26  ;;  %vm1172_vm12 = vcmp.eq.f32.partialorder %v1171_v27, 8.507059e+37  ;;  %v1332_v48 = vand.u32 2147483647, %v1307_v7 }
 0x5e0   : > { %vm1187_vm7 = vcmp.eq.f32.partialorder %v1186_v28, 8.507059e+37  ;;  %v1335_v50 = vor.u32 1.1754944e-38, %v1334_v47 }
 0x5e1   : > { %1198 = vrot.lane.b32.xlu2 %v1196_v63, %s3787_s15 }
 0x5e2   : > { %v3298_v8 = vpop.eup %3297 }
 0x5e3   : > { %v3300_v9 = vpop.eup %3299  ;;  %v1163_v10 = vmul.f32 %v3298_v8, %v1160_v4  ;;  %vm1168_vm1 = vweird.f32 %v3298_v8 }
 0x5e4   : > { %v1178_v11 = vmul.f32 %v3300_v9, %v1161_v5  ;;  %v3302_v15 = vpop.eup %3301  ;;  %vm1183_vm3 = vweird.f32 %v3300_v9  ;;  %vm1169_vm10 = vmor %vm1167_vm8, %vm1168_vm1 }
 0x5e5   : > { %v1164_v13 = vsub.f32 1.0, %v1163_v10  ;;  %v1324_v19 = vmul.f32 %v3302_v15, %v1307_v7  ;;  %v3304_v31 = vpop.eup %3303  ;;  %vm1184_vm11 = vmor %vm1182_vm9, %vm1183_vm3  ;;  %vm1329_vm1 = vweird.f32 %v3302_v15  ;;  %vm1328_vm3 = vweird.f32 %v1307_v7 }
 0x5e6   : > { %v1179_v14 = vsub.f32 1.0, %v1178_v11  ;;  %v1306_v38 = vadd.f32 1.0, %v3304_v31  ;;  %vm1330_vm8 = vmor %vm1328_vm3, %vm1329_vm1  ;;  %vm1333_vm9 = vcmp.eq.f32.partialorder %v1332_v48, 8.507059e+37  ;;  %vm1387_vm1 = vcmask 1046534  }
 0x5e7   : > { %v1165_v17 = vmul.f32 %v3298_v8, %v1164_v13  ;;  %v1325_v25 = vsub.f32 1.0, %v1324_v19  ;;  %vm1241_vm3 = vcmask 1043459  }
 0x5e8   : > { %v1180_v18 = vmul.f32 %v3300_v9, %v1179_v14  ;;  %3305 = vrcp.f32 %v1306_v38  ;;  %v1319_v62 = vand.u32 2147483648, %v1306_v38  ;;  %v1317_v63 = vand.u32 2147483647, %v1306_v38 }
 0x5e9   : > { %v1166_v20 = vadd.f32 %v3298_v8, %v1165_v17  ;;  %v1326_v12 = vmul.f32 %v3302_v15, %v1325_v25 }
 0x5ea   : > { %v1181_v22 = vadd.f32 %v3300_v9, %v1180_v18  ;;  %v1320_v0 = vor.u32 1.1754944e-38, %v1319_v62  ;;  %v1412_v62 = vld [vmem:[#allocation16] sm:$0xff] }
 0x5eb   : > { %v1170_v32 = vsel %vm1169_vm10, %v3298_v8, %v1166_v20  ;;  %v1327_v46 = vadd.f32 %v3302_v15, %v1326_v12  ;;  %vm1313_vm10 = vweird.f32 %v1306_v38 }
 0x5ec   : > { %v1185_v33 = vsel %vm1184_vm11, %v3300_v9, %v1181_v22  ;;  %v4193_v41 = vsel %vm1172_vm12, %v1174_v36, %v1170_v32  ;;  %vm1318_vm12 = vcmp.eq.f32.partialorder %v1317_v63, 8.507059e+37 }
 0x5ed   : > { %v4195_v43 = vsel %vm1187_vm7, %v1189_v37, %v1185_v33  ;;  %v1331_v49 = vsel %vm1330_vm8, %v3302_v15, %v1327_v46  ;;  %vm4602_vm8 = vcmask 257026  }
 0x5ee   : > { %v4201_v52 = vsel %vm1333_vm9, %v1335_v50, %v1331_v49  ;;  %v3306_v55 = vpop.eup %3305  ;;  %vm4603_vm9 = vcmask 260101  }
 0x5ef   : > { %v1309_v58 = vmul.f32 %v3306_v55, %v1306_v38  ;;  %vm1314_vm7 = vweird.f32 %v3306_v55 }
 0x5f0   : > { %vm1315_vm11 = vmor %vm1313_vm10, %vm1314_vm7 }
 0x5f1   : > { %v1310_v59 = vsub.f32 1.0, %v1309_v58  ;;  %v1558_v58 = vld [vmem:[#allocation17] sm:$0xff] }
 0x5f3   : > { %v1311_v60 = vmul.f32 %v3306_v55, %v1310_v59  ;;  %v1415_v59 = vld [vmem:[#allocation16 + $0x18] sm:$0xff] }
 0x5f4   : > { %1431 = vmatpush.msra.mxu2 %v1415_v59  ;;  %1723 = vmatpush.msra.mxu0 %v1415_v59 }
 0x5f5   : > { %v1312_v61 = vadd.f32 %v3306_v55, %v1311_v60  ;;  %v1414_v60 = vld [vmem:[#allocation16 + $0x10] sm:$0xff] }
 0x5f6   : > { %1432 = vmatpush.msra.mxu2 %v1414_v60  ;;  %1724 = vmatpush.msra.mxu0 %v1414_v60 }
 0x5f7   : > { %v1316_v51 = vsel %vm1315_vm11, %v3306_v55, %v1312_v61  ;;  %v1413_v61 = vld [vmem:[#allocation16 + $0x8] sm:$0xff] }
 0x5f8   : > { %v1321_v1 = vsel %vm1318_vm12, %v1320_v0, %v1316_v51  ;;  %1433 = vmatpush.msra.mxu2 %v1413_v61  ;;  %1725 = vmatpush.msra.mxu0 %v1413_v61 }
 0x5fa   : > { %1434 = vmatpush.msra.mxu2 %v1412_v62  ;;  %1726 = vmatpush.msra.mxu0 %v1412_v62 }
 0x5fc   : > { %2011 = vmatpush.msrb.mxu2 %v1415_v59 }
 0x5fe   : > { %2012 = vmatpush.msrb.mxu2 %v1414_v60 }
 0x600   : > { %2013 = vmatpush.msrb.mxu2 %v1413_v61 }
 0x602   : > { %2014 = vmatpush.msrb.mxu2 %v1412_v62 }
 0x62a   : > { %v1209_v39 = vpop.permute.xlu1 %1208 }
 0x62b   : > { %v1211_v42 = vpop.permute.xlu0 %1210  ;;  %v1214_v44 = vmul.f32 %v1209_v39, %v4193_v41 }
 0x62c   : > { %v1215_v45 = vmul.f32 %v1211_v42, %v4195_v43 }
 0x62d   : > { %1218 = vrot.lane.b32.xlu2 %v1214_v44, %s3787_s15 }
 0x62e   : > { %1220 = vrot.lane.b32.xlu0 %v1215_v45, %s3787_s15 }
 0x632   : > { %v1201_v8 = vpop.permute.xlu1 %1200 }
 0x633   : > { %v1357_v53 = vpop.permute.xlu2 %1356  ;;  %v1205_v9 = vmul.f32 %v1201_v8, %v4195_v43 }
 0x634   : > { %v1361_v56 = vmul.f32 %v1357_v53, %v4201_v52 }
 0x636   : > { %1344 = vrot.lane.b32.xlu0 %v1342_v57, %s3787_s15  ;;  %1366 = vrot.lane.b32.xlu1 %v1361_v56, %s3787_s15  ;;  %v1561_v56 = vld [vmem:[#allocation17 + $0x18] sm:$0xff]  ;;  %v1559_v57 = vld [vmem:[#allocation17 + $0x8] sm:$0xff] }
 0x637   : > { %1577 = vmatpush.msra.mxu3 %v1561_v56  ;;  %1867 = vmatpush.msra.mxu1 %v1561_v56 }
 0x63a   : > { %v1347_v10 = vpop.permute.xlu1 %1346 }
 0x63b   : > { %v1199_v54 = vpop.permute.xlu2 %1198  ;;  %v1351_v14 = vmul.f32 %v1347_v10, %v4201_v52 }
 0x63c   : > { %v1204_v4 = vmul.f32 %v1199_v54, %v4193_v41 }
 0x64a   : > { %v1355_v2 = vpop.permute.xlu0 %1354 }
 0x64b   : > { %v1360_v3 = vmul.f32 %v1355_v2, %v1321_v1 }
 0x64d   : > { %1364 = vrot.lane.b32.xlu2 %v1360_v3, %s3787_s15 }
 0x687   : > { %v1219_v5 = vpop.permute.xlu2 %1218 }
 0x688   : > { %v1224_v6 = vadd.f32 %v1219_v5, %v1204_v4 }
 0x68a   : > { %3307 = vtanh.f32 %v1224_v6 }
 0x690   : > { %v3308_v7 = vpop.eup %3307 }
 0x691   : > { %1230 = vrot.lane.b32.xlu1 %v3308_v7, %s3787_s15 }
 0x6a0   : > { %v1221_v11 = vpop.permute.xlu0 %1220 }
 0x6a1   : > { %v1225_v13 = vadd.f32 %v1221_v11, %v1205_v9 }
 0x6a3   : > { %3309 = vtanh.f32 %v1225_v13  ;;  %v1240_v28 = vrot.slane %v1225_v13, 7 }
 0x6a5   : > { %v1242_v31 = vsel %vm1241_vm3, %v1240_v28, %v1224_v6 }
 0x6a7   : > { %v1365_v20 = vpop.permute.xlu2 %1364 }
 0x6a8   : > { %v1345_v15 = vpop.permute.xlu0 %1344  ;;  %v1367_v16 = vpop.permute.xlu1 %1366 }
 0x6a9   : > { %v3310_v17 = vpop.eup %3309  ;;  %v1350_v18 = vmul.f32 %v1345_v15, %v1321_v1  ;;  %v1371_v19 = vadd.f32 %v1367_v16, %v1351_v14 }
 0x6aa   : > { %1232 = vrot.lane.b32.xlu0 %v3310_v17, %s3787_s15 }
 0x6ab   : > { %3311 = vtanh.f32 %v1371_v19  ;;  %v1386_v22 = vrot.slane %v1371_v19, 7  ;;  %v1370_v23 = vadd.f32 %v1365_v20, %v1350_v18 }
 0x6ad   : > { %3313 = vtanh.f32 %v1370_v23  ;;  %v1388_v25 = vsel %vm1387_vm1, %v1386_v22, %v1370_v23 }
 0x6b1   : > { %v3312_v26 = vpop.eup %3311 }
 0x6b2   : > { %1378 = vrot.lane.b32.xlu2 %v3312_v26, %s3787_s15 }
 0x6b3   : > { %v3314_v27 = vpop.eup %3313 }
 0x6b4   : > { %1376 = vrot.lane.b32.xlu0 %v3314_v27, %s3787_s15 }
 0x6bc   : > { %1243 = vrot.lane.b32.xlu0 %v1242_v31, %s3789_s3 }
 0x703   : > { %v1231_v32 = vpop.permute.xlu1 %1230 }
 0x704   : > { %v1236_v33 = vmul.f32 %v1231_v32, %v4193_v41 }
 0x706   : > { %v1257_v37 = vrot.slane %v1236_v33, 2 }
 0x70c   : > { %v1379_v42 = vpop.permute.xlu2 %1378 }
 0x70d   : > { %v1383_v46 = vmul.f32 %v1379_v42, %v4201_v52  ;;  %v1560_v52 = vld [vmem:[#allocation17 + $0x10] sm:$0xff] }
 0x70e   : > { %1578 = vmatpush.msra.mxu3 %v1560_v52  ;;  %1868 = vmatpush.msra.mxu1 %v1560_v52 }
 0x70f   : > { %v1396_v48 = vrot.slane %v1383_v46, 7  ;;  %v1404_v41 = vrot.slane %v1383_v46, 4 }
 0x710   : > { %1579 = vmatpush.msra.mxu3 %v1559_v57  ;;  %1869 = vmatpush.msra.mxu1 %v1559_v57 }
 0x712   : > { %1580 = vmatpush.msra.mxu3 %v1558_v58  ;;  %1870 = vmatpush.msra.mxu1 %v1558_v58 }
 0x714   : > { %2155 = vmatpush.msrb.mxu3 %v1561_v56 }
 0x716   : > { %2156 = vmatpush.msrb.mxu3 %v1560_v52 }
 0x718   : > { %2157 = vmatpush.msrb.mxu3 %v1559_v57 }
 0x71a   : > { %2158 = vmatpush.msrb.mxu3 %v1558_v58 }
 0x71c   : > { %v1233_v36 = vpop.permute.xlu0 %1232 }
 0x71d   : > { %v1237_v12 = vmul.f32 %v1233_v36, %v4195_v43 }
 0x71f   : > { %v1250_v38 = vrot.slane %v1237_v12, 7  ;;  %v1258_v39 = vrot.slane %v1237_v12, 1 }
 0x721   : > { %v1251_v44 = vsel %vm1241_vm3, %v1250_v38, %v1236_v33  ;;  %v4222_v45 = vsel %vm660_vm4, %v1258_v39, %v1257_v37 }
 0x722   : > { %1252 = vrot.lane.b32.xlu1 %v1251_v44, %s3788_s23 }
 0x726   : > { %v1377_v47 = vpop.permute.xlu0 %1376 }
 0x727   : > { %v1382_v49 = vmul.f32 %v1377_v47, %v1321_v1 }
 0x729   : > { %v1403_v50 = vrot.slane %v1382_v49, 5  ;;  %v1397_v43 = vsel %vm1387_vm1, %v1396_v48, %v1382_v49 }
 0x72a   : > { %1389 = vrot.lane.b32.xlu1 %v1388_v25, %s3789_s3  ;;  %1398 = vrot.lane.b32.xlu2 %v1397_v43, %s3788_s23 }
 0x72b   : > { %v4230_v53 = vsel %vm660_vm4, %v1404_v41, %v1403_v50 }
 0x72e   : > { %v1244_v55 = vpop.permute.xlu0 %1243 }
 0x72f   : > { %1247 = vst.msk [vmem:[#allocation3 - $0x2] sm:$0xc] %vm4602_vm8, %v1244_v55 }
 0x736   : > { %v1486_v7 = vld [vmem:[#allocation3] sm:$0x3] }
 0x737   : > { %v1488_v13 = vrot.slane %v1486_v7, 5  ;;  %v1489_v18 = vrot.slane %v1486_v7, 6 }
 0x784   : > { %v1399_v63 = vpop.permute.xlu2 %1398 }
 0x785   : > { %1401 = vst.msk [vmem:[#allocation4 - $0x5] sm:$0x60] %vm4603_vm9, %v1399_v63 }
 0x78c   : > { %v1557_v51 = vld [vmem:[#allocation4] sm:$0x3] }
 0x78d   : > { %3045 = vmatmul.msk.f32.vlgmr.msra.gmra.mxu3 %vm544_vm2, %v1557_v51 }
 0x794   : > { %v1253_v0 = vpop.permute.xlu1 %1252 }
 0x795   : > { %1255 = vst.msk [vmem:[#allocation2 - $0x2] sm:$0xc] %vm4602_vm8, %v1253_v0 }
 0x79c   : > { %v1390_v1 = vpop.permute.xlu1 %1389  ;;  %v1411_v2 = vld [vmem:[#allocation2] sm:$0x3] }
 0x79d   : > { %1393 = vst.msk [vmem:[#allocation5 - $0x5] sm:$0x60] %vm4603_vm9, %v1390_v1  ;;  %3042 = vmatmul.msk.f32.vlgmr.msra.gmra.mxu2 %vm544_vm2, %v1411_v2 }
 0x7a4   : > { %v1632_v20 = vld [vmem:[#allocation5] sm:$0x3] }
 0x7a5   : > { %v1635_v22 = vrot.slane %v1632_v20, 5 }
 0x810   : > { %v1582_v3 = vpop.f32.mrf.mxu3 }
 0x811   : > { %v1587_v54 = vrot.slane %v1582_v3, 5  ;;  %v1586_v14 = vrot.slane %v1582_v3, 4 }
 0x813   : > { %v1591_v4 = vadd.f32 %v1587_v54, %v4057_v40  ;;  %v1590_v15 = vadd.f32 %v1586_v14, %v4054_v34 }
 0x815   : > { %3315 = vtanh.f32 %v1591_v4  ;;  %v3047_v25 = vmul.f32 -1.442695, %v1591_v4  ;;  %v3046_v38 = vmul.f32 -1.442695, %v1590_v15 }
 0x81b   : > { %v3316_v5 = vpop.eup %3315 }
 0x81c   : > { %1648 = vrot.lane.b32.xlu1 %v3316_v5, %s3787_s15 }
 0x820   : > { %v1436_v6 = vpop.f32.mrf.mxu2 }
 0x821   : > { %v1440_v8 = vrot.slane %v1436_v6, 5  ;;  %v1441_v9 = vrot.slane %v1436_v6, 6  ;;  %v1634_v6 = vrot.slane %v1632_v20, 4 }
 0x823   : > { %v1444_v10 = vadd.f32 %v1440_v8, %v4049_v29  ;;  %v1445_v11 = vadd.f32 %v1441_v9, %v4051_v30 }
 0x824   : > { %1490 = vrot.lane.b32.xlu1 %v1488_v13, %s3787_s15 }
 0x825   : > { %3317 = vtanh.f32 %v1444_v10  ;;  %v3044_v23 = vmul.f32 -1.442695, %v1445_v11  ;;  %v3043_v33 = vmul.f32 -1.442695, %v1444_v10 }
 0x826   : > { %3319 = vtanh.f32 %v1445_v11 }
 0x827   : > { %3321 = vtanh.f32 %v1590_v15 }
 0x828   : > { %3323 = vpow2.f32 %v3044_v23 }
 0x829   : > { %3325 = vpow2.f32 %v3047_v25 }
 0x82b   : > { %v3318_v16 = vpop.eup %3317 }
 0x82c   : > { %v3320_v17 = vpop.eup %3319  ;;  %1500 = vrot.lane.b32.xlu0 %v3318_v16, %s3787_s15 }
 0x82d   : > { %1502 = vrot.lane.b32.xlu2 %v3320_v17, %s3787_s15  ;;  %v3322_v19 = vpop.eup %3321 }
 0x82e   : > { %v3324_v26 = vpop.eup %3323 }
 0x82f   : > { %v1453_v27 = vadd.f32 1.0, %v3324_v26  ;;  %v3326_v28 = vpop.eup %3325 }
 0x830   : > { %v1599_v31 = vadd.f32 1.0, %v3326_v28 }
 0x831   : > { %3327 = vrcp.f32 %v1453_v27  ;;  %v1480_v49 = vand.u32 2147483648, %v1453_v27  ;;  %vm1474_vm10 = vweird.f32 %v1453_v27  ;;  %v1478_v41 = vand.u32 2147483647, %v1453_v27 }
 0x832   : > { %3329 = vrcp.f32 %v1599_v31  ;;  %v1626_v62 = vand.u32 2147483648, %v1599_v31  ;;  %vm1620_vm6 = vweird.f32 %v1599_v31  ;;  %v1624_v63 = vand.u32 2147483647, %v1599_v31 }
 0x833   : > { %3331 = vpow2.f32 %v3043_v33  ;;  %v1481_v56 = vor.u32 1.1754944e-38, %v1480_v49  ;;  %vm1479_vm12 = vcmp.eq.f32.partialorder %v1478_v41, 8.507059e+37 }
 0x834   : > { %1492 = vrot.lane.b32.xlu0 %v1489_v18, %s3787_s15  ;;  %3333 = vpow2.f32 %v3046_v38  ;;  %v1627_v1 = vor.u32 1.1754944e-38, %v1626_v62 }
 0x835   : > { %1646 = vrot.lane.b32.xlu2 %v3322_v19, %s3787_s15 }
 0x837   : > { %v3328_v32 = vpop.eup %3327 }
 0x838   : > { %v1470_v36 = vmul.f32 %v3328_v32, %v1453_v27  ;;  %v3330_v37 = vpop.eup %3329  ;;  %vm1475_vm7 = vweird.f32 %v3328_v32 }
 0x839   : > { %v3332_v39 = vpop.eup %3331  ;;  %v1616_v44 = vmul.f32 %v3330_v37, %v1599_v31  ;;  %vm1476_vm11 = vmor %vm1474_vm10, %vm1475_vm7  ;;  %vm1621_vm5 = vweird.f32 %v3330_v37  ;;  %vm1625_vm10 = vcmp.eq.f32.partialorder %v1624_v63, 8.507059e+37 }
 0x83a   : > { %v1471_v12 = vsub.f32 1.0, %v1470_v36  ;;  %v1452_v46 = vadd.f32 1.0, %v3332_v39  ;;  %v3334_v50 = vpop.eup %3333  ;;  %vm1622_vm7 = vmor %vm1620_vm6, %vm1621_vm5 }
 0x83b   : > { %v1617_v48 = vsub.f32 1.0, %v1616_v44  ;;  %v1598_v52 = vadd.f32 1.0, %v3334_v50 }
 0x83c   : > { %1638 = vrot.lane.b32.xlu0 %v1635_v22, %s3787_s15  ;;  %v1472_v42 = vmul.f32 %v3328_v32, %v1471_v12  ;;  %3335 = vrcp.f32 %v1452_v46  ;;  %v1465_v11 = vand.u32 2147483648, %v1452_v46  ;;  %vm1459_vm6 = vweird.f32 %v1452_v46 }
 0x83d   : > { %v1618_v55 = vmul.f32 %v3330_v37, %v1617_v48  ;;  %3337 = vrcp.f32 %v1598_v52  ;;  %v1463_v13 = vand.u32 2147483647, %v1452_v46  ;;  %v1611_v22 = vand.u32 2147483648, %v1598_v52 }
 0x83e   : > { %v1473_v47 = vadd.f32 %v3328_v32, %v1472_v42  ;;  %v1466_v16 = vor.u32 1.1754944e-38, %v1465_v11  ;;  %v1609_v23 = vand.u32 2147483647, %v1598_v52 }
 0x83f   : > { %v1619_v61 = vadd.f32 %v3330_v37, %v1618_v55  ;;  %v1612_v26 = vor.u32 1.1754944e-38, %v1611_v22 }
 0x840   : > { %v1477_v43 = vsel %vm1476_vm11, %v3328_v32, %v1473_v47 }
 0x841   : > { %v4249_v57 = vsel %vm1479_vm12, %v1481_v56, %v1477_v43  ;;  %v1623_v0 = vsel %vm1622_vm7, %v3330_v37, %v1619_v61  ;;  %vm1464_vm12 = vcmp.eq.f32.partialorder %v1463_v13, 8.507059e+37 }
 0x842   : > { %v3336_v59 = vpop.eup %3335  ;;  %v4253_v3 = vsel %vm1625_vm10, %v1627_v1, %v1623_v0  ;;  %vm1605_vm10 = vweird.f32 %v1598_v52 }
 0x843   : > { %v1455_v51 = vmul.f32 %v3336_v59, %v1452_v46  ;;  %v3338_v4 = vpop.eup %3337  ;;  %vm1460_vm5 = vweird.f32 %v3336_v59 }
 0x844   : > { %v1601_v7 = vmul.f32 %v3338_v4, %v1598_v52  ;;  %vm1461_vm11 = vmor %vm1459_vm6, %vm1460_vm5  ;;  %vm1606_vm7 = vweird.f32 %v3338_v4  ;;  %vm1610_vm5 = vcmp.eq.f32.partialorder %v1609_v23, 8.507059e+37  ;;  %vm1533_vm6 = vcmask 1044484  }
 0x845   : > { %v1456_v54 = vsub.f32 1.0, %v1455_v51  ;;  %vm1607_vm15 = vmor %vm1605_vm10, %vm1606_vm7 }
 0x846   : > { %v1602_v9 = vsub.f32 1.0, %v1601_v7 }
 0x847   : > { %v1457_v8 = vmul.f32 %v3336_v59, %v1456_v54 }
 0x848   : > { %v1603_v14 = vmul.f32 %v3338_v4, %v1602_v9 }
 0x849   : > { %v1458_v10 = vadd.f32 %v3336_v59, %v1457_v8 }
 0x84a   : > { %v1604_v19 = vadd.f32 %v3338_v4, %v1603_v14 }
 0x84b   : > { %v1462_v15 = vsel %vm1461_vm11, %v3336_v59, %v1458_v10  ;;  %vm1538_vm11 = vcmask 258051  }
 0x84c   : > { %v4258_v17 = vsel %vm1464_vm12, %v1466_v16, %v1462_v15  ;;  %v1608_v25 = vsel %vm1607_vm15, %v3338_v4, %v1604_v19  ;;  %vm1679_vm15 = vcmask 1045509   ;;  %vm1684_vm12 = vcmask 259076  }
 0x84d   : > { %v1613_v28 = vsel %vm1610_vm5, %v1612_v26, %v1608_v25 }
 0x887   : > { %v1503_v58 = vpop.permute.xlu2 %1502 }
 0x888   : > { %v1507_v60 = vmul.f32 %v1503_v58, %v4249_v57 }
 0x88a   : > { %1512 = vrot.lane.b32.xlu2 %v1507_v60, %s3787_s15 }
 0x88e   : > { %v1649_v2 = vpop.permute.xlu1 %1648 }
 0x88f   : > { %v1653_v5 = vmul.f32 %v1649_v2, %v4253_v3  ;;  %v1647_v27 = vpop.permute.xlu2 %1646 }
 0x890   : > { %v1652_v31 = vmul.f32 %v1647_v27, %v1613_v28 }
 0x891   : > { %1658 = vrot.lane.b32.xlu0 %v1653_v5, %s3787_s15 }
 0x892   : > { %1636 = vrot.lane.b32.xlu2 %v1634_v6, %s3787_s15 }
 0x896   : > { %v1491_v46 = vpop.permute.xlu1 %1490 }
 0x897   : > { %v1496_v48 = vmul.f32 %v1491_v46, %v4258_v17 }
 0x89e   : > { %v1501_v18 = vpop.permute.xlu0 %1500 }
 0x89f   : > { %v1506_v20 = vmul.f32 %v1501_v18, %v4258_v17 }
 0x8a1   : > { %1510 = vrot.lane.b32.xlu1 %v1506_v20, %s3787_s15 }
 0x8a6   : > { %v1493_v32 = vpop.permute.xlu0 %1492 }
 0x8a7   : > { %v1497_v33 = vmul.f32 %v1493_v32, %v4249_v57 }
 0x8a9   : > { %1656 = vrot.lane.b32.xlu1 %v1652_v31, %s3787_s15 }
 0x8ae   : > { %v1639_v38 = vpop.permute.xlu0 %1638 }
 0x8af   : > { %v1643_v39 = vmul.f32 %v1639_v38, %v4253_v3 }
 0x8e4   : > { %v1513_v36 = vpop.permute.xlu2 %1512 }
 0x8e5   : > { %v1517_v12 = vadd.f32 %v1513_v36, %v1497_v33 }
 0x8e7   : > { %3339 = vtanh.f32 %v1517_v12  ;;  %v1532_v61 = vrot.slane %v1517_v12, 7 }
 0x8ec   : > { %v1637_v50 = vpop.permute.xlu2 %1636 }
 0x8ed   : > { %v3340_v37 = vpop.eup %3339  ;;  %v1642_v43 = vmul.f32 %v1637_v50, %v1613_v28 }
 0x8ee   : > { %1524 = vrot.lane.b32.xlu2 %v3340_v37, %s3787_s15 }
 0x903   : > { %v1659_v42 = vpop.permute.xlu0 %1658 }
 0x904   : > { %v1663_v44 = vadd.f32 %v1659_v42, %v1643_v39 }
 0x906   : > { %3341 = vtanh.f32 %v1663_v44  ;;  %v1678_v52 = vrot.slane %v1663_v44, 7 }
 0x90c   : > { %v3342_v47 = vpop.eup %3341 }
 0x90d   : > { %1670 = vrot.lane.b32.xlu1 %v3342_v47, %s3787_s15 }
 0x913   : > { %v1511_v49 = vpop.permute.xlu1 %1510 }
 0x914   : > { %v1516_v41 = vadd.f32 %v1511_v49, %v1496_v48 }
 0x916   : > { %3343 = vtanh.f32 %v1516_v41  ;;  %v1534_v62 = vsel %vm1533_vm6, %v1532_v61, %v1516_v41 }
 0x91b   : > { %v1657_v55 = vpop.permute.xlu1 %1656 }
 0x91c   : > { %v3344_v56 = vpop.eup %3343  ;;  %v1662_v58 = vadd.f32 %v1657_v55, %v1642_v43 }
 0x91d   : > { %1522 = vrot.lane.b32.xlu0 %v3344_v56, %s3787_s15 }
 0x91e   : > { %3345 = vtanh.f32 %v1662_v58  ;;  %v1680_v59 = vsel %vm1679_vm15, %v1678_v52, %v1662_v58 }
 0x924   : > { %v3346_v60 = vpop.eup %3345 }
 0x925   : > { %1668 = vrot.lane.b32.xlu2 %v3346_v60, %s3787_s15 }
 0x92d   : > { %1535 = vrot.lane.b32.xlu2 %v1534_v62, %s3789_s3 }
 0x948   : > { %v1525_v63 = vpop.permute.xlu2 %1524 }
 0x949   : > { %v1529_v9 = vmul.f32 %v1525_v63, %v4249_v57 }
 0x94b   : > { %v1542_v11 = vrot.slane %v1529_v9, 7  ;;  %v1550_v13 = vrot.slane %v1529_v9, 2 }
 0x97f   : > { %v1669_v51 = vpop.permute.xlu2 %1668  ;;  %v1671_v0 = vpop.permute.xlu1 %1670 }
 0x980   : > { %v1674_v1 = vmul.f32 %v1669_v51, %v1613_v28  ;;  %v1675_v2 = vmul.f32 %v1671_v0, %v4253_v3 }
 0x982   : > { %v1695_v54 = vrot.slane %v1674_v1, 4  ;;  %v1688_v4 = vrot.slane %v1675_v2, 7  ;;  %v1696_v5 = vrot.slane %v1675_v2, 3 }
 0x984   : > { %v1689_v6 = vsel %vm1679_vm15, %v1688_v4, %v1674_v1  ;;  %v4276_v7 = vsel %vm660_vm4, %v1696_v5, %v1695_v54 }
 0x985   : > { %1690 = vrot.lane.b32.xlu1 %v1689_v6, %s3788_s23 }
 0x987   : > { %v1536_v8 = vpop.permute.xlu2 %1535 }
 0x988   : > { %1539 = vst.msk [vmem:[#allocation3 - $0x3] sm:$0x18] %vm1538_vm11, %v1536_v8 }
 0x98f   : > { %v1523_v10 = vpop.permute.xlu0 %1522  ;;  %v1778_v36 = vld [vmem:[#allocation3] sm:$0x3] }
 0x990   : > { %v1528_v3 = vmul.f32 %v1523_v10, %v4258_v17  ;;  %v1780_v37 = vrot.slane %v1778_v36, 4  ;;  %v1781_v44 = vrot.slane %v1778_v36, 5 }
 0x992   : > { %v1549_v14 = vrot.slane %v1528_v3, 3  ;;  %v1543_v15 = vsel %vm1533_vm6, %v1542_v11, %v1528_v3 }
 0x993   : > { %1544 = vrot.lane.b32.xlu0 %v1543_v15, %s3788_s23 }
 0x994   : > { %v4285_v16 = vsel %vm660_vm4, %v1550_v13, %v1549_v14 }
 0x99b   : > { %1681 = vrot.lane.b32.xlu0 %v1680_v59, %s3789_s3 }
 0x9f7   : > { %v1691_v18 = vpop.permute.xlu1 %1690 }
 0x9f8   : > { %1693 = vst.msk [vmem:[#allocation4 - $0x4] sm:$0x30] %vm1684_vm12, %v1691_v18 }
 0x9ff   : > { %v1847_v57 = vld [vmem:[#allocation4] sm:$0x3] }
 0xa00   : > { %3051 = vmatmul.msk.f32.vlgmr.msra.gmra.mxu1 %vm544_vm2, %v1847_v57 }
 0xa05   : > { %v1545_v19 = vpop.permute.xlu0 %1544 }
 0xa06   : > { %1547 = vst.msk [vmem:[#allocation2 - $0x3] sm:$0x18] %vm1538_vm11, %v1545_v19 }
 0xa0d   : > { %v1682_v17 = vpop.permute.xlu0 %1681  ;;  %v1703_v20 = vld [vmem:[#allocation2] sm:$0x3] }
 0xa0e   : > { %1685 = vst.msk [vmem:[#allocation5 - $0x4] sm:$0x30] %vm1684_vm12, %v1682_v17  ;;  %3048 = vmatmul.msk.f32.vlgmr.msra.gmra.mxu0 %vm544_vm2, %v1703_v20 }
 0xa15   : > { %v4303_v47 = vld [vmem:[#allocation5] sm:$0x3] }
 0xa16   : > { %v1925_v48 = vrot.slane %v4303_v47, 6 }
 0xa7d   : > { %v1872_v22 = vpop.f32.mrf.mxu1 }
 0xa7e   : > { %v1877_v23 = vrot.slane %v1872_v22, 6  ;;  %v1876_v12 = vrot.slane %v1872_v22, 5 }
 0xa80   : > { %v1881_v25 = vadd.f32 %v1877_v23, %v4057_v40  ;;  %v1880_v38 = vadd.f32 %v1876_v12, %v4054_v34 }
 0xa82   : > { %3347 = vtanh.f32 %v1881_v25  ;;  %v3053_v50 = vmul.f32 -1.442695, %v1881_v25  ;;  %v3052_v61 = vmul.f32 -1.442695, %v1880_v38 }
 0xa88   : > { %v3348_v26 = vpop.eup %3347 }
 0xa89   : > { %1938 = vrot.lane.b32.xlu0 %v3348_v26, %s3787_s15 }
 0xa8b   : > { %v1728_v27 = vpop.f32.mrf.mxu0 }
 0xa8c   : > { %v1732_v28 = vrot.slane %v1728_v27, 4  ;;  %v1733_v31 = vrot.slane %v1728_v27, 5 }
 0xa8e   : > { %v1736_v32 = vadd.f32 %v1732_v28, %v4049_v29  ;;  %v1737_v33 = vadd.f32 %v1733_v31, %v4051_v30 }
 0xa90   : > { %3349 = vtanh.f32 %v1736_v32  ;;  %v3049_v49 = vmul.f32 -1.442695, %v1736_v32  ;;  %v3050_v58 = vmul.f32 -1.442695, %v1737_v33 }
 0xa91   : > { %3351 = vtanh.f32 %v1737_v33  ;;  %1782 = vrot.lane.b32.xlu0 %v1780_v37, %s3787_s15 }
 0xa92   : > { %3353 = vtanh.f32 %v1880_v38 }
 0xa93   : > { %3355 = vpow2.f32 %v3049_v49 }
 0xa94   : > { %3357 = vpow2.f32 %v3053_v50 }
 0xa96   : > { %v3350_v39 = vpop.eup %3349 }
 0xa97   : > { %v3352_v42 = vpop.eup %3351  ;;  %1792 = vrot.lane.b32.xlu2 %v3350_v39, %s3787_s15 }
 0xa98   : > { %1794 = vrot.lane.b32.xlu1 %v3352_v42, %s3787_s15  ;;  %v3354_v46 = vpop.eup %3353 }
 0xa99   : > { %v3356_v41 = vpop.eup %3355 }
 0xa9a   : > { %v1744_v43 = vadd.f32 1.0, %v3356_v41  ;;  %v3358_v55 = vpop.eup %3357 }
 0xa9b   : > { %v1889_v52 = vadd.f32 1.0, %v3358_v55 }
 0xa9c   : > { %3359 = vrcp.f32 %v1744_v43  ;;  %v1757_v54 = vand.u32 2147483648, %v1744_v43  ;;  %vm1751_vm10 = vweird.f32 %v1744_v43  ;;  %v1755_v4 = vand.u32 2147483647, %v1744_v43 }
 0xa9d   : > { %3361 = vrcp.f32 %v1889_v52  ;;  %v1916_v19 = vand.u32 2147483648, %v1889_v52  ;;  %v1914_v17 = vand.u32 2147483647, %v1889_v52 }
 0xa9e   : > { %3363 = vpow2.f32 %v3050_v58  ;;  %v1758_v9 = vor.u32 1.1754944e-38, %v1757_v54  ;;  %vm1756_vm0 = vcmp.eq.f32.partialorder %v1755_v4, 8.507059e+37 }
 0xa9f   : > { %1784 = vrot.lane.b32.xlu2 %v1781_v44, %s3787_s15  ;;  %3365 = vpow2.f32 %v3052_v61  ;;  %v1917_v23 = vor.u32 1.1754944e-38, %v1916_v19 }
 0xaa0   : > { %1936 = vrot.lane.b32.xlu1 %v3354_v46, %s3787_s15 }
 0xaa2   : > { %v3360_v56 = vpop.eup %3359 }
 0xaa3   : > { %v1747_v59 = vmul.f32 %v3360_v56, %v1744_v43  ;;  %v3362_v62 = vpop.eup %3361  ;;  %vm1752_vm7 = vweird.f32 %v3360_v56 }
 0xaa4   : > { %v3364_v51 = vpop.eup %3363  ;;  %v1906_v2 = vmul.f32 %v3362_v62, %v1889_v52  ;;  %vm1753_vm5 = vmor %vm1751_vm10, %vm1752_vm7  ;;  %vm1911_vm13 = vweird.f32 %v3362_v62  ;;  %vm1910_vm7 = vweird.f32 %v1889_v52 }
 0xaa5   : > { %v1748_v60 = vsub.f32 1.0, %v1747_v59  ;;  %v1745_v0 = vadd.f32 1.0, %v3364_v51  ;;  %v3366_v8 = vpop.eup %3365  ;;  %vm1912_vm10 = vmor %vm1910_vm7, %vm1911_vm13  ;;  %v1924_v59 = vrot.slane %v4303_v47, 5 }
 0xaa6   : > { %v1907_v6 = vsub.f32 1.0, %v1906_v2  ;;  %v1888_v3 = vadd.f32 1.0, %v3366_v8 }
 0xaa7   : > { %1928 = vrot.lane.b32.xlu2 %v1925_v48, %s3787_s15  ;;  %v1749_v63 = vmul.f32 %v3360_v56, %v1748_v60  ;;  %3367 = vrcp.f32 %v1745_v0  ;;  %v1772_v12 = vand.u32 2147483648, %v1745_v0  ;;  %vm1766_vm14 = vweird.f32 %v1745_v0 }
 0xaa8   : > { %v1908_v14 = vmul.f32 %v3362_v62, %v1907_v6  ;;  %3369 = vrcp.f32 %v1888_v3  ;;  %v1770_v37 = vand.u32 2147483647, %v1745_v0  ;;  %v1901_v41 = vand.u32 2147483648, %v1888_v3 }
 0xaa9   : > { %v1750_v1 = vadd.f32 %v3360_v56, %v1749_v63  ;;  %v1773_v42 = vor.u32 1.1754944e-38, %v1772_v12  ;;  %v1899_v50 = vand.u32 2147483647, %v1888_v3 }
 0xaaa   : > { %v1909_v18 = vadd.f32 %v3362_v62, %v1908_v14  ;;  %vm1771_vm7 = vcmp.eq.f32.partialorder %v1770_v37, 8.507059e+37  ;;  %v1902_v55 = vor.u32 1.1754944e-38, %v1901_v41 }
 0xaab   : > { %v1754_v5 = vsel %vm1753_vm5, %v3360_v56, %v1750_v1  ;;  %vm1900_vm9 = vcmp.eq.f32.partialorder %v1899_v50, 8.507059e+37 }
 0xaac   : > { %v4307_v10 = vsel %vm1756_vm0, %v1758_v9, %v1754_v5  ;;  %v1913_v20 = vsel %vm1912_vm10, %v3362_v62, %v1909_v18  ;;  %vm1915_vm0 = vcmp.eq.f32.partialorder %v1914_v17, 8.507059e+37 }
 0xaad   : > { %v3368_v15 = vpop.eup %3367  ;;  %v4311_v27 = vsel %vm1915_vm0, %v1917_v23, %v1913_v20  ;;  %vm1895_vm0 = vweird.f32 %v1888_v3 }
 0xaae   : > { %v1762_v57 = vmul.f32 %v3368_v15, %v1745_v0  ;;  %v3370_v25 = vpop.eup %3369  ;;  %vm1767_vm5 = vweird.f32 %v3368_v15 }
 0xaaf   : > { %v1891_v32 = vmul.f32 %v3370_v25, %v1888_v3  ;;  %vm1768_vm13 = vmor %vm1766_vm14, %vm1767_vm5  ;;  %vm1896_vm10 = vweird.f32 %v3370_v25 }
 0xab0   : > { %v1763_v22 = vsub.f32 1.0, %v1762_v57  ;;  %vm1897_vm8 = vmor %vm1895_vm0, %vm1896_vm10 }
 0xab1   : > { %v1892_v36 = vsub.f32 1.0, %v1891_v32 }
 0xab2   : > { %v1764_v31 = vmul.f32 %v3368_v15, %v1763_v22 }
 0xab3   : > { %v1893_v39 = vmul.f32 %v3370_v25, %v1892_v36 }
 0xab4   : > { %v1765_v33 = vadd.f32 %v3368_v15, %v1764_v31 }
 0xab5   : > { %v1894_v49 = vadd.f32 %v3370_v25, %v1893_v39 }
 0xab6   : > { %v1769_v38 = vsel %vm1768_vm13, %v3368_v15, %v1765_v33 }
 0xab7   : > { %v1774_v44 = vsel %vm1771_vm7, %v1773_v42, %v1769_v38  ;;  %v1898_v43 = vsel %vm1897_vm8, %v3370_v25, %v1894_v49 }
 0xab8   : > { %v1903_v56 = vsel %vm1900_vm9, %v1902_v55, %v1898_v43 }
 0xaf1   : > { %v1793_v11 = vpop.permute.xlu2 %1792 }
 0xaf2   : > { %v1798_v13 = vmul.f32 %v1793_v11, %v4307_v10 }
 0xaf4   : > { %1802 = vrot.lane.b32.xlu0 %v1798_v13, %s3787_s15 }
 0xaf9   : > { %v1785_v60 = vpop.permute.xlu2 %1784 }
 0xafa   : > { %v1789_v5 = vmul.f32 %v1785_v60, %v1774_v44 }
 0xafb   : > { %v1939_v26 = vpop.permute.xlu0 %1938 }
 0xafc   : > { %v1943_v28 = vmul.f32 %v1939_v26, %v4311_v27 }
 0xafe   : > { %1948 = vrot.lane.b32.xlu2 %v1943_v28, %s3787_s15 }
 0xb01   : > { %v1929_v61 = vpop.permute.xlu2 %1928 }
 0xb02   : > { %v1933_v62 = vmul.f32 %v1929_v61, %v4311_v27 }
 0xb03   : > { %v1783_v0 = vpop.permute.xlu0 %1782 }
 0xb04   : > { %v1788_v2 = vmul.f32 %v1783_v0, %v4307_v10 }
 0xb0a   : > { %v1795_v46 = vpop.permute.xlu1 %1794 }
 0xb0b   : > { %v1799_v48 = vmul.f32 %v1795_v46, %v1774_v44 }
 0xb0d   : > { %1804 = vrot.lane.b32.xlu1 %v1799_v48, %s3787_s15 }
 0xb12   : > { %v1937_v52 = vpop.permute.xlu1 %1936 }
 0xb13   : > { %v1942_v58 = vmul.f32 %v1937_v52, %v1903_v56 }
 0xb15   : > { %1926 = vrot.lane.b32.xlu1 %v1924_v59, %s3787_s15  ;;  %1946 = vrot.lane.b32.xlu0 %v1942_v58, %s3787_s15 }
 0xb58   : > { %v1949_v63 = vpop.permute.xlu2 %1948 }
 0xb59   : > { %v1953_v51 = vadd.f32 %v1949_v63, %v1933_v62 }
 0xb5b   : > { %3371 = vtanh.f32 %v1953_v51  ;;  %v1968_v14 = vrot.slane %v1953_v51, 7 }
 0xb61   : > { %v3372_v1 = vpop.eup %3371 }
 0xb62   : > { %1960 = vrot.lane.b32.xlu0 %v3372_v1, %s3787_s15 }
 0xb66   : > { %v1803_v54 = vpop.permute.xlu0 %1802 }
 0xb67   : > { %v1808_v4 = vadd.f32 %v1803_v54, %v1788_v2 }
 0xb69   : > { %3373 = vtanh.f32 %v1808_v4 }
 0xb6f   : > { %v3374_v47 = vpop.eup %3373 }
 0xb70   : > { %1814 = vrot.lane.b32.xlu2 %v3374_v47, %s3787_s15 }
 0xb7f   : > { %v1805_v6 = vpop.permute.xlu1 %1804 }
 0xb80   : > { %v1809_v8 = vadd.f32 %v1805_v6, %v1789_v5 }
 0xb82   : > { %3375 = vtanh.f32 %v1809_v8  ;;  %v1824_v19 = vrot.slane %v1809_v8, 7 }
 0xb84   : > { %v1825_v17 = vsel %vm1679_vm15, %v1824_v19, %v1808_v4 }
 0xb87   : > { %v1927_v9 = vpop.permute.xlu1 %1926  ;;  %v1947_v13 = vpop.permute.xlu0 %1946 }
 0xb88   : > { %v3376_v11 = vpop.eup %3375  ;;  %v1932_v3 = vmul.f32 %v1927_v9, %v1903_v56 }
 0xb89   : > { %1816 = vrot.lane.b32.xlu1 %v3376_v11, %s3787_s15 }
 0xb8a   : > { %v1952_v15 = vadd.f32 %v1947_v13, %v1932_v3 }
 0xb8c   : > { %3377 = vtanh.f32 %v1952_v15  ;;  %v1969_v18 = vsel %vm1533_vm6, %v1968_v14, %v1952_v15 }
 0xb92   : > { %v3378_v57 = vpop.eup %3377 }
 0xb93   : > { %1958 = vrot.lane.b32.xlu1 %v3378_v57, %s3787_s15 }
 0xb9b   : > { %1826 = vrot.lane.b32.xlu1 %v1825_v17, %s3789_s3 }
 0xbca   : > { %v1815_v20 = vpop.permute.xlu2 %1814 }
 0xbcb   : > { %v1820_v22 = vmul.f32 %v1815_v20, %v4307_v10 }
 0xbcd   : > { %v1839_v26 = vrot.slane %v1820_v22, 4 }
 0xbd4   : > { %v1961_v32 = vpop.permute.xlu0 %1960 }
 0xbd5   : > { %v1965_v12 = vmul.f32 %v1961_v32, %v4311_v27 }
 0xbd7   : > { %v1976_v38 = vrot.slane %v1965_v12, 7  ;;  %v1984_v42 = vrot.slane %v1965_v12, 2 }
 0xbfb   : > { %v1817_v23 = vpop.permute.xlu1 %1816 }
 0xbfc   : > { %v1821_v25 = vmul.f32 %v1817_v23, %v1774_v44 }
 0xbfe   : > { %v1832_v28 = vrot.slane %v1821_v25, 7  ;;  %v1840_v31 = vrot.slane %v1821_v25, 3 }
 0xc00   : > { %v1833_v33 = vsel %vm1679_vm15, %v1832_v28, %v1820_v22  ;;  %v4331_v36 = vsel %vm660_vm4, %v1840_v31, %v1839_v26 }
 0xc01   : > { %1834 = vrot.lane.b32.xlu2 %v1833_v33, %s3788_s23 }
 0xc05   : > { %v1959_v37 = vpop.permute.xlu1 %1958 }
 0xc06   : > { %v1964_v39 = vmul.f32 %v1959_v37, %v1903_v56 }
 0xc08   : > { %v1983_v10 = vrot.slane %v1964_v39, 3  ;;  %v1977_v44 = vsel %vm1533_vm6, %v1976_v38, %v1964_v39 }
 0xc09   : > { %1978 = vrot.lane.b32.xlu0 %v1977_v44, %s3788_s23  ;;  %1970 = vrot.lane.b32.xlu2 %v1969_v18, %s3789_s3 }
 0xc0a   : > { %v4339_v46 = vsel %vm660_vm4, %v1984_v42, %v1983_v10 }
 0xc0d   : > { %v1827_v48 = vpop.permute.xlu1 %1826 }
 0xc0e   : > { %1829 = vst.msk [vmem:[#allocation3 - $0x4] sm:$0x30] %vm1684_vm12, %v1827_v48 }
 0xc15   : > { %v2066_v62 = vld [vmem:[#allocation3] sm:$0x3] }
 0xc16   : > { %v2069_v63 = vrot.slane %v2066_v62, 4  ;;  %v2068_v8 = vrot.slane %v2066_v62, 3 }
 0xc5b   : > { %v1835_v49 = vpop.permute.xlu2 %1834 }
 0xc5c   : > { %1837 = vst.msk [vmem:[#allocation2 - $0x4] sm:$0x30] %vm1684_vm12, %v1835_v49 }
 0xc63   : > { %v1971_v27 = vpop.permute.xlu2 %1970  ;;  %v1991_v41 = vld [vmem:[#allocation2] sm:$0x3] }
 0xc64   : > { %1973 = vst.msk [vmem:[#allocation5 - $0x3] sm:$0x18] %vm1538_vm11, %v1971_v27  ;;  %3054 = vmatmul.msk.f32.vlgmr.msrb.gmra.mxu2 %vm544_vm2, %v1991_v41 }
 0xc6b   : > { %v4352_v51 = vld [vmem:[#allocation5] sm:$0x3] }
 0xc6c   : > { %v2213_v0 = vrot.slane %v4352_v51, 7 }
 0xc7b   : > { %v1979_v50 = vpop.permute.xlu0 %1978 }
 0xc7c   : > { %1981 = vst.msk [vmem:[#allocation4 - $0x3] sm:$0x18] %vm1538_vm11, %v1979_v50 }
 0xc83   : > { %v2135_v43 = vld [vmem:[#allocation4] sm:$0x3] }
 0xc84   : > { %3057 = vmatmul.msk.f32.vlgmr.msrb.gmra.mxu3 %vm544_vm2, %v2135_v43 }
 0xce7   : > { %v2016_v55 = vpop.f32.mrf.mxu2 }
 0xce8   : > { %v2020_v56 = vrot.slane %v2016_v55, 3  ;;  %v2021_v52 = vrot.slane %v2016_v55, 4 }
 0xcea   : > { %v2024_v58 = vadd.f32 %v2020_v56, %v4049_v29  ;;  %v2025_v59 = vadd.f32 %v2021_v52, %v4051_v30 }
 0xcec   : > { %3379 = vtanh.f32 %v2024_v58  ;;  %v3055_v9 = vmul.f32 -1.442695, %v2024_v58  ;;  %v3056_v11 = vmul.f32 -1.442695, %v2025_v59 }
 0xced   : > { %3381 = vtanh.f32 %v2025_v59 }
 0xcf2   : > { %v3380_v60 = vpop.eup %3379 }
 0xcf3   : > { %v3382_v61 = vpop.eup %3381  ;;  %2080 = vrot.lane.b32.xlu1 %v3380_v60, %s3787_s15 }
 0xcf4   : > { %2082 = vrot.lane.b32.xlu0 %v3382_v61, %s3787_s15 }
 0xcfb   : > { %2072 = vrot.lane.b32.xlu1 %v2069_v63, %s3787_s15 }
 0xd03   : > { %2216 = vrot.lane.b32.xlu1 %v2213_v0, %s3787_s15 }
 0xd07   : > { %v2160_v1 = vpop.f32.mrf.mxu3 }
 0xd08   : > { %v2164_v2 = vrot.slane %v2160_v1, 6  ;;  %v2165_v54 = vrot.slane %v2160_v1, 7 }
 0xd0a   : > { %v2168_v4 = vadd.f32 %v2164_v2, %v4054_v34  ;;  %v2169_v47 = vadd.f32 %v2165_v54, %v4057_v40 }
 0xd0c   : > { %3383 = vtanh.f32 %v2168_v4  ;;  %v3059_v3 = vmul.f32 -1.442695, %v2169_v47  ;;  %v3058_v31 = vmul.f32 -1.442695, %v2168_v4 }
 0xd0d   : > { %3385 = vtanh.f32 %v2169_v47 }
 0xd0e   : > { %3387 = vpow2.f32 %v3055_v9 }
 0xd0f   : > { %3389 = vpow2.f32 %v3056_v11 }
 0xd10   : > { %3391 = vpow2.f32 %v3059_v3 }
 0xd12   : > { %v3384_v5 = vpop.eup %3383 }
 0xd13   : > { %v3386_v6 = vpop.eup %3385  ;;  %2224 = vrot.lane.b32.xlu0 %v3384_v5, %s3787_s15 }
 0xd14   : > { %2226 = vrot.lane.b32.xlu2 %v3386_v6, %s3787_s15  ;;  %v3388_v13 = vpop.eup %3387 }
 0xd15   : > { %v3390_v14 = vpop.eup %3389  ;;  %v2032_v15 = vadd.f32 1.0, %v3388_v13 }
 0xd16   : > { %v2033_v18 = vadd.f32 1.0, %v3390_v14  ;;  %v3392_v57 = vpop.eup %3391 }
 0xd17   : > { %3393 = vrcp.f32 %v2032_v15  ;;  %v2177_v19 = vadd.f32 1.0, %v3392_v57  ;;  %v2045_v39 = vand.u32 2147483648, %v2032_v15  ;;  %vm2039_vm9 = vweird.f32 %v2032_v15 }
 0xd18   : > { %3395 = vrcp.f32 %v2033_v18  ;;  %v2060_v10 = vand.u32 2147483648, %v2033_v18  ;;  %v2043_v44 = vand.u32 2147483647, %v2032_v15  ;;  %vm2054_vm15 = vweird.f32 %v2033_v18 }
 0xd19   : > { %3397 = vrcp.f32 %v2177_v19  ;;  %v2058_v48 = vand.u32 2147483647, %v2033_v18  ;;  %v2046_v50 = vor.u32 1.1754944e-38, %v2045_v39  ;;  %v2204_v0 = vand.u32 2147483648, %v2177_v19 }
 0xd1a   : > { %3399 = vpow2.f32 %v3058_v31  ;;  %v2061_v55 = vor.u32 1.1754944e-38, %v2060_v10  ;;  %vm2044_vm12 = vcmp.eq.f32.partialorder %v2043_v44, 8.507059e+37  ;;  %vm2198_vm7 = vweird.f32 %v2177_v19 }
 0xd1b   : > { %vm2059_vm5 = vcmp.eq.f32.partialorder %v2058_v48, 8.507059e+37  ;;  %v2202_v1 = vand.u32 2147483647, %v2177_v19  ;;  %v2205_v54 = vor.u32 1.1754944e-38, %v2204_v0 }
 0xd1c   : > { %2070 = vrot.lane.b32.xlu2 %v2068_v8, %s3787_s15  ;;  %v2212_v8 = vrot.slane %v4352_v51, 6 }
 0xd1d   : > { %v3394_v17 = vpop.eup %3393  ;;  %vm2203_vm0 = vcmp.eq.f32.partialorder %v2202_v1, 8.507059e+37 }
 0xd1e   : > { %v3396_v20 = vpop.eup %3395  ;;  %v2035_v22 = vmul.f32 %v3394_v17, %v2032_v15  ;;  %vm2040_vm14 = vweird.f32 %v3394_v17 }
 0xd1f   : > { %v2050_v23 = vmul.f32 %v3396_v20, %v2033_v18  ;;  %v3398_v28 = vpop.eup %3397  ;;  %vm2055_vm8 = vweird.f32 %v3396_v20  ;;  %vm2041_vm6 = vmor %vm2039_vm9, %vm2040_vm14 }
 0xd20   : > { %v2036_v25 = vsub.f32 1.0, %v2035_v22  ;;  %v2194_v12 = vmul.f32 %v3398_v28, %v2177_v19  ;;  %v3400_v49 = vpop.eup %3399  ;;  %vm2056_vm11 = vmor %vm2054_vm15, %vm2055_vm8  ;;  %vm2199_vm13 = vweird.f32 %v3398_v28 }
 0xd21   : > { %v2051_v26 = vsub.f32 1.0, %v2050_v23  ;;  %v2176_v56 = vadd.f32 1.0, %v3400_v49  ;;  %vm2200_vm10 = vmor %vm2198_vm7, %vm2199_vm13 }
 0xd22   : > { %v2037_v32 = vmul.f32 %v3394_v17, %v2036_v25  ;;  %v2195_v42 = vsub.f32 1.0, %v2194_v12 }
 0xd23   : > { %v2052_v33 = vmul.f32 %v3396_v20, %v2051_v26  ;;  %3401 = vrcp.f32 %v2176_v56  ;;  %v2189_v14 = vand.u32 2147483648, %v2176_v56  ;;  %vm2183_vm8 = vweird.f32 %v2176_v56 }
 0xd24   : > { %v2038_v37 = vadd.f32 %v3394_v17, %v2037_v32  ;;  %v2196_v43 = vmul.f32 %v3398_v28, %v2195_v42  ;;  %v2187_v15 = vand.u32 2147483647, %v2176_v56 }
 0xd25   : > { %v2053_v38 = vadd.f32 %v3396_v20, %v2052_v33  ;;  %v2190_v57 = vor.u32 1.1754944e-38, %v2189_v14  ;;  %v2427_v14 = vld [vmem:[#allocation17 + $0x18] sm:$0xff] }
 0xd26   : > { %v2042_v27 = vsel %vm2041_vm6, %v3394_v17, %v2038_v37  ;;  %v2197_v63 = vadd.f32 %v3398_v28, %v2196_v43  ;;  %vm2188_vm15 = vcmp.eq.f32.partialorder %v2187_v15, 8.507059e+37  ;;  %v2426_v15 = vld [vmem:[#allocation17 + $0x10] sm:$0xff]  ;;  %2443 = vmatpush.msrb.mxu1 %v2427_v14  ;;  %2734 = vmatpush.msra.mxu3 %v2427_v14 }
 0xd27   : > { %v2057_v41 = vsel %vm2056_vm11, %v3396_v20, %v2053_v38  ;;  %v4361_v58 = vsel %vm2044_vm12, %v2046_v50, %v2042_v27 }
 0xd28   : > { %v4363_v60 = vsel %vm2059_vm5, %v2061_v55, %v2057_v41  ;;  %v2201_v2 = vsel %vm2200_vm10, %v3398_v28, %v2197_v63  ;;  %2444 = vmatpush.msrb.mxu1 %v2426_v15  ;;  %2735 = vmatpush.msra.mxu3 %v2426_v15 }
 0xd29   : > { %v4369_v4 = vsel %vm2203_vm0, %v2205_v54, %v2201_v2  ;;  %v3402_v5 = vpop.eup %3401 }
 0xd2a   : > { %v2179_v9 = vmul.f32 %v3402_v5, %v2176_v56  ;;  %vm2184_vm14 = vweird.f32 %v3402_v5 }
 0xd2b   : > { %vm2185_vm9 = vmor %vm2183_vm8, %vm2184_vm14 }
 0xd2c   : > { %v2180_v11 = vsub.f32 1.0, %v2179_v9 }
 0xd2e   : > { %v2181_v3 = vmul.f32 %v3402_v5, %v2180_v11 }
 0xd30   : > { %v2182_v13 = vadd.f32 %v3402_v5, %v2181_v3 }
 0xd32   : > { %v2186_v18 = vsel %vm2185_vm9, %v3402_v5, %v2182_v13 }
 0xd33   : > { %v2191_v19 = vsel %vm2188_vm15, %v2190_v57, %v2186_v18  ;;  %v2424_v18 = vld [vmem:[#allocation17] sm:$0xff]  ;;  %v2283_v57 = vld [vmem:[#allocation16 + $0x18] sm:$0xff] }
 0xd34   : > { %2299 = vmatpush.msrb.mxu0 %v2283_v57  ;;  %2584 = vmatpush.msra.mxu2 %v2283_v57 }
 0xd65   : > { %v2081_v52 = vpop.permute.xlu1 %2080 }
 0xd66   : > { %v2083_v59 = vpop.permute.xlu0 %2082  ;;  %v2086_v61 = vmul.f32 %v2081_v52, %v4361_v58 }
 0xd67   : > { %v2087_v62 = vmul.f32 %v2083_v59, %v4363_v60 }
 0xd68   : > { %2090 = vrot.lane.b32.xlu2 %v2086_v61, %s3787_s15 }
 0xd69   : > { %2092 = vrot.lane.b32.xlu0 %v2087_v62, %s3787_s15 }
 0xd6d   : > { %v2073_v28 = vpop.permute.xlu1 %2072 }
 0xd6e   : > { %v2227_v47 = vpop.permute.xlu2 %2226  ;;  %v2077_v31 = vmul.f32 %v2073_v28, %v4363_v60 }
 0xd6f   : > { %v2231_v6 = vmul.f32 %v2227_v47, %v4369_v4 }
 0xd71   : > { %2214 = vrot.lane.b32.xlu0 %v2212_v8, %s3787_s15  ;;  %2236 = vrot.lane.b32.xlu1 %v2231_v6, %s3787_s15 }
 0xd75   : > { %v2217_v32 = vpop.permute.xlu1 %2216 }
 0xd76   : > { %v2071_v51 = vpop.permute.xlu2 %2070  ;;  %v2221_v37 = vmul.f32 %v2217_v32, %v4369_v4 }
 0xd77   : > { %v2076_v22 = vmul.f32 %v2071_v51, %v4361_v58 }
 0xd85   : > { %v2225_v17 = vpop.permute.xlu0 %2224 }
 0xd86   : > { %v2230_v20 = vmul.f32 %v2225_v17, %v2191_v19  ;;  %v2281_v17 = vld [vmem:[#allocation16 + $0x8] sm:$0xff] }
 0xd88   : > { %2234 = vrot.lane.b32.xlu2 %v2230_v20, %s3787_s15  ;;  %v2280_v20 = vld [vmem:[#allocation16] sm:$0xff] }
 0xdc2   : > { %v2091_v23 = vpop.permute.xlu2 %2090 }
 0xdc3   : > { %v2096_v25 = vadd.f32 %v2091_v23, %v2076_v22 }
 0xdc5   : > { %3403 = vtanh.f32 %v2096_v25 }
 0xdcb   : > { %v3404_v26 = vpop.eup %3403 }
 0xdcc   : > { %2102 = vrot.lane.b32.xlu1 %v3404_v26, %s3787_s15 }
 0xddb   : > { %v2093_v33 = vpop.permute.xlu0 %2092 }
 0xddc   : > { %v2097_v12 = vadd.f32 %v2093_v33, %v2077_v31 }
 0xdde   : > { %3405 = vtanh.f32 %v2097_v12  ;;  %v2112_v55 = vrot.slane %v2097_v12, 7 }
 0xde0   : > { %v2113_v56 = vsel %vm1387_vm1, %v2112_v55, %v2096_v25 }
 0xde2   : > { %v2235_v48 = vpop.permute.xlu2 %2234 }
 0xde3   : > { %v2215_v38 = vpop.permute.xlu0 %2214  ;;  %v2237_v39 = vpop.permute.xlu1 %2236 }
 0xde4   : > { %v3406_v42 = vpop.eup %3405  ;;  %v2220_v10 = vmul.f32 %v2215_v38, %v2191_v19  ;;  %v2241_v44 = vadd.f32 %v2237_v39, %v2221_v37 }
 0xde5   : > { %2104 = vrot.lane.b32.xlu0 %v3406_v42, %s3787_s15 }
 0xde6   : > { %3407 = vtanh.f32 %v2241_v44  ;;  %v2256_v49 = vrot.slane %v2241_v44, 7  ;;  %v2240_v27 = vadd.f32 %v2235_v48, %v2220_v10 }
 0xde8   : > { %3409 = vtanh.f32 %v2240_v27  ;;  %v2257_v41 = vsel %vm1241_vm3, %v2256_v49, %v2240_v27 }
 0xdec   : > { %v3408_v50 = vpop.eup %3407 }
 0xded   : > { %2248 = vrot.lane.b32.xlu2 %v3408_v50, %s3787_s15 }
 0xdee   : > { %v3410_v43 = vpop.eup %3409 }
 0xdef   : > { %2246 = vrot.lane.b32.xlu0 %v3410_v43, %s3787_s15 }
 0xdf7   : > { %2114 = vrot.lane.b32.xlu0 %v2113_v56, %s3789_s3 }
 0xe3e   : > { %v2103_v52 = vpop.permute.xlu1 %2102 }
 0xe3f   : > { %v2108_v59 = vmul.f32 %v2103_v52, %v4361_v58 }
 0xe41   : > { %v2127_v63 = vrot.slane %v2108_v59, 5 }
 0xe47   : > { %v2249_v2 = vpop.permute.xlu2 %2248 }
 0xe48   : > { %v2253_v5 = vmul.f32 %v2249_v2, %v4369_v4  ;;  %v2425_v4 = vld [vmem:[#allocation17 + $0x8] sm:$0xff] }
 0xe49   : > { %2445 = vmatpush.msrb.mxu1 %v2425_v4  ;;  %2736 = vmatpush.msra.mxu3 %v2425_v4 }
 0xe4a   : > { %v2264_v8 = vrot.slane %v2253_v5, 7  ;;  %v2272_v58 = vrot.slane %v2253_v5, 1 }
 0xe4b   : > { %2446 = vmatpush.msrb.mxu1 %v2424_v18  ;;  %2737 = vmatpush.msra.mxu3 %v2424_v18 }
 0xe57   : > { %v2105_v61 = vpop.permute.xlu0 %2104 }
 0xe58   : > { %v2109_v62 = vmul.f32 %v2105_v61, %v4363_v60 }
 0xe5a   : > { %v2120_v0 = vrot.slane %v2109_v62, 7  ;;  %v2128_v1 = vrot.slane %v2109_v62, 4 }
 0xe5c   : > { %v2121_v54 = vsel %vm1387_vm1, %v2120_v0, %v2108_v59  ;;  %v4390_v47 = vsel %vm660_vm4, %v2128_v1, %v2127_v63  ;;  %vm4632_vm1 = vcmask 260101  }
 0xe5d   : > { %2122 = vrot.lane.b32.xlu1 %v2121_v54, %s3788_s23  ;;  %vm4634_vm6 = vmmov %vm4632_vm1 }
 0xe61   : > { %v2247_v6 = vpop.permute.xlu0 %2246 }
 0xe62   : > { %v2252_v9 = vmul.f32 %v2247_v6, %v2191_v19  ;;  %v2282_v19 = vld [vmem:[#allocation16 + $0x10] sm:$0xff] }
 0xe63   : > { %2300 = vmatpush.msrb.mxu0 %v2282_v19  ;;  %2585 = vmatpush.msra.mxu2 %v2282_v19 }
 0xe64   : > { %v2271_v11 = vrot.slane %v2252_v9, 2  ;;  %v2265_v60 = vsel %vm1241_vm3, %v2264_v8, %v2252_v9  ;;  %vm4633_vm3 = vcmask 257026  }
 0xe65   : > { %2258 = vrot.lane.b32.xlu1 %v2257_v41, %s3789_s3  ;;  %2266 = vrot.lane.b32.xlu2 %v2265_v60, %s3788_s23  ;;  %vm4635_vm11 = vmmov %vm4633_vm3 }
 0xe66   : > { %v4398_v3 = vsel %vm660_vm4, %v2272_v58, %v2271_v11  ;;  %2301 = vmatpush.msrb.mxu0 %v2281_v17  ;;  %2586 = vmatpush.msra.mxu2 %v2281_v17 }
 0xe68   : > { %2302 = vmatpush.msrb.mxu0 %v2280_v20  ;;  %2587 = vmatpush.msra.mxu2 %v2280_v20 }
 0xe69   : > { %v2115_v13 = vpop.permute.xlu0 %2114 }
 0xe6a   : > { %2117 = vst.msk [vmem:[#allocation3 - $0x5] sm:$0x60] %vm4632_vm1, %v2115_v13 }
 0xe71   : > { %v2354_v33 = vld [vmem:[#allocation3] sm:$0x3] }
 0xe72   : > { %v2357_v37 = vrot.slane %v2354_v33, 3  ;;  %v2356_v55 = vrot.slane %v2354_v33, 2 }
 0xebf   : > { %v2267_v51 = vpop.permute.xlu2 %2266 }
 0xec0   : > { %2269 = vst.msk [vmem:[#allocation4 - $0x2] sm:$0xc] %vm4633_vm3, %v2267_v51 }
 0xec7   : > { %v2423_v22 = vld [vmem:[#allocation4] sm:$0x3] }
 0xec8   : > { %3063 = vmatmul.msk.f32.vlgmr.msrb.gmra.mxu1 %vm544_vm2, %v2423_v22 }
 0xecf   : > { %v2123_v23 = vpop.permute.xlu1 %2122 }
 0xed0   : > { %2125 = vst.msk [vmem:[#allocation2 - $0x5] sm:$0x60] %vm4634_vm6, %v2123_v23 }
 0xed7   : > { %v2259_v25 = vpop.permute.xlu1 %2258  ;;  %v2279_v26 = vld [vmem:[#allocation2] sm:$0x3] }
 0xed8   : > { %2261 = vst.msk [vmem:[#allocation5 - $0x2] sm:$0xc] %vm4635_vm11, %v2259_v25  ;;  %3060 = vmatmul.msk.f32.vlgmr.msrb.gmra.mxu0 %vm544_vm2, %v2279_v26 }
 0xedf   : > { %v2497_v41 = vld [vmem:[#allocation5] sm:$0x3] }
 0xee0   : > { %v2499_v43 = vrot.slane %v2497_v41, 7 }
 0xf45   : > { %v2448_v28 = vpop.f32.mrf.mxu1 }
 0xf46   : > { %v2456_v31 = vadd.f32 %v2448_v28, %v4057_v40  ;;  %v2452_v44 = vrot.slane %v2448_v28, 7 }
 0xf48   : > { %3411 = vtanh.f32 %v2456_v31  ;;  %v2455_v48 = vadd.f32 %v2452_v44, %v4054_v34  ;;  %v3065_v52 = vmul.f32 -1.442695, %v2456_v31 }
 0xf4a   : > { %v3064_v59 = vmul.f32 -1.442695, %v2455_v48 }
 0xf4e   : > { %v3412_v32 = vpop.eup %3411 }
 0xf4f   : > { %2512 = vrot.lane.b32.xlu0 %v3412_v32, %s3787_s15 }
 0xf55   : > { %v2304_v12 = vpop.f32.mrf.mxu0 }
 0xf56   : > { %v2308_v38 = vrot.slane %v2304_v12, 2  ;;  %v2309_v39 = vrot.slane %v2304_v12, 3 }
 0xf57   : > { %2360 = vrot.lane.b32.xlu0 %v2357_v37, %s3787_s15 }
 0xf58   : > { %v2312_v42 = vadd.f32 %v2308_v38, %v4049_v29  ;;  %v2313_v10 = vadd.f32 %v2309_v39, %v4051_v30 }
 0xf5a   : > { %3413 = vtanh.f32 %v2312_v42  ;;  %v3062_v56 = vmul.f32 -1.442695, %v2313_v10  ;;  %v3061_v5 = vmul.f32 -1.442695, %v2312_v42 }
 0xf5b   : > { %3415 = vtanh.f32 %v2313_v10 }
 0xf5c   : > { %3417 = vtanh.f32 %v2455_v48 }
 0xf5d   : > { %3419 = vpow2.f32 %v3062_v56 }
 0xf5e   : > { %3421 = vpow2.f32 %v3065_v52 }
 0xf5f   : > { %3423 = vpow2.f32 %v3064_v59 }
 0xf60   : > { %v3414_v49 = vpop.eup %3413 }
 0xf61   : > { %v3416_v27 = vpop.eup %3415  ;;  %2368 = vrot.lane.b32.xlu1 %v3414_v49, %s3787_s15 }
 0xf62   : > { %2370 = vrot.lane.b32.xlu2 %v3416_v27, %s3787_s15  ;;  %v3418_v50 = vpop.eup %3417 }
 0xf63   : > { %v3420_v61 = vpop.eup %3419 }
 0xf64   : > { %v2321_v62 = vadd.f32 1.0, %v3420_v61  ;;  %v3422_v63 = vpop.eup %3421 }
 0xf65   : > { %v3424_v0 = vpop.eup %3423  ;;  %v2464_v1 = vadd.f32 1.0, %v3422_v63 }
 0xf66   : > { %3425 = vrcp.f32 %v2321_v62  ;;  %v2463_v2 = vadd.f32 1.0, %v3424_v0  ;;  %v2348_v19 = vand.u32 2147483648, %v2321_v62  ;;  %vm2342_vm5 = vweird.f32 %v2321_v62 }
 0xf67   : > { %3427 = vrcp.f32 %v2464_v1  ;;  %v2346_v20 = vand.u32 2147483647, %v2321_v62  ;;  %v2491_v26 = vand.u32 2147483648, %v2464_v1  ;;  %vm2485_vm0 = vweird.f32 %v2464_v1 }
 0xf68   : > { %3429 = vrcp.f32 %v2463_v2  ;;  %v2349_v23 = vor.u32 1.1754944e-38, %v2348_v19  ;;  %v2489_v32 = vand.u32 2147483647, %v2464_v1  ;;  %v2476_v39 = vand.u32 2147483648, %v2463_v2 }
 0xf69   : > { %2502 = vrot.lane.b32.xlu1 %v2497_v41, %s3787_s15  ;;  %3431 = vpow2.f32 %v3061_v5  ;;  %vm2347_vm10 = vcmp.eq.f32.partialorder %v2346_v20, 8.507059e+37  ;;  %v2492_v42 = vor.u32 1.1754944e-38, %v2491_v26  ;;  %vm2470_vm9 = vweird.f32 %v2463_v2 }
 0xf6a   : > { %2510 = vrot.lane.b32.xlu2 %v3418_v50, %s3787_s15  ;;  %v2474_v10 = vand.u32 2147483647, %v2463_v2  ;;  %vm2490_vm15 = vcmp.eq.f32.partialorder %v2489_v32, 8.507059e+37  ;;  %v2477_v50 = vor.u32 1.1754944e-38, %v2476_v39 }
 0xf6c   : > { %v3426_v54 = vpop.eup %3425  ;;  %vm2475_vm3 = vcmp.eq.f32.partialorder %v2474_v10, 8.507059e+37 }
 0xf6d   : > { %v2338_v6 = vmul.f32 %v3426_v54, %v2321_v62  ;;  %v3428_v8 = vpop.eup %3427  ;;  %vm2343_vm12 = vweird.f32 %v3426_v54 }
 0xf6e   : > { %v3430_v58 = vpop.eup %3429  ;;  %v2481_v11 = vmul.f32 %v3428_v8, %v2464_v1  ;;  %vm2344_vm13 = vmor %vm2342_vm5, %vm2343_vm12  ;;  %vm2486_vm7 = vweird.f32 %v3428_v8 }
 0xf6f   : > { %v2339_v9 = vsub.f32 1.0, %v2338_v6  ;;  %v3432_v60 = vpop.eup %3431  ;;  %v2466_v14 = vmul.f32 %v3430_v58, %v2463_v2  ;;  %vm2487_vm14 = vmor %vm2485_vm0, %vm2486_vm7  ;;  %vm2471_vm8 = vweird.f32 %v3430_v58  ;;  %vm4637_vm7 = vcmask 1047559  }
 0xf70   : > { %v2482_v15 = vsub.f32 1.0, %v2481_v11  ;;  %v2320_v4 = vadd.f32 1.0, %v3432_v60  ;;  %vm2472_vm1 = vmor %vm2470_vm9, %vm2471_vm8  ;;  %vm4639_vm0 = vcmask 261126   ;;  %vm4641_vm8 = vcmask 256001  }
 0xf71   : > { %2500 = vrot.lane.b32.xlu1 %v2499_v43, %s3787_s15  ;;  %v2340_v13 = vmul.f32 %v3426_v54, %v2339_v9  ;;  %v2467_v57 = vsub.f32 1.0, %v2466_v14  ;;  %vm4642_vm9 = vmmov %vm4639_vm0 }
 0xf72   : > { %2358 = vrot.lane.b32.xlu2 %v2356_v55, %s3787_s15  ;;  %v2483_v17 = vmul.f32 %v3428_v8, %v2482_v15  ;;  %3433 = vrcp.f32 %v2320_v4  ;;  %v2333_v62 = vand.u32 2147483648, %v2320_v4  ;;  %vm2327_vm11 = vweird.f32 %v2320_v4 }
 0xf73   : > { %v2341_v18 = vadd.f32 %v3426_v54, %v2340_v13  ;;  %v2468_v22 = vmul.f32 %v3430_v58, %v2467_v57  ;;  %v2331_v63 = vand.u32 2147483647, %v2320_v4 }
 0xf74   : > { %v2484_v25 = vadd.f32 %v3428_v8, %v2483_v17  ;;  %v2334_v1 = vor.u32 1.1754944e-38, %v2333_v62 }
 0xf75   : > { %v2345_v51 = vsel %vm2344_vm13, %v3426_v54, %v2341_v18  ;;  %v2469_v37 = vadd.f32 %v3430_v58, %v2468_v22  ;;  %vm2332_vm5 = vcmp.eq.f32.partialorder %v2331_v63, 8.507059e+37  ;;  %vm4636_vm13 = vcmask 1042434  }
 0xf76   : > { %v4418_v28 = vsel %vm2347_vm10, %v2349_v23, %v2345_v51  ;;  %v2488_v38 = vsel %vm2487_vm14, %v3428_v8, %v2484_v25  ;;  %vm4638_vm10 = vmmov %vm4636_vm13 }
 0xf77   : > { %v2493_v49 = vsel %vm2490_vm15, %v2492_v42, %v2488_v38  ;;  %v2473_v27 = vsel %vm2472_vm1, %v3430_v58, %v2469_v37  ;;  %vm4640_vm14 = vmmov %vm4637_vm7 }
 0xf78   : > { %v3434_v33 = vpop.eup %3433  ;;  %v2478_v43 = vsel %vm2475_vm3, %v2477_v50, %v2473_v27  ;;  %vm4643_vm15 = vmmov %vm4641_vm8 }
 0xf79   : > { %v2323_v44 = vmul.f32 %v3434_v33, %v2320_v4  ;;  %vm2328_vm6 = vweird.f32 %v3434_v33 }
 0xf7a   : > { %vm2329_vm12 = vmor %vm2327_vm11, %vm2328_vm6 }
 0xf7b   : > { %v2324_v56 = vsub.f32 1.0, %v2323_v44 }
 0xf7d   : > { %v2325_v59 = vmul.f32 %v3434_v33, %v2324_v56 }
 0xf7f   : > { %v2326_v61 = vadd.f32 %v3434_v33, %v2325_v59 }
 0xf81   : > { %v2330_v0 = vsel %vm2329_vm12, %v3434_v33, %v2326_v61 }
 0xf82   : > { %v2335_v2 = vsel %vm2332_vm5, %v2334_v1, %v2330_v0 }
 0xfbc   : > { %v2371_v31 = vpop.permute.xlu2 %2370 }
 0xfbd   : > { %v2375_v12 = vmul.f32 %v2371_v31, %v4418_v28 }
 0xfbf   : > { %2380 = vrot.lane.b32.xlu0 %v2375_v12, %s3787_s15 }
 0xfc1   : > { %v2513_v48 = vpop.permute.xlu0 %2512 }
 0xfc2   : > { %v2517_v41 = vmul.f32 %v2513_v48, %v2493_v49 }
 0xfc4   : > { %v2511_v55 = vpop.permute.xlu2 %2510  ;;  %2522 = vrot.lane.b32.xlu2 %v2517_v41, %s3787_s15 }
 0xfc5   : > { %v2516_v52 = vmul.f32 %v2511_v55, %v2478_v43 }
 0xfc7   : > { %2520 = vrot.lane.b32.xlu1 %v2516_v52, %s3787_s15 }
 0xfc9   : > { %v2361_v13 = vpop.permute.xlu0 %2360 }
 0xfca   : > { %v2365_v14 = vmul.f32 %v2361_v13, %v4418_v28 }
 0xfcc   : > { %v2359_v6 = vpop.permute.xlu2 %2358 }
 0xfcd   : > { %v2364_v25 = vmul.f32 %v2359_v6, %v2335_v2 }
 0xfd3   : > { %v2369_v54 = vpop.permute.xlu1 %2368 }
 0xfd4   : > { %v2374_v5 = vmul.f32 %v2369_v54, %v2335_v2 }
 0xfd6   : > { %2378 = vrot.lane.b32.xlu0 %v2374_v5, %s3787_s15 }
 0xfdb   : > { %v2503_v8 = vpop.permute.xlu1 %2502 }
 0xfdc   : > { %v2507_v9 = vmul.f32 %v2503_v8, %v2493_v49 }
 0xfe3   : > { %v2501_v15 = vpop.permute.xlu1 %2500 }
 0xfe4   : > { %v2506_v57 = vmul.f32 %v2501_v15, %v2478_v43 }
0x101e   : > { %v2523_v58 = vpop.permute.xlu2 %2522 }
0x101f   : > { %v2527_v11 = vadd.f32 %v2523_v58, %v2507_v9 }
0x1021   : > { %3435 = vtanh.f32 %v2527_v11  ;;  %v2542_v20 = vrot.slane %v2527_v11, 7 }
0x1027   : > { %v3436_v60 = vpop.eup %3435 }
0x1028   : > { %2534 = vrot.lane.b32.xlu0 %v3436_v60, %s3787_s15 }
0x1031   : > { %v2381_v4 = vpop.permute.xlu0 %2380 }
0x1032   : > { %v2385_v18 = vadd.f32 %v2381_v4, %v2365_v14 }
0x1034   : > { %3437 = vtanh.f32 %v2385_v18  ;;  %v2400_v31 = vrot.slane %v2385_v18, 7 }
0x1039   : > { %v2521_v19 = vpop.permute.xlu1 %2520 }
0x103a   : > { %v3438_v17 = vpop.eup %3437  ;;  %v2526_v51 = vadd.f32 %v2521_v19, %v2506_v57 }
0x103b   : > { %2392 = vrot.lane.b32.xlu2 %v3438_v17, %s3787_s15 }
0x103c   : > { %3439 = vtanh.f32 %v2526_v51  ;;  %v2543_v22 = vsel %vm4636_vm13, %v2542_v20, %v2526_v51 }
0x1042   : > { %v3440_v23 = vpop.eup %3439 }
0x1043   : > { %2532 = vrot.lane.b32.xlu2 %v3440_v23, %s3787_s15 }
0x1048   : > { %v2379_v26 = vpop.permute.xlu0 %2378 }
0x1049   : > { %v2384_v32 = vadd.f32 %v2379_v26, %v2364_v25 }
0x104b   : > { %3441 = vtanh.f32 %v2384_v32  ;;  %v2401_v33 = vsel %vm4637_vm7, %v2400_v31, %v2384_v32 }
0x104c   : > { %2402 = vrot.lane.b32.xlu2 %v2401_v33, %s3789_s3 }
0x1051   : > { %v3442_v12 = vpop.eup %3441 }
0x1052   : > { %2390 = vrot.lane.b32.xlu1 %v3442_v12, %s3787_s15 }
0x1095   : > { %v2393_v37 = vpop.permute.xlu2 %2392 }
0x1096   : > { %v2397_v55 = vmul.f32 %v2393_v37, %v4418_v28 }
0x1098   : > { %v2408_v52 = vrot.slane %v2397_v55, 7 }
0x109a   : > { %v2535_v38 = vpop.permute.xlu0 %2534 }
0x109b   : > { %v2539_v39 = vmul.f32 %v2535_v38, %v2493_v49  ;;  %v2416_v49 = vrot.slane %v2397_v55, 5 }
0x109d   : > { %v2550_v42 = vrot.slane %v2539_v39, 7  ;;  %v2533_v10 = vpop.permute.xlu2 %2532 }
0x109e   : > { %v2538_v44 = vmul.f32 %v2533_v10, %v2478_v43 }
0x10a0   : > { %v2557_v48 = vrot.slane %v2538_v44, 1  ;;  %v2551_v27 = vsel %vm4638_vm10, %v2550_v42, %v2538_v44 }
0x10a1   : > { %2552 = vrot.lane.b32.xlu1 %v2551_v27, %s3788_s23 }
0x10a2   : > { %v4436_v41 = vsel %vm660_vm4, %v2539_v39, %v2557_v48 }
0x10a6   : > { %v2403_v50 = vpop.permute.xlu2 %2402 }
0x10a7   : > { %2405 = vst.msk [vmem:[#allocation3 - $0x6] sm:$0xc0] %vm4639_vm0, %v2403_v50 }
0x10ae   : > { %v2639_v9 = vld [vmem:[#allocation3] sm:$0x3] }
0x10af   : > { %v2642_v58 = vrot.slane %v2639_v9, 2  ;;  %v2641_v19 = vrot.slane %v2639_v9, 1 }
0x10c4   : > { %v2391_v56 = vpop.permute.xlu1 %2390 }
0x10c5   : > { %v2396_v59 = vmul.f32 %v2391_v56, %v2335_v2 }
0x10c7   : > { %v2415_v61 = vrot.slane %v2396_v59, 6  ;;  %v2409_v43 = vsel %vm4640_vm14, %v2408_v52, %v2396_v59 }
0x10c8   : > { %2410 = vrot.lane.b32.xlu0 %v2409_v43, %s3788_s23 }
0x10c9   : > { %v4443_v62 = vsel %vm660_vm4, %v2416_v49, %v2415_v61 }
0x10d0   : > { %2544 = vrot.lane.b32.xlu0 %v2543_v22, %s3789_s3 }
0x1113   : > { %v2553_v63 = vpop.permute.xlu1 %2552 }
0x1114   : > { %2555 = vst.msk [vmem:[#allocation4 - $0x1] sm:$0x6] %vm4641_vm8, %v2553_v63 }
0x111b   : > { %v2714_v0 = vld [vmem:[#allocation4] sm:$0x3] }
0x111c   : > { %3069 = vmatmul.msk.f32.vlgmr.msra.gmra.mxu3 %vm544_vm2, %v2714_v0 }
0x113a   : > { %v2411_v28 = vpop.permute.xlu0 %2410 }
0x113b   : > { %2413 = vst.msk [vmem:[#allocation2 - $0x6] sm:$0xc0] %vm4642_vm9, %v2411_v28 }
0x1142   : > { %v2545_v1 = vpop.permute.xlu0 %2544  ;;  %v2564_v2 = vld [vmem:[#allocation2] sm:$0x3] }
0x1143   : > { %2547 = vst.msk [vmem:[#allocation5 - $0x1] sm:$0x6] %vm4643_vm15, %v2545_v1  ;;  %3066 = vmatmul.msk.f32.vlgmr.msra.gmra.mxu2 %vm544_vm2, %v2564_v2 }
0x119f   : > { %v2739_v54 = vpop.f32.mrf.mxu3 }
0x11a0   : > { %v2743_v5 = vrot.slane %v2739_v54, 1  ;;  %v2746_v4 = vadd.f32 %v2739_v54, %v4054_v34 }
0x11a2   : > { %v2747_v6 = vadd.f32 %v2743_v5, %v4057_v40  ;;  %v3070_v25 = vmul.f32 -1.442695, %v2746_v4 }
0x11a4   : > { %3443 = vtanh.f32 %v2747_v6  ;;  %v3071_v31 = vmul.f32 -1.442695, %v2747_v6 }
0x11aa   : > { %v3444_v8 = vpop.eup %3443 }
0x11ab   : > { %2803 = vrot.lane.b32.xlu0 %v3444_v8, %s3787_s15 }
0x11b3   : > { %2645 = vrot.lane.b32.xlu0 %v2642_v58, %s3787_s15 }
0x11c6   : > { %v2589_v11 = vpop.f32.mrf.mxu2 }
0x11c7   : > { %v2593_v60 = vrot.slane %v2589_v11, 1  ;;  %v2594_v13 = vrot.slane %v2589_v11, 2 }
0x11c9   : > { %v2597_v14 = vadd.f32 %v2593_v60, %v4049_v29  ;;  %v2598_v15 = vadd.f32 %v2594_v13, %v4051_v30  ;;  %v2788_v29 = vld [vmem:[#allocation5] sm:$0x3] }
0x11ca   : > { %v2790_v17 = vrot.slane %v2788_v29, 1 }
0x11cb   : > { %3445 = vtanh.f32 %v2597_v14  ;;  %v3068_v30 = vmul.f32 -1.442695, %v2598_v15  ;;  %v3067_v22 = vmul.f32 -1.442695, %v2597_v14 }
0x11cc   : > { %3447 = vtanh.f32 %v2598_v15 }
0x11cd   : > { %3449 = vtanh.f32 %v2746_v4 }
0x11ce   : > { %3451 = vpow2.f32 %v3068_v30 }
0x11d1   : > { %v3446_v40 = vpop.eup %3445 }
0x11d2   : > { %v3448_v18 = vpop.eup %3447  ;;  %2653 = vrot.lane.b32.xlu1 %v3446_v40, %s3787_s15 }
0x11d3   : > { %2655 = vrot.lane.b32.xlu2 %v3448_v18, %s3787_s15  ;;  %v3450_v57 = vpop.eup %3449 }
0x11d4   : > { %v3452_v34 = vpop.eup %3451 }
0x11d5   : > { %v2606_v20 = vadd.f32 1.0, %v3452_v34 }
0x11d7   : > { %3453 = vrcp.f32 %v2606_v20  ;;  %vm2627_vm3 = vweird.f32 %v2606_v20  ;;  %v2631_v38 = vand.u32 2147483647, %v2606_v20 }
0x11d8   : > { %3455 = vpow2.f32 %v3067_v22 }
0x11d9   : > { %3457 = vpow2.f32 %v3070_v25  ;;  %vm2632_vm11 = vcmp.eq.f32.partialorder %v2631_v38, 8.507059e+37 }
0x11da   : > { %2801 = vrot.lane.b32.xlu1 %v3450_v57, %s3787_s15  ;;  %3459 = vpow2.f32 %v3071_v31 }
0x11db   : > { %2643 = vrot.lane.b32.xlu2 %v2641_v19, %s3787_s15 }
0x11dd   : > { %v3454_v51 = vpop.eup %3453 }
0x11de   : > { %v2623_v23 = vmul.f32 %v3454_v51, %v2606_v20  ;;  %v3456_v32 = vpop.eup %3455  ;;  %vm2628_vm1 = vweird.f32 %v3454_v51 }
0x11df   : > { %v3458_v37 = vpop.eup %3457  ;;  %vm2629_vm6 = vmor %vm2627_vm3, %vm2628_vm1 }
0x11e0   : > { %v2624_v26 = vsub.f32 1.0, %v2623_v23  ;;  %v3460_v39 = vpop.eup %3459  ;;  %v2754_v10 = vadd.f32 1.0, %v3458_v37 }
0x11e1   : > { %v2755_v48 = vadd.f32 1.0, %v3460_v39 }
0x11e2   : > { %2793 = vrot.lane.b32.xlu1 %v2790_v17, %s3787_s15  ;;  %v2625_v33 = vmul.f32 %v3454_v51, %v2624_v26  ;;  %vm2761_vm14 = vweird.f32 %v2754_v10  ;;  %v2767_v40 = vand.u32 2147483648, %v2754_v10  ;;  %v2765_v57 = vand.u32 2147483647, %v2754_v10 }
0x11e3   : > { %v2782_v4 = vand.u32 2147483648, %v2755_v48  ;;  %vm2776_vm8 = vweird.f32 %v2755_v48  ;;  %v2780_v18 = vand.u32 2147483647, %v2755_v48 }
0x11e4   : > { %v2626_v12 = vadd.f32 %v3454_v51, %v2625_v33  ;;  %v2768_v34 = vor.u32 1.1754944e-38, %v2767_v40  ;;  %vm2766_vm3 = vcmp.eq.f32.partialorder %v2765_v57, 8.507059e+37 }
0x11e5   : > { %v2783_v30 = vor.u32 1.1754944e-38, %v2782_v4  ;;  %vm2781_vm1 = vcmp.eq.f32.partialorder %v2780_v18, 8.507059e+37 }
0x11e6   : > { %v2630_v42 = vsel %vm2629_vm6, %v3454_v51, %v2626_v12  ;;  %vm4644_vm6 = vcmask 254976  }
0x11ea   : > { %2791 = vrot.lane.b32.xlu1 %v2788_v29, %s3787_s15 }
0x11f2   : > { %825 = vrot.lane.b32.xlu1 %v4111_v21, %s3788_s23  ;;  %v2605_v21 = vadd.f32 1.0, %v3456_v32  ;;  %v821_v32 = vld [vmem:[#allocation7] sm:$0x3] }
0x11f4   : > { %3461 = vrcp.f32 %v2605_v21  ;;  %v2618_v54 = vand.u32 2147483648, %v2605_v21  ;;  %vm2612_vm5 = vweird.f32 %v2605_v21  ;;  %v2616_v5 = vand.u32 2147483647, %v2605_v21 }
0x11f5   : > { %3463 = vrcp.f32 %v2754_v10 }
0x11f6   : > { %3465 = vrcp.f32 %v2755_v48  ;;  %v2619_v58 = vor.u32 1.1754944e-38, %v2618_v54  ;;  %vm2617_vm7 = vcmp.eq.f32.partialorder %v2616_v5, 8.507059e+37 }
0x11fa   : > { %1260 = vrot.lane.b32.xlu1 %v4222_v45, %s3788_s23  ;;  %v2633_v45 = vand.u32 2147483648, %v2606_v20  ;;  %v3462_v55 = vpop.eup %3461 }
0x11fb   : > { %v2608_v52 = vmul.f32 %v3462_v55, %v2605_v21  ;;  %v3464_v59 = vpop.eup %3463  ;;  %vm2613_vm12 = vweird.f32 %v3462_v55 }
0x11fc   : > { %v2634_v44 = vor.u32 1.1754944e-38, %v2633_v45  ;;  %v3466_v61 = vpop.eup %3465  ;;  %v2757_v0 = vmul.f32 %v3464_v59, %v2754_v10  ;;  %vm2614_vm13 = vmor %vm2612_vm5, %vm2613_vm12  ;;  %vm2762_vm10 = vweird.f32 %v3464_v59 }
0x11fd   : > { %v2609_v49 = vsub.f32 1.0, %v2608_v52  ;;  %v2772_v43 = vmul.f32 %v3466_v61, %v2755_v48  ;;  %vm2777_vm0 = vweird.f32 %v3466_v61  ;;  %vm2763_vm9 = vmor %vm2761_vm14, %vm2762_vm10 }
0x11fe   : > { %v4467_v27 = vsel %vm2632_vm11, %v2634_v44, %v2630_v42  ;;  %v2758_v2 = vsub.f32 1.0, %v2757_v0  ;;  %vm2778_vm15 = vmor %vm2776_vm8, %vm2777_vm0  ;;  %vm4651_vm0 = vcmask 261127  }
0x11ff   : > { %v2610_v63 = vmul.f32 %v3462_v55, %v2609_v49  ;;  %v2773_v28 = vsub.f32 1.0, %v2772_v43  ;;  %vm4645_vm11 = vmmov %vm4644_vm6 }
0x1200   : > { %v2759_v9 = vmul.f32 %v3464_v59, %v2758_v2  ;;  %vm4646_vm12 = vmmov %vm4644_vm6 }
0x1201   : > { %v2611_v1 = vadd.f32 %v3462_v55, %v2610_v63  ;;  %v2774_v6 = vmul.f32 %v3466_v61, %v2773_v28  ;;  %vm4647_vm5 = vmmov %vm4644_vm6 }
0x1202   : > { %v2760_v15 = vadd.f32 %v3464_v59, %v2759_v9  ;;  %vm4650_vm10 = vmmov %vm4647_vm5 }
0x1203   : > { %v2615_v8 = vsel %vm2614_vm13, %v3462_v55, %v2611_v1  ;;  %v2775_v13 = vadd.f32 %v3466_v61, %v2774_v6  ;;  %v965_v55 = vld [vmem:[#allocation6] sm:$0x3]  ;;  %vm4648_vm13 = vmmov %vm4647_vm5 }
0x1204   : > { %v4471_v11 = vsel %vm2617_vm7, %v2619_v58, %v2615_v8  ;;  %v2764_v29 = vsel %vm2763_vm9, %v3464_v59, %v2760_v15  ;;  %vm4649_vm7 = vmmov %vm4647_vm5 }
0x1205   : > { %v2779_v19 = vsel %vm2778_vm15, %v3466_v61, %v2775_v13  ;;  %v4477_v51 = vsel %vm2766_vm3, %v2768_v34, %v2764_v29  ;;  %vm4652_vm14 = vmmov %vm4647_vm5 }
0x1206   : > { %v4475_v20 = vsel %vm2781_vm1, %v2783_v30, %v2779_v19  ;;  %vm4653_vm8 = vmmov %vm4647_vm5 }
0x1207   : > { %vm4654_vm9 = vmmov %vm4647_vm5 }
0x1208   : > { %vm4655_vm15 = vmmov %vm4647_vm5 }
0x1209   : > { %vm4657_vm1 = vmmov %vm4647_vm5 }
0x120a   : > { %vm4658_vm3 = vmmov %vm4657_vm1 }
0x121d   : > { %v2804_v17 = vpop.permute.xlu0 %2803 }
0x121e   : > { %v2808_v23 = vmul.f32 %v2804_v17, %v4475_v20 }
0x1225   : > { %v2646_v45 = vpop.permute.xlu0 %2645 }
0x1226   : > { %v2650_v38 = vmul.f32 %v2646_v45, %v4467_v27 }
0x122d   : > { %v2656_v50 = vpop.permute.xlu2 %2655 }
0x122e   : > { %v2660_v56 = vmul.f32 %v2656_v50, %v4467_v27 }
0x1230   : > { %2665 = vrot.lane.b32.xlu0 %v2660_v56, %s3787_s15 }
0x1235   : > { %v2644_v12 = vpop.permute.xlu2 %2643 }
0x1236   : > { %v2649_v37 = vmul.f32 %v2644_v12, %v4471_v11 }
0x1244   : > { %v2654_v60 = vpop.permute.xlu1 %2653 }
0x1245   : > { %v2659_v14 = vmul.f32 %v2654_v60, %v4471_v11 }
0x1247   : > { %2663 = vrot.lane.b32.xlu2 %v2659_v14, %s3787_s15 }
0x124c   : > { %v2802_v22 = vpop.permute.xlu1 %2801 }
0x124d   : > { %v2807_v25 = vmul.f32 %v2802_v22, %v4477_v51 }
0x124f   : > { %2813 = vrot.lane.b32.xlu2 %v2808_v23, %s3787_s15  ;;  %2811 = vrot.lane.b32.xlu0 %v2807_v25, %s3787_s15 }
0x1254   : > { %v2794_v26 = vpop.permute.xlu1 %2793 }
0x1257   : > { %968 = vrot.lane.b32.xlu2 %v4163_v24, %s3788_s23  ;;  %1114 = vrot.lane.b32.xlu0 %v4171_v35, %s3788_s23  ;;  %v2798_v35 = vmul.f32 %v2794_v26, %v4475_v20 }
0x125c   : > { %v2792_v31 = vpop.permute.xlu1 %2791 }
0x125d   : > { %v2797_v63 = vmul.f32 %v2792_v31, %v4477_v51 }
0x125f   : > { %1406 = vrot.lane.b32.xlu2 %v4230_v53, %s3788_s23 }
0x1264   : > { %v826_v33 = vpop.permute.xlu1 %825 }
0x1265   : > { %v828_v21 = vadd.f32 %v826_v33, %v821_v32 }
0x1267   : > { %829 = vst.msk [vmem:[#allocation7] sm:$0x3] %vm4644_vm6, %v828_v21 }
0x126c   : > { %v1261_v49 = vpop.permute.xlu1 %1260 }
0x12a1   : > { %v2664_v39 = vpop.permute.xlu2 %2663 }
0x12a2   : > { %v2666_v24 = vpop.permute.xlu0 %2665  ;;  %v2669_v42 = vadd.f32 %v2664_v39, %v2649_v37 }
0x12a3   : > { %v2670_v10 = vadd.f32 %v2666_v24, %v2650_v38 }
0x12a4   : > { %3467 = vtanh.f32 %v2669_v42 }
0x12a5   : > { %3469 = vtanh.f32 %v2670_v10 }
0x12a9   : > { %v2814_v53 = vpop.permute.xlu2 %2813 }
0x12aa   : > { %v3468_v44 = vpop.eup %3467  ;;  %v2818_v48 = vadd.f32 %v2814_v53, %v2798_v35 }
0x12ab   : > { %v3470_v50 = vpop.eup %3469  ;;  %2675 = vrot.lane.b32.xlu0 %v3468_v44, %s3787_s15 }
0x12ac   : > { %3471 = vtanh.f32 %v2818_v48  ;;  %2677 = vrot.lane.b32.xlu1 %v3470_v50, %s3787_s15  ;;  %v2833_v28 = vrot.slane %v2818_v48, 7 }
0x12b1   : > { %v969_v56 = vpop.permute.xlu2 %968 }
0x12b2   : > { %v3472_v52 = vpop.eup %3471  ;;  %v971_v59 = vadd.f32 %v969_v56, %v965_v55 }
0x12b3   : > { %2825 = vrot.lane.b32.xlu2 %v3472_v52, %s3787_s15 }
0x12b4   : > { %972 = vst.msk [vmem:[#allocation6] sm:$0x3] %vm4645_vm11, %v971_v59  ;;  %1552 = vrot.lane.b32.xlu1 %v4285_v16, %s3788_s23  ;;  %v1110_v16 = vld [vmem:[#allocation7] sm:$0x3]  ;;  %vm4660_vm11 = vmmov %vm4657_vm1 }
0x12b9   : > { %v1407_v5 = vpop.permute.xlu2 %1406 }
0x12bb   : > { %v1256_v61 = vld [vmem:[#allocation6] sm:$0x3]  ;;  %1698 = vrot.lane.b32.xlu2 %v4276_v7, %s3788_s23 }
0x12bc   : > { %v1263_v43 = vadd.f32 %v1261_v49, %v1256_v61  ;;  %1986 = vrot.lane.b32.xlu1 %v4339_v46, %s3788_s23 }
0x12be   : > { %1264 = vst.msk [vmem:[#allocation6] sm:$0x3] %vm4646_vm12, %v1263_v43  ;;  %vm4661_vm12 = vmmov %vm4657_vm1 }
0x12c1   : > { %v2812_v0 = vpop.permute.xlu0 %2811 }
0x12c2   : > { %v2817_v1 = vadd.f32 %v2812_v0, %v2797_v63 }
0x12c3   : > { %2130 = vrot.lane.b32.xlu2 %v4390_v47, %s3788_s23 }
0x12c4   : > { %3473 = vtanh.f32 %v2817_v1  ;;  %2418 = vrot.lane.b32.xlu1 %v4443_v62, %s3788_s23  ;;  %v2834_v7 = vsel %vm660_vm4, %v2833_v28, %v2817_v1  ;;  %v2685_v62 = vrot.slane %v2670_v10, 7 }
0x12c5   : > { %v1548_v29 = vld [vmem:[#allocation6] sm:$0x3] }
0x12c9   : > { %v1115_v2 = vpop.permute.xlu0 %1114 }
0x12ca   : > { %v3474_v54 = vpop.eup %3473  ;;  %v1117_v46 = vadd.f32 %v1115_v2, %v1110_v16 }
0x12cb   : > { %2823 = vrot.lane.b32.xlu0 %v3474_v54, %s3787_s15  ;;  %2559 = vrot.lane.b32.xlu2 %v4436_v41, %s3788_s23 }
0x12cc   : > { %1118 = vst.msk [vmem:[#allocation7] sm:$0x3] %vm4647_vm5, %v1117_v46  ;;  %vm4662_vm5 = vmmov %vm4657_vm1 }
0x12d3   : > { %v1402_v6 = vld [vmem:[#allocation7] sm:$0x3]  ;;  %1842 = vrot.lane.b32.xlu0 %v4331_v36, %s3788_s23  ;;  %2686 = vrot.lane.b32.xlu2 %v2669_v42, %s3789_s3 }
0x12d4   : > { %v1409_v47 = vadd.f32 %v1407_v5, %v1402_v6 }
0x12d6   : > { %1410 = vst.msk [vmem:[#allocation7] sm:$0x3] %vm4648_vm13, %v1409_v47  ;;  %vm4663_vm13 = vmmov %vm4657_vm1 }
0x12db   : > { %2274 = vrot.lane.b32.xlu0 %v4398_v3, %s3788_s23 }
0x12dd   : > { %v1694_v41 = vld [vmem:[#allocation7] sm:$0x3] }
0x12e3   : > { %2688 = vrot.lane.b32.xlu0 %v2685_v62, %s3789_s3 }
0x130d   : > { %v2826_v8 = vpop.permute.xlu2 %2825 }
0x130e   : > { %v2830_v22 = vmul.f32 %v2826_v8, %v4475_v20 }
0x1310   : > { %v2841_v25 = vrot.slane %v2830_v22, 7 }
0x1315   : > { %v1699_v9 = vpop.permute.xlu2 %1698 }
0x1316   : > { %v1701_v58 = vadd.f32 %v1699_v9, %v1694_v41 }
0x1318   : > { %1702 = vst.msk [vmem:[#allocation7] sm:$0x3] %vm4649_vm7, %v1701_v58  ;;  %vm4664_vm7 = vmmov %vm4651_vm0 }
0x131d   : > { %v2676_v60 = vpop.permute.xlu0 %2675  ;;  %v2131_v13 = vpop.permute.xlu2 %2130 }
0x131e   : > { %v2678_v36 = vpop.permute.xlu1 %2677  ;;  %v2681_v14 = vmul.f32 %v2676_v60, %v4471_v11 }
0x131f   : > { %v2682_v15 = vmul.f32 %v2678_v36, %v4467_v27  ;;  %v1982_v27 = vld [vmem:[#allocation7] sm:$0x3] }
0x1320   : > { %v2706_v4 = vrot.slane %v2681_v14, 7 }
0x1321   : > { %v2696_v40 = vrot.slane %v2682_v15, 7  ;;  %v2707_v18 = vrot.slane %v2682_v15, 6 }
0x1323   : > { %2699 = vrot.lane.b32.xlu2 %v2696_v40, %s3788_s23  ;;  %v2708_v3 = vsel %vm660_vm4, %v2707_v18, %v2706_v4 }
0x1324   : > { %2709 = vrot.lane.b32.xlu0 %v2708_v3, %s3788_s23 }
0x1325   : > { %v2560_v57 = vpop.permute.xlu2 %2559 }
0x1326   : > { %v1553_v19 = vpop.permute.xlu1 %1552 }
0x1327   : > { %v1555_v17 = vadd.f32 %v1553_v19, %v1548_v29 }
0x1329   : > { %1556 = vst.msk [vmem:[#allocation6] sm:$0x3] %vm4650_vm10, %v1555_v17 }
0x132c   : > { %2835 = vrot.lane.b32.xlu0 %v2834_v7, %s3789_s3 }
0x132d   : > { %v2687_v11 = vpop.permute.xlu2 %2686 }
0x132e   : > { %v1987_v30 = vpop.permute.xlu1 %1986  ;;  %2692 = vst.msk [vmem:[#allocation3 - $0x7] sm:$0x80] %vm4651_vm0, %v2687_v11 }
0x132f   : > { %v1989_v34 = vadd.f32 %v1987_v30, %v1982_v27 }
0x1330   : > { %v1838_v33 = vld [vmem:[#allocation6] sm:$0x3] }
0x1331   : > { %1990 = vst.msk [vmem:[#allocation7] sm:$0x3] %vm4652_vm14, %v1989_v34 }
0x1336   : > { %v2419_v42 = vpop.permute.xlu1 %2418 }
0x1338   : > { %v2270_v45 = vld [vmem:[#allocation7] sm:$0x3] }
0x133d   : > { %v2824_v23 = vpop.permute.xlu0 %2823 }
0x133e   : > { %v2829_v26 = vmul.f32 %v2824_v23, %v4477_v51 }
0x1340   : > { %v2842_v31 = vsel %vm660_vm4, %v2841_v25, %v2829_v26  ;;  %vm4656_vm4 = vcmask 253952  }
0x1341   : > { %2843 = vrot.lane.b32.xlu1 %v2842_v31, %s3788_s23  ;;  %vm4659_vm6 = vmmov %vm4656_vm4 }
0x1345   : > { %v1843_v32 = vpop.permute.xlu0 %1842 }
0x1346   : > { %v1845_v21 = vadd.f32 %v1843_v32, %v1838_v33 }
0x1348   : > { %1846 = vst.msk [vmem:[#allocation6] sm:$0x3] %vm4653_vm8, %v1845_v21 }
0x1349   : > { %2697 = vrot.lane.b32.xlu1 %v2681_v14, %s3788_s23 }
0x134d   : > { %v2275_v12 = vpop.permute.xlu0 %2274 }
0x134e   : > { %v2277_v37 = vadd.f32 %v2275_v12, %v2270_v45 }
0x134f   : > { %v2126_v38 = vld [vmem:[#allocation6] sm:$0x3] }
0x1350   : > { %v2133_v20 = vadd.f32 %v2131_v13, %v2126_v38  ;;  %2278 = vst.msk [vmem:[#allocation7] sm:$0x3] %vm4654_vm9, %v2277_v37 }
0x1352   : > { %2134 = vst.msk [vmem:[#allocation6] sm:$0x3] %vm4655_vm15, %v2133_v20 }
0x1355   : > { %v2689_v51 = vpop.permute.xlu0 %2688 }
0x1356   : > { %2693 = vst.msk [vmem:[#allocation3 + $0x1] sm:$0x1] %vm4656_vm4, %v2689_v51 }
0x1357   : > { %v2556_v39 = vld [vmem:[#allocation7] sm:$0x3] }
0x1358   : > { %v2562_v24 = vadd.f32 %v2560_v57, %v2556_v39 }
0x1359   : > { %v2414_v10 = vld [vmem:[#allocation6] sm:$0x3] }
0x135a   : > { %v2421_v35 = vadd.f32 %v2419_v42, %v2414_v10  ;;  %2563 = vst.msk [vmem:[#allocation7] sm:$0x3] %vm4657_vm1, %v2562_v24 }
0x135c   : > { %2422 = vst.msk [vmem:[#allocation6] sm:$0x3] %vm4658_vm3, %v2421_v35 }
0x1361   : > { %v2847_v52 = vld [vmem:[#allocation7] sm:$0x3] }
0x1363   : > { %v2705_v48 = vld [vmem:[#allocation6] sm:$0x3] }
0x137d   : > { %v2700_v53 = vpop.permute.xlu2 %2699 }
0x137e   : > { %2704 = vst.msk [vmem:[#allocation2 + $0x1] sm:$0x1] %vm4659_vm6, %v2700_v53 }
0x1396   : > { %v2710_v44 = vpop.permute.xlu0 %2709 }
0x1397   : > { %v2712_v50 = vadd.f32 %v2710_v44, %v2705_v48 }
0x1399   : > { %2713 = vst.msk [vmem:[#allocation6] sm:$0x3] %vm4660_vm11, %v2712_v50 }
0x139e   : > { %v2836_v55 = vpop.permute.xlu0 %2835 }
0x139f   : > { %2838 = vst.msk [vmem:[#allocation5] sm:$0x3] %vm4661_vm12, %v2836_v55 }
0x13b3   : > { %v2844_v56 = vpop.permute.xlu1 %2843 }
0x13b4   : > { %2846 = vst.msk [vmem:[#allocation4] sm:$0x3] %vm4662_vm5, %v2844_v56  ;;  %v2848_v59 = vadd.f32 %v2847_v52, %v2844_v56 }
0x13b6   : > { %2849 = vst.msk [vmem:[#allocation7] sm:$0x3] %vm4663_vm13, %v2848_v59 }
0x13b8   : > { %2853 = sbr.rel (%p3072_p1) target bundleno = 5173 (0x1435), region = 84 }
0x13bb   : > { %v2698_v49 = vpop.permute.xlu1 %2697 }
0x13bc   : > { %2703 = vst.msk [vmem:[#allocation2 - $0x7] sm:$0x80] %vm4664_vm7, %v2698_v49 }
0x13bd   : > { %v2855_v61 = vld [vmem:[#allocation7] sm:$0x3]  ;;  %v2854_v43 = vld [vmem:[#allocation6] sm:$0x3]  ;;  %vm2862_vm10 = vcmask 517120  }
0x13be   : > { %2857 = vrot.lane.b32.xlu0 %v2855_v61, %s3790_s6 }
0x1430   : > { %v2858_v63 = vpop.permute.xlu0 %2857 }
0x1431   : > { %v2860_v0 = vsel %vm544_vm2, %v2854_v43, %v2858_v63 }
0x1432   : > { %v2861_v28 = vmul.f32 0.0625, %v2860_v0 }
0x1434   : > { %2863 = vst.msk [vmem:[#allocation19] sm:$0x3] %vm2862_vm10, %v2861_v28 }
0x1435 PF: > { %p3130_p6 = scmp.eq.s32.totalorder %s3879_s14, 1  ;;  %s4665_s21 = sld [smem:[#allocation34_spill]] }
0x1436   : > { %s3791_s5 = smov [#allocation19]  }
0x1437   : > { %s2872_s11 = sshll.u32 %s3791_s5, 4  ;;  %s2873_s11 = int_to_ptr.vmem [resolvable:$true] %s2872_s11 }
0x143b   : > { %s2874_s18 = sshll.u32 %s4665_s21, 4  ;;  %s2875_s18 = int_to_ptr.hbm [resolvable:$true] %s2874_s18 }
0x143c   : > { %3098 = dma.vmem_to_hbm [thread:$0]  (%p3130_p6), %s2873_s11, 32, %s2875_s18, [#allocation10]  }
0x143d   : > { %3740 = dma.done.wait (%p3130_p6), [#allocation10], 32  }
0x143e   : > { %3742 = vsyncadd (%p3130_p6), [#allocation10], 4294967264 }
0x143f PF: > { %s27_s13 = sadd.s32 1, %s3777_s13   ;;  %s4666_s0 = smov %s3979_s27 }
0x1440   : > { %p24_p7 = scmp.ge.s32.totalorder %s27_s13, 4   ;;  %s4667_s14 = sld [smem:[#allocation26_spill]] }
0x1441   : > { %s4668_s10 = sld [smem:[#allocation27_spill]]  ;;  %s4669_s27 = smov %s3749_s28 }
0x1442   : > { %s4670_s28 = smov %s3753_s29  ;;  %s4671_s29 = smov %s4666_s0 }
0x1443   : > { %s4672_s30 = smov %s3761_s9  ;;  %s4674_s11 = smov %s3773_s12 }
0x1444   : > { %s4675_s12 = smov %s4677_s19  ;;  %26 = sbr.rel (!%p24_p7) target bundleno = 19 (0x13), region = 127 }
0x1446   : > { %s4673_s9 = smov %s4667_s14 }
0x1449   :  { %2888 = vsyncpa [#allocation9], 1 }
0x144a   :  { %2890 = vsyncpa [#allocation9 + $0x1], 1 }
0x144b   :  { %2891 = vsyncpa [#allocation12], 1 }
0x144c   :  { %2893 = vsyncpa [#allocation12 + $0x1], 1 }
0x144d   :  { %2894 = vsyncpa [#allocation15], 1 }
0x144e   :  { %2895 = vsyncpa [#allocation18], 1 }
0x144f   :  { %2896 = vsyncpa [#allocation10], 1 }
0x1450   :  { %2898 = vsyncpa [#allocation10 + $0x1], 1 }

</bundles_post_ra>
